<compile_context>
chip_gen: v5e
topology: v5e:2x2
jax: 0.10.0
libtpu: 0.0.40
codegen_flags: <defaults>
</compile_context>

<pallas_src>
import functools

import jax
import jax.numpy as jnp
from jax.experimental import pallas as pl
from jax.experimental.pallas import tpu as pltpu


def _mhsa_kernel(*refs, n_heads, key_size, output_size,
                 use_mask, overall_weighting, input_is_query):
    it = iter(refs)
    pre_vk_ref = next(it)
    pre_q_ref = next(it)
    wk_ref = next(it); bk_ref = next(it)
    wv_ref = next(it); bv_ref = next(it)
    wq_ref = bq_ref = None
    if not input_is_query:
        wq_ref = next(it); bq_ref = next(it)
    mask_ref = cnt_ref = None
    if use_mask:
        mask_ref = next(it); cnt_ref = next(it)
    gain_ref = obias_ref = None
    if overall_weighting:
        gain_ref = next(it); obias_ref = next(it)
    out_ref = next(it)

    f32, bf16 = jnp.float32, jnp.bfloat16
    Bt, S_v, D_v = pre_vk_ref.shape
    _, S_q, D_q = pre_q_ref.shape
    H = n_heads
    dk = key_size // H
    dv = output_size // H

    # ---- projections on a (Bt*S, D) slab: bf16 MXU operands, f32 accumulation ----
    pvk = pre_vk_ref[...].reshape(Bt * S_v, D_v).astype(bf16)
    k_all = (jnp.dot(pvk, wk_ref[...].astype(bf16), preferred_element_type=f32)
             + bk_ref[...].astype(f32))                          # (Bt*S_v, key_size)
    v_all = (jnp.dot(pvk, wv_ref[...].astype(bf16), preferred_element_type=f32)
             + bv_ref[...].astype(f32))                          # (Bt*S_v, output_size)
    if input_is_query:
        q_all = pre_q_ref[...].reshape(Bt * S_q, D_q)            # D_q == key_size
    else:
        pq = pre_q_ref[...].reshape(Bt * S_q, D_q).astype(bf16)
        q_all = (jnp.dot(pq, wq_ref[...].astype(bf16), preferred_element_type=f32)
                 + bq_ref[...].astype(f32))                      # (Bt*S_q, key_size)

    # ---- head split done ONCE per tensor (no per-head lane slices in a loop) ----
    def to_heads(x, S, d):
        # (Bt*S, H*d) -> (Bt*H, S, d): head-major merged batch, single relayout, bf16 out.
        return (x.reshape(Bt, S, H, d).transpose(0, 2, 1, 3)
                 .reshape(Bt * H, S, d).astype(bf16))

    q_h = to_heads(q_all, S_q, dk)
    k_h = to_heads(k_all, S_v, dk)
    v_h = to_heads(v_all, S_v, dv)

    # ---- attention batched over (batch*heads): bf16 MXU operands, f32 scores ----
    scores = jnp.einsum("bqd,bkd->bqk", q_h, k_h,
                        preferred_element_type=f32)              # (Bt*H, S_q, S_v)
    scores4 = scores.reshape(Bt, H, S_q, S_v)

    if use_mask:
        mask = mask_ref[...].astype(f32)                         # (Bt, 1, S_v)
        cnt = cnt_ref[...].astype(f32)                           # (Bt, 1, 1)
        # finite sentinel instead of -inf; exp underflows to exactly 0 for masked keys.
        add_mask = jnp.where(mask == 0.0, jnp.full_like(mask, -1e30),
                             jnp.zeros_like(mask)).reshape(Bt, 1, 1, S_v)
        inv_sqrt_cnt = jax.lax.rsqrt(cnt).reshape(Bt, 1, 1, 1)
        masked = scores4 * inv_sqrt_cnt + add_mask
    else:
        # NB: the reference PyTorch code softmaxes the *unscaled* scores when no mask is
        # given (scores_div_sqrt is computed but unused) — reproduced exactly.
        masked = scores4

    # softmax over the key axis in f32; denominator reciprocal goes to the EUP slot.
    m = jnp.max(masked, axis=-1, keepdims=True)
    e = jnp.exp(masked - m)
    p = e * pl.reciprocal(jnp.sum(e, axis=-1, keepdims=True), approx=True)

    h = jnp.einsum("bqk,bkd->bqd",
                   p.reshape(Bt * H, S_q, S_v).astype(bf16), v_h,
                   preferred_element_type=f32).reshape(Bt, H, S_q, dv)

    if overall_weighting:
        if use_mask:
            mask_over_cnt = (mask * pl.reciprocal(cnt, approx=True)).reshape(Bt, 1, 1, S_v)
            pooled = jnp.sum(scores4 * mask_over_cnt, axis=-1, keepdims=True)
        else:
            pooled = jnp.sum(scores4, axis=-1, keepdims=True) * (1.0 / S_v)
        # gain/obias arrive pre-shaped (1, H, 1, 1) — broadcasts over batch and query rows.
        w = jax.nn.sigmoid(pooled * gain_ref[...] + obias_ref[...])    # (Bt, H, S_q, 1)
        h = h * w

    # merge heads back into the lane dim and write out_ref ONCE, lane-dense.
    out = h.transpose(0, 2, 1, 3).reshape(Bt, S_q, H * dv)
    out_ref[...] = out.astype(out_ref.dtype)


def _param_spec(shape, single_buffer):
    """Full-extent BlockSpec for grid-invariant operands (single-buffered if supported)."""
    index_map = lambda b: (0,) * len(shape)
    if single_buffer:
        return pl.BlockSpec(shape, index_map, pipeline_mode=pl.Buffered(1))
    return pl.BlockSpec(shape, index_map)


def multi_headed_self_attention(pre_value_key, pre_query, params, *,
                                n_heads, key_size, output_size,
                                value_key_masks=None, value_key_counts=None,
                                overall_weighting=False, input_is_query=False,
                                batch_block=8, vmem_limit_bytes=None):
    # Activations are streamed HBM->VMEM in their native dtype (no forced f32 upcast);
    # the kernel casts MXU operands to bf16 and keeps elementwise math in f32.
    pre_value_key = jnp.asarray(pre_value_key)
    pre_query = jnp.asarray(pre_query)
    B, S_v, D_v = pre_value_key.shape
    _, S_q, D_q = pre_query.shape
    use_mask = value_key_masks is not None
    out_dtype = pre_query.dtype
    assert key_size % n_heads == 0 and output_size % n_heads == 0

    # batch blocking (pad B up to a multiple of the block).
    # Tuning: on v5e/v6e raise batch_block (plus vmem_limit_bytes) so Bt*S_v >= 256 rows;
    # on v7x (64 MiB VMEM, 2 TCs) pick batch_block <= ceil(B/2) so n_steps stays >= 2.
    Bt = max(1, min(batch_block, B))
    n_steps = -(-B // Bt)
    B_pad = n_steps * Bt
    if B_pad != B:
        pad = B_pad - B
        pre_value_key = jnp.pad(pre_value_key, ((0, pad), (0, 0), (0, 0)))
        pre_query = jnp.pad(pre_query, ((0, pad), (0, 0), (0, 0)))
        if use_mask:
            value_key_masks = jnp.concatenate(
                [jnp.asarray(value_key_masks, jnp.float32),
                 jnp.ones((pad, S_v), jnp.float32)], axis=0)
            value_key_counts = jnp.concatenate(
                [jnp.asarray(value_key_counts, jnp.float32),
                 jnp.full((pad,), float(S_v), jnp.float32)], axis=0)

    kernel = functools.partial(
        _mhsa_kernel, n_heads=n_heads, key_size=key_size, output_size=output_size,
        use_mask=use_mask, overall_weighting=overall_weighting,
        input_is_query=input_is_query)

    # operand list (unused operands are simply not passed at all)
    inputs = [pre_value_key, pre_query,
              params["wk"], params["bk"], params["wv"], params["bv"]]
    if not input_is_query:
        inputs += [params["wq"], params["bq"]]
    if use_mask:
        inputs += [jnp.asarray(value_key_masks, jnp.float32).reshape(B_pad, 1, S_v),
                   jnp.asarray(value_key_counts, jnp.float32).reshape(B_pad, 1, 1)]
    if overall_weighting:
        inputs += [jnp.asarray(params["gain"], jnp.float32).reshape(1, n_heads, 1, 1),
                   jnp.asarray(params["obias"], jnp.float32).reshape(1, n_heads, 1, 1)]

    def build_call(single_buffer_params):
        in_specs = [
            pl.BlockSpec((Bt, S_v, D_v), lambda b: (b, 0, 0)),
            pl.BlockSpec((Bt, S_q, D_q), lambda b: (b, 0, 0)),
            _param_spec(params["wk"].shape, single_buffer_params),
            _param_spec(params["bk"].shape, single_buffer_params),
            _param_spec(params["wv"].shape, single_buffer_params),
            _param_spec(params["bv"].shape, single_buffer_params),
        ]
        if not input_is_query:
            in_specs += [_param_spec(params["wq"].shape, single_buffer_params),
                         _param_spec(params["bq"].shape, single_buffer_params)]
        if use_mask:
            in_specs += [pl.BlockSpec((Bt, 1, S_v), lambda b: (b, 0, 0)),
                         pl.BlockSpec((Bt, 1, 1), lambda b: (b, 0, 0))]
        if overall_weighting:
            in_specs += [_param_spec((1, n_heads, 1, 1), single_buffer_params),
                         _param_spec((1, n_heads, 1, 1), single_buffer_params)]

        grid_spec = pltpu.PrefetchScalarGridSpec(
            num_scalar_prefetch=0,
            grid=(n_steps,),
            in_specs=in_specs,
            out_specs=pl.BlockSpec((Bt, S_q, output_size), lambda b: (b, 0, 0)),
        )
        return pl.pallas_call(
            kernel,
            out_shape=jax.ShapeDtypeStruct((B_pad, S_q, output_size), out_dtype),
            grid_spec=grid_spec,
            compiler_params=pltpu.CompilerParams(
                dimension_semantics=("parallel",),
                vmem_limit_bytes=vmem_limit_bytes),
        )

    single_buffer = hasattr(pl, "Buffered")
    try:
        out = build_call(single_buffer)(*inputs)
    except Exception:
        if not single_buffer:
            raise
        # fall back to default double-buffered params if Buffered(1) is unsupported here.
        out = build_call(False)(*inputs)

    return out[:B] if B_pad != B else out


def init_params(key, value_input_size, query_input_size, key_size, output_size,
                n_heads, mix_bias=-10.0):
    """Deterministic synthetic init (Linear weights pre-transposed to (in, out))."""
    ks = jax.random.split(key, 6)
    scale = 0.1
    return dict(
        wq=scale * jax.random.normal(ks[0], (query_input_size, key_size), jnp.float32),
        bq=scale * jax.random.normal(ks[1], (1, key_size), jnp.float32),
        wk=scale * jax.random.normal(ks[2], (value_input_size, key_size), jnp.float32),
        bk=scale * jax.random.normal(ks[3], (1, key_size), jnp.float32),
        wv=scale * jax.random.normal(ks[4], (value_input_size, output_size), jnp.float32),
        bv=scale * jax.random.normal(ks[5], (1, output_size), jnp.float32),
        gain=jnp.ones((1, n_heads), jnp.float32),                  # nn.init.ones_
        obias=jnp.full((1, n_heads), mix_bias, jnp.float32),       # nn.init.constant_(mix_bias)
    )


def reference_forward(pre_vk, pre_q, params, *, n_heads,
                      value_key_masks=None, value_key_counts=None,
                      overall_weighting=False, input_is_query=False):
    """Pure-JAX transcription of the PyTorch forward (for verification)."""
    pp = jax.lax.Precision.HIGHEST
    if input_is_query:
        q = pre_q
    else:
        q = jnp.dot(pre_q, params["wq"], precision=pp) + params["bq"][0]
    k = jnp.dot(pre_vk, params["wk"], precision=pp) + params["bk"][0]
    v = jnp.dot(pre_vk, params["wv"], precision=pp) + params["bv"][0]

    def split_heads(x):
        B, S, D = x.shape
        return x.reshape(B, S, n_heads, D // n_heads).transpose(0, 2, 1, 3)

    qh, kh, vh = split_heads(q), split_heads(k), split_heads(v)
    scores = jnp.einsum("bhqd,bhkd->bhqk", qh, kh, precision=pp)
    if value_key_masks is not None:
        cnt = value_key_counts.astype(jnp.float32)
        scores_div_sqrt = scores / jnp.sqrt(cnt)[:, None, None, None]
    if overall_weighting:
        if value_key_masks is not None:
            zeroed = scores * value_key_masks[:, None, None, :]
            div_cnt = zeroed / value_key_counts[:, None, None, None]
        else:
            div_cnt = scores / scores.shape[-1]
        pooled = div_cnt.sum(-1, keepdims=True)
        gain = params["gain"].reshape(1, n_heads, 1, 1)
        obias = params["obias"].reshape(1, n_heads, 1, 1)
        overall_weight = jax.nn.sigmoid(pooled * gain + obias)
    if value_key_masks is not None:
        add_mask = jnp.where(value_key_masks == 0, -jnp.inf, 0.0)
        masked = scores_div_sqrt + add_mask[:, None, None, :]
    else:
        masked = scores          # reference quirk: unscaled scores when no mask
    sm = jax.nn.softmax(masked, axis=-1)
    h = jnp.einsum("bhqk,bhkd->bhqd", sm, vh, precision=pp)
    if overall_weighting:
        h = h * overall_weight
    out = h.transpose(0, 2, 1, 3).reshape(h.shape[0], h.shape[2], -1)
    return out


if __name__ == "__main__":
    # small config consistent with the module's (B, S, D) convention
    B, S_v, S_q = 2, 8, 8
    value_input_size = 32
    query_input_size = 32
    key_size = 32
    output_size = 32
    n_heads = 4
    mix_bias = -10.0

    root = jax.random.PRNGKey(0)
    kp, kx, ky = jax.random.split(root, 3)
    params = init_params(kp, value_input_size, query_input_size, key_size,
                         output_size, n_heads, mix_bias=mix_bias)

    pre_value_key = jax.random.normal(kx, (B, S_v, value_input_size), jnp.float32)
    pre_query = jax.random.normal(ky, (B, S_q, query_input_size), jnp.float32)

    # masks: batch 0 fully valid, batch 1 has 5 valid key/value positions
    value_key_masks = jnp.array(
        [[1.0] * S_v, [1.0] * 5 + [0.0] * (S_v - 5)], dtype=jnp.float32)
    value_key_counts = value_key_masks.sum(axis=-1)

    # exercise the main config plus each conditional branch of the kernel.
    # tolerances absorb the bf16 MXU operands + approx reciprocal (structural bugs are O(0.1+)).
    configs = [
        dict(value_key_masks=value_key_masks, value_key_counts=value_key_counts,
             overall_weighting=True, input_is_query=False, atol=1e-4, rtol=5e-2),
        dict(value_key_masks=value_key_masks, value_key_counts=value_key_counts,
             overall_weighting=False, input_is_query=False, atol=5e-2, rtol=5e-2),
        dict(value_key_masks=None, value_key_counts=None,
             overall_weighting=False, input_is_query=False, atol=5e-2, rtol=5e-2),
        dict(value_key_masks=None, value_key_counts=None,
             overall_weighting=True, input_is_query=True, atol=1e-4, rtol=5e-2),
    ]

    for cfg in configs:
        cfg = dict(cfg)
        atol, rtol = cfg.pop("atol"), cfg.pop("rtol")
        out = multi_headed_self_attention(
            pre_value_key, pre_query, params,
            n_heads=n_heads, key_size=key_size, output_size=output_size, **cfg)
        out = jax.block_until_ready(out)
        ref = reference_forward(pre_value_key, pre_query, params, n_heads=n_heads, **cfg)
        ref = jax.block_until_ready(ref)
        assert out.shape == (B, S_q, output_size)
        assert jnp.allclose(out, ref, atol=atol, rtol=rtol), (
            f"cfg={cfg}: max abs err = {jnp.max(jnp.abs(out - ref))}")

    print("KERNEL_OK")
</pallas_src>

<mosaic_0001>
module attributes {stable_mosaic.version = 11 : i64} {
  func.func @_mhsa_kernel(%arg0: i32, %arg1: memref<2x8x32xf32, #tpu.memory_space<vmem>>, %arg2: memref<2x8x32xf32, #tpu.memory_space<vmem>>, %arg3: memref<32x32xf32, #tpu.memory_space<vmem>>, %arg4: memref<1x32xf32, #tpu.memory_space<vmem>>, %arg5: memref<32x32xf32, #tpu.memory_space<vmem>>, %arg6: memref<1x32xf32, #tpu.memory_space<vmem>>, %arg7: memref<32x32xf32, #tpu.memory_space<vmem>>, %arg8: memref<1x32xf32, #tpu.memory_space<vmem>>, %arg9: memref<2x1x8xf32, #tpu.memory_space<vmem>>, %arg10: memref<2x1x1xf32, #tpu.memory_space<vmem>>, %arg11: memref<1x4x1x1xf32, #tpu.memory_space<vmem>>, %arg12: memref<1x4x1x1xf32, #tpu.memory_space<vmem>>, %arg13: memref<2x8x32xf32, #tpu.memory_space<vmem>>) attributes {dimension_semantics = [#tpu.dimension_semantics<parallel>], iteration_bounds = array<i64: 1>, scalar_prefetch = 0 : i64, scratch_operands = 0 : i64, tpu.core_type = #tpu.core_type<tc>, window_params = [{transform_indices = @transform_0, window_bounds = array<i64: 2, 8, 32>}, {transform_indices = @transform_1, window_bounds = array<i64: 2, 8, 32>}, {pipeline_mode = #tpu.pipeline_mode<synchronous>, transform_indices = @transform_2, window_bounds = array<i64: 32, 32>}, {pipeline_mode = #tpu.pipeline_mode<synchronous>, transform_indices = @transform_3, window_bounds = array<i64: 1, 32>}, {pipeline_mode = #tpu.pipeline_mode<synchronous>, transform_indices = @transform_4, window_bounds = array<i64: 32, 32>}, {pipeline_mode = #tpu.pipeline_mode<synchronous>, transform_indices = @transform_5, window_bounds = array<i64: 1, 32>}, {pipeline_mode = #tpu.pipeline_mode<synchronous>, transform_indices = @transform_6, window_bounds = array<i64: 32, 32>}, {pipeline_mode = #tpu.pipeline_mode<synchronous>, transform_indices = @transform_7, window_bounds = array<i64: 1, 32>}, {transform_indices = @transform_8, window_bounds = array<i64: 2, 1, 8>}, {transform_indices = @transform_9, window_bounds = array<i64: 2, 1, 1>}, {pipeline_mode = #tpu.pipeline_mode<synchronous>, transform_indices = @transform_10, window_bounds = array<i64: 1, 4, 1, 1>}, {pipeline_mode = #tpu.pipeline_mode<synchronous>, transform_indices = @transform_11, window_bounds = array<i64: 1, 4, 1, 1>}, {transform_indices = @transform_12, window_bounds = array<i64: 2, 8, 32>}]} {
    %c0 = arith.constant 0 : index
    %c0_0 = arith.constant 0 : index
    %c0_1 = arith.constant 0 : index
    %0 = vector.load %arg1[%c0, %c0_0, %c0_1] : memref<2x8x32xf32, #tpu.memory_space<vmem>>, vector<2x8x32xf32>
    %1 = vector.shape_cast %0 : vector<2x8x32xf32> to vector<16x32xf32>
    %2 = arith.truncf %1 : vector<16x32xf32> to vector<16x32xbf16>
    %c0_2 = arith.constant 0 : index
    %c0_3 = arith.constant 0 : index
    %3 = vector.load %arg3[%c0_2, %c0_3] : memref<32x32xf32, #tpu.memory_space<vmem>>, vector<32x32xf32>
    %4 = arith.truncf %3 : vector<32x32xf32> to vector<32x32xbf16>
    %cst = arith.constant dense<0.000000e+00> : vector<16x32xf32>
    %5 = tpu.matmul %2, %4, %cst {dimension_numbers = #tpu.dot_dimension_numbers<[1], [0], [0], [1], [0, 0, 1, 1], [], []>} : vector<16x32xbf16>, vector<32x32xbf16>, vector<16x32xf32> -> vector<16x32xf32>
    %c0_4 = arith.constant 0 : index
    %c0_5 = arith.constant 0 : index
    %6 = vector.load %arg4[%c0_4, %c0_5] : memref<1x32xf32, #tpu.memory_space<vmem>>, vector<1x32xf32>
    %7 = vector.broadcast %6 : vector<1x32xf32> to vector<16x32xf32>
    %8 = arith.addf %5, %7 : vector<16x32xf32>
    %c0_6 = arith.constant 0 : index
    %c0_7 = arith.constant 0 : index
    %9 = vector.load %arg5[%c0_6, %c0_7] : memref<32x32xf32, #tpu.memory_space<vmem>>, vector<32x32xf32>
    %10 = arith.truncf %9 : vector<32x32xf32> to vector<32x32xbf16>
    %cst_8 = arith.constant dense<0.000000e+00> : vector<16x32xf32>
    %11 = tpu.matmul %2, %10, %cst_8 {dimension_numbers = #tpu.dot_dimension_numbers<[1], [0], [0], [1], [0, 0, 1, 1], [], []>} : vector<16x32xbf16>, vector<32x32xbf16>, vector<16x32xf32> -> vector<16x32xf32>
    %c0_9 = arith.constant 0 : index
    %c0_10 = arith.constant 0 : index
    %12 = vector.load %arg6[%c0_9, %c0_10] : memref<1x32xf32, #tpu.memory_space<vmem>>, vector<1x32xf32>
    %13 = vector.broadcast %12 : vector<1x32xf32> to vector<16x32xf32>
    %14 = arith.addf %11, %13 : vector<16x32xf32>
    %c0_11 = arith.constant 0 : index
    %c0_12 = arith.constant 0 : index
    %c0_13 = arith.constant 0 : index
    %15 = vector.load %arg2[%c0_11, %c0_12, %c0_13] : memref<2x8x32xf32, #tpu.memory_space<vmem>>, vector<2x8x32xf32>
    %16 = vector.shape_cast %15 : vector<2x8x32xf32> to vector<16x32xf32>
    %17 = arith.truncf %16 : vector<16x32xf32> to vector<16x32xbf16>
    %c0_14 = arith.constant 0 : index
    %c0_15 = arith.constant 0 : index
    %18 = vector.load %arg7[%c0_14, %c0_15] : memref<32x32xf32, #tpu.memory_space<vmem>>, vector<32x32xf32>
    %19 = arith.truncf %18 : vector<32x32xf32> to vector<32x32xbf16>
    %cst_16 = arith.constant dense<0.000000e+00> : vector<16x32xf32>
    %20 = tpu.matmul %17, %19, %cst_16 {dimension_numbers = #tpu.dot_dimension_numbers<[1], [0], [0], [1], [0, 0, 1, 1], [], []>} : vector<16x32xbf16>, vector<32x32xbf16>, vector<16x32xf32> -> vector<16x32xf32>
    %c0_17 = arith.constant 0 : index
    %c0_18 = arith.constant 0 : index
    %21 = vector.load %arg8[%c0_17, %c0_18] : memref<1x32xf32, #tpu.memory_space<vmem>>, vector<1x32xf32>
    %22 = vector.broadcast %21 : vector<1x32xf32> to vector<16x32xf32>
    %23 = arith.addf %20, %22 : vector<16x32xf32>
    %24 = vector.shape_cast %23 : vector<16x32xf32> to vector<2x8x4x8xf32>
    %25 = tpu.transpose %24, [0, 2, 1, 3] : vector<2x8x4x8xf32> -> vector<2x4x8x8xf32>
    %26 = vector.shape_cast %25 : vector<2x4x8x8xf32> to vector<8x8x8xf32>
    %27 = arith.truncf %26 : vector<8x8x8xf32> to vector<8x8x8xbf16>
    %28 = vector.shape_cast %8 : vector<16x32xf32> to vector<2x8x4x8xf32>
    %29 = tpu.transpose %28, [0, 2, 1, 3] : vector<2x8x4x8xf32> -> vector<2x4x8x8xf32>
    %30 = vector.shape_cast %29 : vector<2x4x8x8xf32> to vector<8x8x8xf32>
    %31 = arith.truncf %30 : vector<8x8x8xf32> to vector<8x8x8xbf16>
    %32 = vector.shape_cast %14 : vector<16x32xf32> to vector<2x8x4x8xf32>
    %33 = tpu.transpose %32, [0, 2, 1, 3] : vector<2x8x4x8xf32> -> vector<2x4x8x8xf32>
    %34 = vector.shape_cast %33 : vector<2x4x8x8xf32> to vector<8x8x8xf32>
    %35 = arith.truncf %34 : vector<8x8x8xf32> to vector<8x8x8xbf16>
    "tpu.trace_start"() <{level = 10 : i32, message = "bqd,bkd->bqk"}> : () -> ()
    %cst_19 = arith.constant dense<0.000000e+00> : vector<8x8x8xf32>
    %36 = tpu.matmul %27, %31, %cst_19 {dimension_numbers = #tpu.dot_dimension_numbers<[2], [2], [1], [1], [0, 0, 0, 1, 1, 1], [0], [0]>} : vector<8x8x8xbf16>, vector<8x8x8xbf16>, vector<8x8x8xf32> -> vector<8x8x8xf32>
    "tpu.trace_stop"() : () -> ()
    %37 = vector.shape_cast %36 : vector<8x8x8xf32> to vector<2x4x8x8xf32>
    %c0_20 = arith.constant 0 : index
    %c0_21 = arith.constant 0 : index
    %c0_22 = arith.constant 0 : index
    %38 = vector.load %arg9[%c0_20, %c0_21, %c0_22] : memref<2x1x8xf32, #tpu.memory_space<vmem>>, vector<2x1x8xf32>
    %c0_23 = arith.constant 0 : index
    %c0_24 = arith.constant 0 : index
    %c0_25 = arith.constant 0 : index
    %39 = vector.load %arg10[%c0_23, %c0_24, %c0_25] : memref<2x1x1xf32, #tpu.memory_space<vmem>>, vector<2x1x1xf32>
    %cst_26 = arith.constant 0.000000e+00 : f32
    %40 = vector.broadcast %cst_26 : f32 to vector<2x1x8xf32>
    %41 = arith.cmpf oeq, %38, %40 : vector<2x1x8xf32>
    %cst_27 = arith.constant -1.000000e+30 : f32
    %42 = vector.broadcast %cst_27 : f32 to vector<2x1x8xf32>
    %cst_28 = arith.constant 0.000000e+00 : f32
    %43 = vector.broadcast %cst_28 : f32 to vector<2x1x8xf32>
    %44 = arith.select %41, %42, %43 : vector<2x1x8xi1>, vector<2x1x8xf32>
    %45 = vector.shape_cast %44 : vector<2x1x8xf32> to vector<2x1x1x8xf32>
    %46 = math.rsqrt %39 : vector<2x1x1xf32>
    %47 = vector.shape_cast %46 : vector<2x1x1xf32> to vector<2x1x1x1xf32>
    %48 = vector.broadcast %47 : vector<2x1x1x1xf32> to vector<2x4x8x8xf32>
    %49 = arith.mulf %37, %48 : vector<2x4x8x8xf32>
    %50 = vector.broadcast %45 : vector<2x1x1x8xf32> to vector<2x4x8x8xf32>
    %51 = arith.addf %49, %50 : vector<2x4x8x8xf32>
    %cst_29 = arith.constant dense<0xFF800000> : vector<2x4x8xf32>
    %52 = vector.multi_reduction <maximumf>, %51, %cst_29 [3] : vector<2x4x8x8xf32> to vector<2x4x8xf32>
    %53 = vector.shape_cast %52 : vector<2x4x8xf32> to vector<2x4x8x1xf32>
    %54 = vector.broadcast %53 : vector<2x4x8x1xf32> to vector<2x4x8x8xf32>
    %55 = arith.subf %51, %54 : vector<2x4x8x8xf32>
    %56 = math.exp %55 : vector<2x4x8x8xf32>
    %cst_30 = arith.constant dense<0.000000e+00> : vector<2x4x8xf32>
    %57 = vector.multi_reduction <add>, %56, %cst_30 [3] : vector<2x4x8x8xf32> to vector<2x4x8xf32>
    %58 = vector.shape_cast %57 : vector<2x4x8xf32> to vector<2x4x8x1xf32>
    %59 = tpu.reciprocal %58 {approx = true} : vector<2x4x8x1xf32> -> vector<2x4x8x1xf32>
    %60 = vector.broadcast %59 : vector<2x4x8x1xf32> to vector<2x4x8x8xf32>
    %61 = arith.mulf %56, %60 : vector<2x4x8x8xf32>
    %62 = vector.shape_cast %61 : vector<2x4x8x8xf32> to vector<8x8x8xf32>
    %63 = arith.truncf %62 : vector<8x8x8xf32> to vector<8x8x8xbf16>
    "tpu.trace_start"() <{level = 10 : i32, message = "bqk,bkd->bqd"}> : () -> ()
    %cst_31 = arith.constant dense<0.000000e+00> : vector<8x8x8xf32>
    %64 = tpu.matmul %63, %35, %cst_31 {dimension_numbers = #tpu.dot_dimension_numbers<[2], [1], [1], [2], [0, 0, 0, 1, 1, 2], [0], [0]>} : vector<8x8x8xbf16>, vector<8x8x8xbf16>, vector<8x8x8xf32> -> vector<8x8x8xf32>
    "tpu.trace_stop"() : () -> ()
    %65 = vector.shape_cast %64 : vector<8x8x8xf32> to vector<2x4x8x8xf32>
    %66 = tpu.reciprocal %39 {approx = true} : vector<2x1x1xf32> -> vector<2x1x1xf32>
    %67 = vector.broadcast %66 : vector<2x1x1xf32> to vector<2x1x8xf32>
    %68 = arith.mulf %38, %67 : vector<2x1x8xf32>
    %69 = vector.shape_cast %68 : vector<2x1x8xf32> to vector<2x1x1x8xf32>
    %70 = vector.broadcast %69 : vector<2x1x1x8xf32> to vector<2x4x8x8xf32>
    %71 = arith.mulf %37, %70 : vector<2x4x8x8xf32>
    %cst_32 = arith.constant dense<0.000000e+00> : vector<2x4x8xf32>
    %72 = vector.multi_reduction <add>, %71, %cst_32 [3] : vector<2x4x8x8xf32> to vector<2x4x8xf32>
    %73 = vector.shape_cast %72 : vector<2x4x8xf32> to vector<2x4x8x1xf32>
    %c0_33 = arith.constant 0 : index
    %c0_34 = arith.constant 0 : index
    %c0_35 = arith.constant 0 : index
    %c0_36 = arith.constant 0 : index
    %74 = vector.load %arg11[%c0_33, %c0_34, %c0_35, %c0_36] : memref<1x4x1x1xf32, #tpu.memory_space<vmem>>, vector<1x4x1x1xf32>
    %75 = vector.broadcast %74 : vector<1x4x1x1xf32> to vector<2x4x8x1xf32>
    %76 = arith.mulf %73, %75 : vector<2x4x8x1xf32>
    %c0_37 = arith.constant 0 : index
    %c0_38 = arith.constant 0 : index
    %c0_39 = arith.constant 0 : index
    %c0_40 = arith.constant 0 : index
    %77 = vector.load %arg12[%c0_37, %c0_38, %c0_39, %c0_40] : memref<1x4x1x1xf32, #tpu.memory_space<vmem>>, vector<1x4x1x1xf32>
    %78 = vector.broadcast %77 : vector<1x4x1x1xf32> to vector<2x4x8x1xf32>
    %79 = arith.addf %76, %78 : vector<2x4x8x1xf32>
    %80 = arith.negf %79 : vector<2x4x8x1xf32>
    %81 = math.exp %80 : vector<2x4x8x1xf32>
    %cst_41 = arith.constant 1.000000e+00 : f32
    %82 = vector.broadcast %cst_41 : f32 to vector<2x4x8x1xf32>
    %83 = arith.addf %82, %81 : vector<2x4x8x1xf32>
    %84 = arith.divf %82, %83 : vector<2x4x8x1xf32>
    %85 = vector.broadcast %84 : vector<2x4x8x1xf32> to vector<2x4x8x8xf32>
    %86 = arith.mulf %65, %85 : vector<2x4x8x8xf32>
    %87 = tpu.transpose %86, [0, 2, 1, 3] : vector<2x4x8x8xf32> -> vector<2x8x4x8xf32>
    %88 = vector.shape_cast %87 : vector<2x8x4x8xf32> to vector<2x8x32xf32>
    %c0_42 = arith.constant 0 : index
    %c0_43 = arith.constant 0 : index
    %c0_44 = arith.constant 0 : index
    %89 = vector.load %arg13[%c0_42, %c0_43, %c0_44] : memref<2x8x32xf32, #tpu.memory_space<vmem>>, vector<2x8x32xf32>
    tpu.vector_store %arg13[%c0_42, %c0_43, %c0_44], %88 {strides = array<i32>} : memref<2x8x32xf32, #tpu.memory_space<vmem>>, vector<2x8x32xf32>,
    return
  }
  func.func @transform_0(%arg0: i32) -> (i32, i32, i32) {
    %c0_i32 = arith.constant 0 : i32
    %c0_i32_0 = arith.constant 0 : i32
    %c0_i32_1 = arith.constant 0 : i32
    return %arg0, %c0_i32, %c0_i32_0 : i32, i32, i32
  }
  func.func @transform_1(%arg0: i32) -> (i32, i32, i32) {
    %c0_i32 = arith.constant 0 : i32
    %c0_i32_0 = arith.constant 0 : i32
    %c0_i32_1 = arith.constant 0 : i32
    return %arg0, %c0_i32, %c0_i32_0 : i32, i32, i32
  }
  func.func @transform_2(%arg0: i32) -> (i32, i32) {
    %c0_i32 = arith.constant 0 : i32
    %c0_i32_0 = arith.constant 0 : i32
    %c0_i32_1 = arith.constant 0 : i32
    return %c0_i32, %c0_i32_0 : i32, i32
  }
  func.func @transform_3(%arg0: i32) -> (i32, i32) {
    %c0_i32 = arith.constant 0 : i32
    %c0_i32_0 = arith.constant 0 : i32
    %c0_i32_1 = arith.constant 0 : i32
    return %c0_i32, %c0_i32_0 : i32, i32
  }
  func.func @transform_4(%arg0: i32) -> (i32, i32) {
    %c0_i32 = arith.constant 0 : i32
    %c0_i32_0 = arith.constant 0 : i32
    %c0_i32_1 = arith.constant 0 : i32
    return %c0_i32, %c0_i32_0 : i32, i32
  }
  func.func @transform_5(%arg0: i32) -> (i32, i32) {
    %c0_i32 = arith.constant 0 : i32
    %c0_i32_0 = arith.constant 0 : i32
    %c0_i32_1 = arith.constant 0 : i32
    return %c0_i32, %c0_i32_0 : i32, i32
  }
  func.func @transform_6(%arg0: i32) -> (i32, i32) {
    %c0_i32 = arith.constant 0 : i32
    %c0_i32_0 = arith.constant 0 : i32
    %c0_i32_1 = arith.constant 0 : i32
    return %c0_i32, %c0_i32_0 : i32, i32
  }
  func.func @transform_7(%arg0: i32) -> (i32, i32) {
    %c0_i32 = arith.constant 0 : i32
    %c0_i32_0 = arith.constant 0 : i32
    %c0_i32_1 = arith.constant 0 : i32
    return %c0_i32, %c0_i32_0 : i32, i32
  }
  func.func @transform_8(%arg0: i32) -> (i32, i32, i32) {
    %c0_i32 = arith.constant 0 : i32
    %c0_i32_0 = arith.constant 0 : i32
    %c0_i32_1 = arith.constant 0 : i32
    return %arg0, %c0_i32, %c0_i32_0 : i32, i32, i32
  }
  func.func @transform_9(%arg0: i32) -> (i32, i32, i32) {
    %c0_i32 = arith.constant 0 : i32
    %c0_i32_0 = arith.constant 0 : i32
    %c0_i32_1 = arith.constant 0 : i32
    return %arg0, %c0_i32, %c0_i32_0 : i32, i32, i32
  }
  func.func @transform_10(%arg0: i32) -> (i32, i32, i32, i32) {
    %c0_i32 = arith.constant 0 : i32
    %c0_i32_0 = arith.constant 0 : i32
    %c0_i32_1 = arith.constant 0 : i32
    %c0_i32_2 = arith.constant 0 : i32
    %c0_i32_3 = arith.constant 0 : i32
    return %c0_i32, %c0_i32_0, %c0_i32_1, %c0_i32_2 : i32, i32, i32, i32
  }
  func.func @transform_11(%arg0: i32) -> (i32, i32, i32, i32) {
    %c0_i32 = arith.constant 0 : i32
    %c0_i32_0 = arith.constant 0 : i32
    %c0_i32_1 = arith.constant 0 : i32
    %c0_i32_2 = arith.constant 0 : i32
    %c0_i32_3 = arith.constant 0 : i32
    return %c0_i32, %c0_i32_0, %c0_i32_1, %c0_i32_2 : i32, i32, i32, i32
  }
  func.func @transform_12(%arg0: i32) -> (i32, i32, i32) {
    %c0_i32 = arith.constant 0 : i32
    %c0_i32_0 = arith.constant 0 : i32
    %c0_i32_1 = arith.constant 0 : i32
    return %arg0, %c0_i32, %c0_i32_0 : i32, i32, i32
  }
}

module attributes {stable_mosaic.version = 11 : i64} {
  func.func @_mhsa_kernel(%arg0: i32, %arg1: memref<2x8x32xf32, #tpu.memory_space<vmem>>, %arg2: memref<2x8x32xf32, #tpu.memory_space<vmem>>, %arg3: memref<32x32xf32, #tpu.memory_space<vmem>>, %arg4: memref<1x32xf32, #tpu.memory_space<vmem>>, %arg5: memref<32x32xf32, #tpu.memory_space<vmem>>, %arg6: memref<1x32xf32, #tpu.memory_space<vmem>>, %arg7: memref<32x32xf32, #tpu.memory_space<vmem>>, %arg8: memref<1x32xf32, #tpu.memory_space<vmem>>, %arg9: memref<2x1x8xf32, #tpu.memory_space<vmem>>, %arg10: memref<2x1x1xf32, #tpu.memory_space<vmem>>, %arg11: memref<1x4x1x1xf32, #tpu.memory_space<vmem>>, %arg12: memref<1x4x1x1xf32, #tpu.memory_space<vmem>>, %arg13: memref<2x8x32xf32, #tpu.memory_space<vmem>>) attributes {dimension_semantics = [#tpu.dimension_semantics<parallel>], iteration_bounds = array<i64: 1>, scalar_prefetch = 0 : i64, scratch_operands = 0 : i64, tpu.core_type = #tpu.core_type<tc>, window_params = [{transform_indices = @transform_0, window_bounds = array<i64: 2, 8, 32>}, {transform_indices = @transform_1, window_bounds = array<i64: 2, 8, 32>}, {pipeline_mode = #tpu.pipeline_mode<synchronous>, transform_indices = @transform_2, window_bounds = array<i64: 32, 32>}, {pipeline_mode = #tpu.pipeline_mode<synchronous>, transform_indices = @transform_3, window_bounds = array<i64: 1, 32>}, {pipeline_mode = #tpu.pipeline_mode<synchronous>, transform_indices = @transform_4, window_bounds = array<i64: 32, 32>}, {pipeline_mode = #tpu.pipeline_mode<synchronous>, transform_indices = @transform_5, window_bounds = array<i64: 1, 32>}, {pipeline_mode = #tpu.pipeline_mode<synchronous>, transform_indices = @transform_6, window_bounds = array<i64: 32, 32>}, {pipeline_mode = #tpu.pipeline_mode<synchronous>, transform_indices = @transform_7, window_bounds = array<i64: 1, 32>}, {transform_indices = @transform_8, window_bounds = array<i64: 2, 1, 8>}, {transform_indices = @transform_9, window_bounds = array<i64: 2, 1, 1>}, {pipeline_mode = #tpu.pipeline_mode<synchronous>, transform_indices = @transform_10, window_bounds = array<i64: 1, 4, 1, 1>}, {pipeline_mode = #tpu.pipeline_mode<synchronous>, transform_indices = @transform_11, window_bounds = array<i64: 1, 4, 1, 1>}, {transform_indices = @transform_12, window_bounds = array<i64: 2, 8, 32>}]} {
    %c0 = arith.constant 0 : index
    %c0_0 = arith.constant 0 : index
    %c0_1 = arith.constant 0 : index
    %0 = vector.load %arg1[%c0, %c0_0, %c0_1] : memref<2x8x32xf32, #tpu.memory_space<vmem>>, vector<2x8x32xf32>
    %1 = vector.shape_cast %0 : vector<2x8x32xf32> to vector<16x32xf32>
    %2 = arith.truncf %1 : vector<16x32xf32> to vector<16x32xbf16>
    %c0_2 = arith.constant 0 : index
    %c0_3 = arith.constant 0 : index
    %3 = vector.load %arg3[%c0_2, %c0_3] : memref<32x32xf32, #tpu.memory_space<vmem>>, vector<32x32xf32>
    %4 = arith.truncf %3 : vector<32x32xf32> to vector<32x32xbf16>
    %cst = arith.constant dense<0.000000e+00> : vector<16x32xf32>
    %5 = tpu.matmul %2, %4, %cst {dimension_numbers = #tpu.dot_dimension_numbers<[1], [0], [0], [1], [0, 0, 1, 1], [], []>} : vector<16x32xbf16>, vector<32x32xbf16>, vector<16x32xf32> -> vector<16x32xf32>
    %c0_4 = arith.constant 0 : index
    %c0_5 = arith.constant 0 : index
    %6 = vector.load %arg4[%c0_4, %c0_5] : memref<1x32xf32, #tpu.memory_space<vmem>>, vector<1x32xf32>
    %7 = vector.broadcast %6 : vector<1x32xf32> to vector<16x32xf32>
    %8 = arith.addf %5, %7 : vector<16x32xf32>
    %c0_6 = arith.constant 0 : index
    %c0_7 = arith.constant 0 : index
    %9 = vector.load %arg5[%c0_6, %c0_7] : memref<32x32xf32, #tpu.memory_space<vmem>>, vector<32x32xf32>
    %10 = arith.truncf %9 : vector<32x32xf32> to vector<32x32xbf16>
    %cst_8 = arith.constant dense<0.000000e+00> : vector<16x32xf32>
    %11 = tpu.matmul %2, %10, %cst_8 {dimension_numbers = #tpu.dot_dimension_numbers<[1], [0], [0], [1], [0, 0, 1, 1], [], []>} : vector<16x32xbf16>, vector<32x32xbf16>, vector<16x32xf32> -> vector<16x32xf32>
    %c0_9 = arith.constant 0 : index
    %c0_10 = arith.constant 0 : index
    %12 = vector.load %arg6[%c0_9, %c0_10] : memref<1x32xf32, #tpu.memory_space<vmem>>, vector<1x32xf32>
    %13 = vector.broadcast %12 : vector<1x32xf32> to vector<16x32xf32>
    %14 = arith.addf %11, %13 : vector<16x32xf32>
    %c0_11 = arith.constant 0 : index
    %c0_12 = arith.constant 0 : index
    %c0_13 = arith.constant 0 : index
    %15 = vector.load %arg2[%c0_11, %c0_12, %c0_13] : memref<2x8x32xf32, #tpu.memory_space<vmem>>, vector<2x8x32xf32>
    %16 = vector.shape_cast %15 : vector<2x8x32xf32> to vector<16x32xf32>
    %17 = arith.truncf %16 : vector<16x32xf32> to vector<16x32xbf16>
    %c0_14 = arith.constant 0 : index
    %c0_15 = arith.constant 0 : index
    %18 = vector.load %arg7[%c0_14, %c0_15] : memref<32x32xf32, #tpu.memory_space<vmem>>, vector<32x32xf32>
    %19 = arith.truncf %18 : vector<32x32xf32> to vector<32x32xbf16>
    %cst_16 = arith.constant dense<0.000000e+00> : vector<16x32xf32>
    %20 = tpu.matmul %17, %19, %cst_16 {dimension_numbers = #tpu.dot_dimension_numbers<[1], [0], [0], [1], [0, 0, 1, 1], [], []>} : vector<16x32xbf16>, vector<32x32xbf16>, vector<16x32xf32> -> vector<16x32xf32>
    %c0_17 = arith.constant 0 : index
    %c0_18 = arith.constant 0 : index
    %21 = vector.load %arg8[%c0_17, %c0_18] : memref<1x32xf32, #tpu.memory_space<vmem>>, vector<1x32xf32>
    %22 = vector.broadcast %21 : vector<1x32xf32> to vector<16x32xf32>
    %23 = arith.addf %20, %22 : vector<16x32xf32>
    %24 = vector.shape_cast %23 : vector<16x32xf32> to vector<2x8x4x8xf32>
    %25 = tpu.transpose %24, [0, 2, 1, 3] : vector<2x8x4x8xf32> -> vector<2x4x8x8xf32>
    %26 = vector.shape_cast %25 : vector<2x4x8x8xf32> to vector<8x8x8xf32>
    %27 = arith.truncf %26 : vector<8x8x8xf32> to vector<8x8x8xbf16>
    %28 = vector.shape_cast %8 : vector<16x32xf32> to vector<2x8x4x8xf32>
    %29 = tpu.transpose %28, [0, 2, 1, 3] : vector<2x8x4x8xf32> -> vector<2x4x8x8xf32>
    %30 = vector.shape_cast %29 : vector<2x4x8x8xf32> to vector<8x8x8xf32>
    %31 = arith.truncf %30 : vector<8x8x8xf32> to vector<8x8x8xbf16>
    %32 = vector.shape_cast %14 : vector<16x32xf32> to vector<2x8x4x8xf32>
    %33 = tpu.transpose %32, [0, 2, 1, 3] : vector<2x8x4x8xf32> -> vector<2x4x8x8xf32>
    %34 = vector.shape_cast %33 : vector<2x4x8x8xf32> to vector<8x8x8xf32>
    %35 = arith.truncf %34 : vector<8x8x8xf32> to vector<8x8x8xbf16>
    "tpu.trace_start"() <{level = 10 : i32, message = "bqd,bkd->bqk"}> : () -> ()
    %cst_19 = arith.constant dense<0.000000e+00> : vector<8x8x8xf32>
    %36 = tpu.matmul %27, %31, %cst_19 {dimension_numbers = #tpu.dot_dimension_numbers<[2], [2], [1], [1], [0, 0, 0, 1, 1, 1], [0], [0]>} : vector<8x8x8xbf16>, vector<8x8x8xbf16>, vector<8x8x8xf32> -> vector<8x8x8xf32>
    "tpu.trace_stop"() : () -> ()
    %37 = vector.shape_cast %36 : vector<8x8x8xf32> to vector<2x4x8x8xf32>
    %c0_20 = arith.constant 0 : index
    %c0_21 = arith.constant 0 : index
    %c0_22 = arith.constant 0 : index
    %38 = vector.load %arg9[%c0_20, %c0_21, %c0_22] : memref<2x1x8xf32, #tpu.memory_space<vmem>>, vector<2x1x8xf32>
    %c0_23 = arith.constant 0 : index
    %c0_24 = arith.constant 0 : index
    %c0_25 = arith.constant 0 : index
    %39 = vector.load %arg10[%c0_23, %c0_24, %c0_25] : memref<2x1x1xf32, #tpu.memory_space<vmem>>, vector<2x1x1xf32>
    %cst_26 = arith.constant 0.000000e+00 : f32
    %40 = vector.broadcast %cst_26 : f32 to vector<2x1x8xf32>
    %41 = arith.cmpf oeq, %38, %40 : vector<2x1x8xf32>
    %cst_27 = arith.constant -1.000000e+30 : f32
    %42 = vector.broadcast %cst_27 : f32 to vector<2x1x8xf32>
    %cst_28 = arith.constant 0.000000e+00 : f32
    %43 = vector.broadcast %cst_28 : f32 to vector<2x1x8xf32>
    %44 = arith.select %41, %42, %43 : vector<2x1x8xi1>, vector<2x1x8xf32>
    %45 = vector.shape_cast %44 : vector<2x1x8xf32> to vector<2x1x1x8xf32>
    %46 = math.rsqrt %39 : vector<2x1x1xf32>
    %47 = vector.shape_cast %46 : vector<2x1x1xf32> to vector<2x1x1x1xf32>
    %48 = vector.broadcast %47 : vector<2x1x1x1xf32> to vector<2x4x8x8xf32>
    %49 = arith.mulf %37, %48 : vector<2x4x8x8xf32>
    %50 = vector.broadcast %45 : vector<2x1x1x8xf32> to vector<2x4x8x8xf32>
    %51 = arith.addf %49, %50 : vector<2x4x8x8xf32>
    %cst_29 = arith.constant dense<0xFF800000> : vector<2x4x8xf32>
    %52 = vector.multi_reduction <maximumf>, %51, %cst_29 [3] : vector<2x4x8x8xf32> to vector<2x4x8xf32>
    %53 = vector.shape_cast %52 : vector<2x4x8xf32> to vector<2x4x8x1xf32>
    %54 = vector.broadcast %53 : vector<2x4x8x1xf32> to vector<2x4x8x8xf32>
    %55 = arith.subf %51, %54 : vector<2x4x8x8xf32>
    %56 = math.exp %55 : vector<2x4x8x8xf32>
    %cst_30 = arith.constant dense<0.000000e+00> : vector<2x4x8xf32>
    %57 = vector.multi_reduction <add>, %56, %cst_30 [3] : vector<2x4x8x8xf32> to vector<2x4x8xf32>
    %58 = vector.shape_cast %57 : vector<2x4x8xf32> to vector<2x4x8x1xf32>
    %59 = tpu.reciprocal %58 {approx = true} : vector<2x4x8x1xf32> -> vector<2x4x8x1xf32>
    %60 = vector.broadcast %59 : vector<2x4x8x1xf32> to vector<2x4x8x8xf32>
    %61 = arith.mulf %56, %60 : vector<2x4x8x8xf32>
    %62 = vector.shape_cast %61 : vector<2x4x8x8xf32> to vector<8x8x8xf32>
    %63 = arith.truncf %62 : vector<8x8x8xf32> to vector<8x8x8xbf16>
    "tpu.trace_start"() <{level = 10 : i32, message = "bqk,bkd->bqd"}> : () -> ()
    %cst_31 = arith.constant dense<0.000000e+00> : vector<8x8x8xf32>
    %64 = tpu.matmul %63, %35, %cst_31 {dimension_numbers = #tpu.dot_dimension_numbers<[2], [1], [1], [2], [0, 0, 0, 1, 1, 2], [0], [0]>} : vector<8x8x8xbf16>, vector<8x8x8xbf16>, vector<8x8x8xf32> -> vector<8x8x8xf32>
    "tpu.trace_stop"() : () -> ()
    %65 = vector.shape_cast %64 : vector<8x8x8xf32> to vector<2x4x8x8xf32>
    %66 = tpu.reciprocal %39 {approx = true} : vector<2x1x1xf32> -> vector<2x1x1xf32>
    %67 = vector.broadcast %66 : vector<2x1x1xf32> to vector<2x1x8xf32>
    %68 = arith.mulf %38, %67 : vector<2x1x8xf32>
    %69 = vector.shape_cast %68 : vector<2x1x8xf32> to vector<2x1x1x8xf32>
    %70 = vector.broadcast %69 : vector<2x1x1x8xf32> to vector<2x4x8x8xf32>
    %71 = arith.mulf %37, %70 : vector<2x4x8x8xf32>
    %cst_32 = arith.constant dense<0.000000e+00> : vector<2x4x8xf32>
    %72 = vector.multi_reduction <add>, %71, %cst_32 [3] : vector<2x4x8x8xf32> to vector<2x4x8xf32>
    %73 = vector.shape_cast %72 : vector<2x4x8xf32> to vector<2x4x8x1xf32>
    %c0_33 = arith.constant 0 : index
    %c0_34 = arith.constant 0 : index
    %c0_35 = arith.constant 0 : index
    %c0_36 = arith.constant 0 : index
    %74 = vector.load %arg11[%c0_33, %c0_34, %c0_35, %c0_36] : memref<1x4x1x1xf32, #tpu.memory_space<vmem>>, vector<1x4x1x1xf32>
    %75 = vector.broadcast %74 : vector<1x4x1x1xf32> to vector<2x4x8x1xf32>
    %76 = arith.mulf %73, %75 : vector<2x4x8x1xf32>
    %c0_37 = arith.constant 0 : index
    %c0_38 = arith.constant 0 : index
    %c0_39 = arith.constant 0 : index
    %c0_40 = arith.constant 0 : index
    %77 = vector.load %arg12[%c0_37, %c0_38, %c0_39, %c0_40] : memref<1x4x1x1xf32, #tpu.memory_space<vmem>>, vector<1x4x1x1xf32>
    %78 = vector.broadcast %77 : vector<1x4x1x1xf32> to vector<2x4x8x1xf32>
    %79 = arith.addf %76, %78 : vector<2x4x8x1xf32>
    %80 = arith.negf %79 : vector<2x4x8x1xf32>
    %81 = math.exp %80 : vector<2x4x8x1xf32>
    %cst_41 = arith.constant 1.000000e+00 : f32
    %82 = vector.broadcast %cst_41 : f32 to vector<2x4x8x1xf32>
    %83 = arith.addf %82, %81 : vector<2x4x8x1xf32>
    %84 = arith.divf %82, %83 : vector<2x4x8x1xf32>
    %85 = vector.broadcast %84 : vector<2x4x8x1xf32> to vector<2x4x8x8xf32>
    %86 = arith.mulf %65, %85 : vector<2x4x8x8xf32>
    %87 = tpu.transpose %86, [0, 2, 1, 3] : vector<2x4x8x8xf32> -> vector<2x8x4x8xf32>
    %88 = vector.shape_cast %87 : vector<2x8x4x8xf32> to vector<2x8x32xf32>
    %c0_42 = arith.constant 0 : index
    %c0_43 = arith.constant 0 : index
    %c0_44 = arith.constant 0 : index
    %89 = vector.load %arg13[%c0_42, %c0_43, %c0_44] : memref<2x8x32xf32, #tpu.memory_space<vmem>>, vector<2x8x32xf32>
    tpu.vector_store %arg13[%c0_42, %c0_43, %c0_44], %88 {strides = array<i32>} : memref<2x8x32xf32, #tpu.memory_space<vmem>>, vector<2x8x32xf32>,
    return
  }
  func.func @transform_0(%arg0: i32) -> (i32, i32, i32) {
    %c0_i32 = arith.constant 0 : i32
    %c0_i32_0 = arith.constant 0 : i32
    %c0_i32_1 = arith.constant 0 : i32
    return %arg0, %c0_i32, %c0_i32_0 : i32, i32, i32
  }
  func.func @transform_1(%arg0: i32) -> (i32, i32, i32) {
    %c0_i32 = arith.constant 0 : i32
    %c0_i32_0 = arith.constant 0 : i32
    %c0_i32_1 = arith.constant 0 : i32
    return %arg0, %c0_i32, %c0_i32_0 : i32, i32, i32
  }
  func.func @transform_2(%arg0: i32) -> (i32, i32) {
    %c0_i32 = arith.constant 0 : i32
    %c0_i32_0 = arith.constant 0 : i32
    %c0_i32_1 = arith.constant 0 : i32
    return %c0_i32, %c0_i32_0 : i32, i32
  }
  func.func @transform_3(%arg0: i32) -> (i32, i32) {
    %c0_i32 = arith.constant 0 : i32
    %c0_i32_0 = arith.constant 0 : i32
    %c0_i32_1 = arith.constant 0 : i32
    return %c0_i32, %c0_i32_0 : i32, i32
  }
  func.func @transform_4(%arg0: i32) -> (i32, i32) {
    %c0_i32 = arith.constant 0 : i32
    %c0_i32_0 = arith.constant 0 : i32
    %c0_i32_1 = arith.constant 0 : i32
    return %c0_i32, %c0_i32_0 : i32, i32
  }
  func.func @transform_5(%arg0: i32) -> (i32, i32) {
    %c0_i32 = arith.constant 0 : i32
    %c0_i32_0 = arith.constant 0 : i32
    %c0_i32_1 = arith.constant 0 : i32
    return %c0_i32, %c0_i32_0 : i32, i32
  }
  func.func @transform_6(%arg0: i32) -> (i32, i32) {
    %c0_i32 = arith.constant 0 : i32
    %c0_i32_0 = arith.constant 0 : i32
    %c0_i32_1 = arith.constant 0 : i32
    return %c0_i32, %c0_i32_0 : i32, i32
  }
  func.func @transform_7(%arg0: i32) -> (i32, i32) {
    %c0_i32 = arith.constant 0 : i32
    %c0_i32_0 = arith.constant 0 : i32
    %c0_i32_1 = arith.constant 0 : i32
    return %c0_i32, %c0_i32_0 : i32, i32
  }
  func.func @transform_8(%arg0: i32) -> (i32, i32, i32) {
    %c0_i32 = arith.constant 0 : i32
    %c0_i32_0 = arith.constant 0 : i32
    %c0_i32_1 = arith.constant 0 : i32
    return %arg0, %c0_i32, %c0_i32_0 : i32, i32, i32
  }
  func.func @transform_9(%arg0: i32) -> (i32, i32, i32) {
    %c0_i32 = arith.constant 0 : i32
    %c0_i32_0 = arith.constant 0 : i32
    %c0_i32_1 = arith.constant 0 : i32
    return %arg0, %c0_i32, %c0_i32_0 : i32, i32, i32
  }
  func.func @transform_10(%arg0: i32) -> (i32, i32, i32, i32) {
    %c0_i32 = arith.constant 0 : i32
    %c0_i32_0 = arith.constant 0 : i32
    %c0_i32_1 = arith.constant 0 : i32
    %c0_i32_2 = arith.constant 0 : i32
    %c0_i32_3 = arith.constant 0 : i32
    return %c0_i32, %c0_i32_0, %c0_i32_1, %c0_i32_2 : i32, i32, i32, i32
  }
  func.func @transform_11(%arg0: i32) -> (i32, i32, i32, i32) {
    %c0_i32 = arith.constant 0 : i32
    %c0_i32_0 = arith.constant 0 : i32
    %c0_i32_1 = arith.constant 0 : i32
    %c0_i32_2 = arith.constant 0 : i32
    %c0_i32_3 = arith.constant 0 : i32
    return %c0_i32, %c0_i32_0, %c0_i32_1, %c0_i32_2 : i32, i32, i32, i32
  }
  func.func @transform_12(%arg0: i32) -> (i32, i32, i32) {
    %c0_i32 = arith.constant 0 : i32
    %c0_i32_0 = arith.constant 0 : i32
    %c0_i32_1 = arith.constant 0 : i32
    return %arg0, %c0_i32, %c0_i32_0 : i32, i32, i32
  }
}

</mosaic_0001>

<bundles_post_ra>
// kernel: tpu_custom_call.1
= control target key start
LH: loop header
LB: loop body
LE: loop exit
PB: predicated region body
PF: predicated region fallthrough
CT: control target
= control target key end

     0   :  { %17 = vsyncpa [#allocation3], 0  ;;  %s3133_s0 = inlined_call_operand.hbm [shape: f32[2,8,32], index: 0, kind: input, shape index: {}]   ;;  %s3134_s1 = inlined_call_operand.hbm [shape: f32[2,8,32], index: 1, kind: input, shape index: {}]   ;;  %s3135_s2 = inlined_call_operand.hbm [shape: f32[32,32], index: 2, kind: input, shape index: {}]   ;;  %s3136_s3 = inlined_call_operand.vmem [shape: f32[1,32], index: 3, kind: input, shape index: {}]   ;;  %s3137_s4 = inlined_call_operand.hbm [shape: f32[32,32], index: 4, kind: input, shape index: {}]   ;;  %s3138_s5 = inlined_call_operand.vmem [shape: f32[1,32], index: 5, kind: input, shape index: {}]   ;;  %s3139_s6 = inlined_call_operand.hbm [shape: f32[32,32], index: 6, kind: input, shape index: {}]   ;;  %s3140_s7 = inlined_call_operand.vmem [shape: f32[1,32], index: 7, kind: input, shape index: {}]   ;;  %s3141_s8 = inlined_call_operand.vmem [shape: f32[2,1,8], index: 8, kind: input, shape index: {}]   ;;  %s3142_s9 = inlined_call_operand.vmem [shape: f32[2,1,1], index: 9, kind: input, shape index: {}]   ;;  %s3143_s10 = inlined_call_operand.vmem [shape: f32[1,4,1,1], index: 10, kind: input, shape index: {}]   ;;  %s3144_s11 = inlined_call_operand.vmem [shape: f32[1,4,1,1], index: 11, kind: input, shape index: {}]   ;;  %s3145_s12 = inlined_call_operand.hbm [shape: f32[2,8,32], index: 12, kind: output, shape index: {}]  }
   0x1   :  { %18 = vsyncpa [#allocation6], 0 }
   0x2   :  { %19 = vsyncpa [#allocation9], 0 }
   0x3   :  { %20 = vsyncpa [#allocation4], 0  ;;  %s38_s23 = sshll.u32 %s3134_s1, 4  ;;  %s2294_s24 = smov [#allocation5]   ;;  %s39_s23 = int_to_ptr.hbm [resolvable:$true] %s38_s23 }
   0x4   :  { %s40_s25 = sshll.u32 %s2294_s24, 4  ;;  %s66_s28 = sshll.u32 %s3137_s4, 4  ;;  %s41_s25 = int_to_ptr.vmem [resolvable:$true] %s40_s25  ;;  %s67_s28 = int_to_ptr.hbm [resolvable:$true] %s66_s28 }
   0x5   :  { %s2295_s29 = smov 128   ;;  %s2296_s30 = smov 8  }
   0x6   :  { %46 = dma.hbm_to_vmem [thread:$0]  %s39_s23, 256, %s41_s25, [#allocation6], %s2295_s29, %s2295_s29, %s2296_s30  }
   0x7   :  { %s2297_s13 = smov [#allocation8]   ;;  %s25_s1 = sshll.u32 %s3133_s0, 4  ;;  %s26_s1 = int_to_ptr.hbm [resolvable:$true] %s25_s1 }
   0x8   :  { %s68_s14 = sshll.u32 %s2297_s13, 4  ;;  %s51_s18 = sshll.u32 %s3135_s2, 4  ;;  %s69_s14 = int_to_ptr.vmem [resolvable:$true] %s68_s14  ;;  %s52_s18 = int_to_ptr.hbm [resolvable:$true] %s51_s18 }
   0x9   :  { %74 = dma.hbm_to_vmem [thread:$0]  %s67_s28, 512, %s69_s14, [#allocation9], %s2295_s29, %s2295_s29, %s2296_s30  }
   0xa   :  { %s2298_s19 = smov [#allocation2]   ;;  %s2299_s21 = smov [#allocation7]  }
   0xb   :  { %s27_s20 = sshll.u32 %s2298_s19, 4  ;;  %s53_s0 = sshll.u32 %s2299_s21, 4  ;;  %s28_s20 = int_to_ptr.vmem [resolvable:$true] %s27_s20  ;;  %s54_s0 = int_to_ptr.vmem [resolvable:$true] %s53_s0 }
   0xc   :  { %33 = dma.hbm_to_vmem [thread:$0]  %s26_s1, 256, %s28_s20, [#allocation3], %s2295_s29, %s2295_s29, %s2296_s30  }
   0xd   :  { %s81_s24 = sshll.u32 %s3139_s6, 4  ;;  %s2300_s2 = smov [#allocation10]   ;;  %s82_s24 = int_to_ptr.hbm [resolvable:$true] %s81_s24 }
   0xe   :  { %59 = dma.hbm_to_vmem [thread:$0]  %s52_s18, 512, %s54_s0, [#allocation6], %s2295_s29, %s2295_s29, %s2296_s30  }
   0xf   :  { %s83_s25 = sshll.u32 %s2300_s2, 4  ;;  %s84_s25 = int_to_ptr.vmem [resolvable:$true] %s83_s25 }
  0x10   :  { %89 = dma.hbm_to_vmem [thread:$0]  %s82_s24, 512, %s84_s25, [#allocation9], %s2295_s29, %s2295_s29, %s2296_s30  }
  0x11   :  { %2286 = dma.done.wait [#allocation3], 256  }
  0x12   :  { %2287 = vsyncadd [#allocation3], 4294967040 }
  0x13   :  { %2288 = dma.done.wait [#allocation6], 768  }
  0x14   :  { %2289 = vsyncadd [#allocation6], 4294966528 }
  0x15   :  { %2290 = dma.done.wait [#allocation9], 1024  }
  0x16   :  { %2291 = vsyncadd [#allocation9], 4294966272  ;;  %v126_v0 = vld [vmem:[#allocation7 + $0x10] sm:$0xff]  ;;  %v127_v1 = vld [vmem:[#allocation7 + $0x18] sm:$0xff]  ;;  %vm134_vm0 = vcmask 261120   ;;  %s2301_s27 = smov 104  }
  0x17   :  { %v181_v2 = vld [vmem:[#allocation10 + $0x10] sm:$0xff]  ;;  %v129_v3 = vpack.c.bf16 %v127_v1, %v126_v0  ;;  %v182_v4 = vld [vmem:[#allocation10 + $0x18] sm:$0xff]  ;;  %v124_v5 = vld [vmem:[#allocation7] sm:$0xff]  ;;  %s2302_s14 = smov 112   ;;  %v2304_v35 = vmov 1983009808  }
  0x18   :  { %v125_v6 = vld [vmem:[#allocation7 + $0x8] sm:$0xff]  ;;  %v184_v7 = vpack.c.bf16 %v182_v4, %v181_v2  ;;  %v179_v8 = vld [vmem:[#allocation10] sm:$0xff]  ;;  %v176_v13 = vld [vmem:[#allocation5] sm:$0xff]  ;;  %v232_v36 = vunpack.c.l.s4 %v2304_v35  ;;  %vm227_vm1 = vcmask 1047556   ;;  %v2305_v45 = vmov 1934713408  }
  0x19   :  { %v180_v9 = vld [vmem:[#allocation10 + $0x8] sm:$0xff]  ;;  %144 = vmatpush.bf16.msra.mxu0 %v129_v3  ;;  %v128_v10 = vpack.c.bf16 %v125_v6, %v124_v5  ;;  %v121_v11 = vld [vmem:[#allocation2] sm:$0xff]  ;;  %v177_v15 = vld [vmem:[#allocation5 + $0x8] sm:$0xff]  ;;  %v256_v46 = vunpack.c.l.s4 %v2305_v45  ;;  %vm951_vm2 = vcmask 64512   ;;  %vm1265_vm11 = vcmask 1043456  }
  0x1a   :  { %v122_v12 = vld [vmem:[#allocation2 + $0x8] sm:$0xff]  ;;  %198 = vmatpush.bf16.msra.mxu2 %v184_v7  ;;  %v183_v14 = vpack.c.bf16 %v180_v9, %v179_v8  ;;  %v178_v17 = vpack.c.bf16 %v177_v15, %v176_v13  ;;  %v2059_v18 = vld [vmem:[%s3136_s3] ss:$0 sm:$0xff]  ;;  %s2303_s3 = smov 120   ;;  %v154_v30 = vld [vmem:[#allocation8 + $0x10] sm:$0xff]  ;;  %v2442_v41 = vunpack.c.0.s8 %v232_v36 }
  0x1b   :  { %v123_v16 = vpack.c.bf16 %v122_v12, %v121_v11  ;;  %v2060_v21 = vld [vmem:[%s3140_s7] ss:$0 sm:$0xff]  ;;  %v155_v31 = vld [vmem:[#allocation8 + $0x18] sm:$0xff]  ;;  %v153_v38 = vld [vmem:[#allocation8 + $0x8] sm:$0xff]  ;;  %v2455_v61 = vunpack.c.0.s8 %v256_v46  ;;  %s2310_s7 = smov [#allocation11]  }
  0x1c   :  { %v157_v33 = vpack.c.bf16 %v155_v31, %v154_v30  ;;  %v152_v37 = vld [vmem:[#allocation8] sm:$0xff]  ;;  %s1975_s15 = sshll.u32 %s2310_s7, 4  ;;  %s1976_s15 = int_to_ptr.vmem [resolvable:$true] %s1975_s15 }
  0x1d   :  { %145 = vmatpush.bf16.msra.mxu0 %v128_v10  ;;  %v156_v39 = vpack.c.bf16 %v153_v38, %v152_v37 }
  0x1e   :  { %199 = vmatpush.bf16.msra.mxu2 %v183_v14  ;;  %168 = vmatpush.bf16.msra.mxu1 %v157_v33 }
  0x20   :  { %1992 = vmatmul.msk.bf16.vlgmr.msra.gmra.mxu0 %vm134_vm0, %v123_v16 }
  0x21   :  { %1994 = vmatmul.msk.bf16.vlgmr.msra.gmra.mxu2 %vm134_vm0, %v178_v17 }
  0x22   :  { %169 = vmatpush.bf16.msra.mxu1 %v156_v39 }
  0x25   :  { %1993 = vmatmul.msk.bf16.vlgmr.msra.gmra.mxu1 %vm134_vm0, %v123_v16 }
  0x9d   :  { %v147_v19 = vpop.f32.mrf.mxu0 }
  0x9e   :  { %v2411_v20 = vadd.f32 %v2059_v18, %v147_v19 }
  0xa0   :  { %469 = vrot.lane.b32.xlu1 %v2411_v20, %s2301_s27  ;;  %v477_v51 = vrot.slane %v2411_v20, 4 }
  0xa4   :  { %v201_v22 = vpop.f32.mrf.mxu2 }
  0xa5   :  { %v202_v23 = vadd.f32 %v2060_v21, %v201_v22  ;;  %v149_v25 = vpop.f32.mrf.mxu0 }
  0xa6   :  { %v2422_v26 = vadd.f32 %v2059_v18, %v149_v25 }
  0xa7   :  { %220 = vrot.lane.b32.xlu2 %v202_v23, %s2301_s27  ;;  %v2036_v24 = vpack.i.bf16 %v202_v23, %v2411_v20  ;;  %v229_v40 = vrot.slane %v202_v23, 4 }
  0xa8   :  { %214 = vrot.lane.b32.xlu1 %v202_v23, %s2302_s14  ;;  %v533_v55 = vrot.slane %v2422_v26, 4 }
  0xa9   :  { %2037 = vrot.lane.b32.xlu0 %v2036_v24, %s2303_s3 }
  0xac   :  { %v203_v27 = vpop.f32.mrf.mxu2 }
  0xad   :  { %v2430_v28 = vadd.f32 %v2060_v21, %v203_v27 }
  0xaf   :  { %459 = vrot.lane.b32.xlu2 %v2422_v26, %s2303_s3  ;;  %v285_v59 = vrot.slane %v2430_v28, 4 }
  0xb0   :  { %471 = vrot.lane.b32.xlu1 %v2422_v26, %s2301_s27 }
  0xb1   :  { %463 = vrot.lane.b32.xlu0 %v2411_v20, %s2302_s14 }
  0xb7   :  { %210 = vrot.lane.b32.xlu2 %v2430_v28, %s2303_s3 }
  0xb8   :  { %222 = vrot.lane.b32.xlu1 %v2430_v28, %s2301_s27 }
  0xb9   :  { %465 = vrot.lane.b32.xlu0 %v2422_v26, %s2302_s14 }
  0xc1   :  { %216 = vrot.lane.b32.xlu0 %v2430_v28, %s2302_s14 }
 0x101   :  { %v221_v29 = vpop.permute.xlu2 %220 }
 0x102   :  { %v239_v48 = vrot.slane %v221_v29, 4 }
 0x109   :  { %v2440_v34 = vpop.permute.xlu2 %459 }
 0x10a   :  { %v545_v1 = vrot.slane %v2440_v34, 4 }
 0x111   :  { %v2453_v60 = vpop.permute.xlu2 %210 }
 0x112   :  { %v470_v32 = vpop.permute.xlu1 %469  ;;  %v297_v9 = vrot.slane %v2453_v60, 4 }
 0x113   :  { %v487_v52 = vrot.slane %v470_v32, 4 }
 0x11a   :  { %v215_v42 = vpop.permute.xlu1 %214 }
 0x11b   :  { %v226_v43 = vrot.slane %v215_v42, 4  ;;  %v230_v44 = vsel %vm227_vm1, %v215_v42, %v229_v40  ;;  %v2038_v47 = vpop.permute.xlu0 %2037 }
 0x11c   :  { %v2040_v49 = vunpack.i.h.bf16 %v2038_v47  ;;  %v2039_v50 = vunpack.i.l.bf16 %v2038_v47  ;;  %v238_v54 = vperm.slane %v230_v44, %v2442_v41 }
 0x11d   :  { %v228_v53 = vsel %vm227_vm1, %v226_v43, %v202_v23 }
 0x11e   :  { %v234_v56 = vperm.slane %v228_v53, %v2442_v41  ;;  %v240_v57 = vsel %vm227_vm1, %v239_v48, %v2040_v49  ;;  %v241_v58 = vrot.slane %v2040_v49, 4  ;;  %v488_v63 = vsel %vm227_vm1, %v487_v52, %v2039_v50 }
 0x11f   :  { %v246_v62 = vperm.slane %v240_v57, %v2442_v41  ;;  %v489_v0 = vrot.slane %v2039_v50, 4  ;;  %v494_v4 = vperm.slane %v488_v63, %v2442_v41  ;;  %v265_v5 = vrot.slane %v238_v54, 4 }
 0x120   :  { %v253_v2 = vrot.slane %v234_v56, 4  ;;  %v242_v3 = vsel %vm227_vm1, %v221_v29, %v241_v58 }
 0x121   :  { %v250_v6 = vperm.slane %v242_v3, %v2442_v41  ;;  %v251_v7 = vrot.slane %v246_v62, 4  ;;  %v490_v8 = vsel %vm227_vm1, %v470_v32, %v489_v0  ;;  %v499_v12 = vrot.slane %v494_v4, 4 }
 0x122   :  { %v254_v10 = vsel %vm227_vm1, %v246_v62, %v253_v2  ;;  %v498_v11 = vperm.slane %v490_v8, %v2442_v41  ;;  %v472_v13 = vpop.permute.xlu1 %471 }
 0x123   :  { %v252_v14 = vsel %vm227_vm1, %v251_v7, %v234_v56  ;;  %v262_v15 = vperm.slane %v254_v10, %v2455_v61  ;;  %v263_v16 = vrot.slane %v250_v6, 4  ;;  %v266_v17 = vsel %vm227_vm1, %v250_v6, %v265_v5  ;;  %v464_v18 = vpop.permute.xlu0 %463 }
 0x124   :  { %v258_v19 = vperm.slane %v252_v14, %v2455_v61  ;;  %v274_v21 = vperm.slane %v266_v17, %v2455_v61  ;;  %v511_v22 = vrot.slane %v498_v11, 4  ;;  %v543_v23 = vrot.slane %v472_v13, 4 }
 0x125   :  { %v264_v24 = vsel %vm227_vm1, %v263_v16, %v238_v54  ;;  %v277_v25 = vrot.slane %v262_v15, 4  ;;  %v546_v27 = vsel %vm227_vm1, %v472_v13, %v545_v1  ;;  %v475_v29 = vrot.slane %v464_v18, 4 }
 0x126   :  { %v270_v30 = vperm.slane %v264_v24, %v2455_v61  ;;  %v275_v31 = vrot.slane %v258_v19, 4  ;;  %v281_v32 = vrot.slane %v274_v21, 4  ;;  %v544_v33 = vsel %vm227_vm1, %v543_v23, %v2440_v34 }
 0x127   :  { %v2478_v35 = vsel %vm227_vm1, 0.0, %v277_v25  ;;  %v339_v36 = vsel %vm227_vm1, %v277_v25, %v258_v19  ;;  %v550_v37 = vperm.slane %v544_v33, %v2442_v41  ;;  %v554_v38 = vperm.slane %v546_v27, %v2442_v41 }
 0x128   :  { %v2484_v39 = vsel %vm227_vm1, 0.0, %v275_v31  ;;  %v279_v40 = vrot.slane %v270_v30, 4  ;;  %v2487_v42 = vsel %vm227_vm1, 0.0, %v281_v32  ;;  %v2490_v43 = vperm.slane %v339_v36, %v2442_v41 }
 0x129   :  { %v344_v34 = vrot.slane %v2478_v35, 4  ;;  %v350_v44 = vsel %vm227_vm1, %v281_v32, %v270_v30  ;;  %v355_v45 = vrot.slane %v2487_v42, 4  ;;  %v555_v46 = vrot.slane %v550_v37, 4 }
 0x12a   :  { %v2496_v47 = vsel %vm227_vm1, 0.0, %v279_v40  ;;  %v2499_v48 = vperm.slane %v350_v44, %v2442_v41  ;;  %v567_v49 = vrot.slane %v554_v38, 4  ;;  %v476_v50 = vsel %vm227_vm1, %v475_v29, %v2411_v20  ;;  %v223_v52 = vpop.permute.xlu1 %222 }
 0x12b   :  { %v478_v53 = vsel %vm227_vm1, %v464_v18, %v477_v51  ;;  %v482_v54 = vperm.slane %v476_v50, %v2442_v41  ;;  %v295_v56 = vrot.slane %v223_v52, 4  ;;  %v298_v57 = vsel %vm227_vm1, %v223_v52, %v297_v9  ;;  %v466_v58 = vpop.permute.xlu0 %465 }
 0x12c   :  { %v486_v62 = vperm.slane %v478_v53, %v2442_v41  ;;  %v2508_v63 = vperm.slane %v298_v57, %v2442_v41  ;;  %v531_v0 = vrot.slane %v466_v58, 4  ;;  %v534_v1 = vsel %vm227_vm1, %v466_v58, %v533_v55 }
 0x12d   :  { %v500_v20 = vsel %vm227_vm1, %v499_v12, %v482_v54  ;;  %v501_v2 = vrot.slane %v482_v54, 4  ;;  %v296_v51 = vsel %vm227_vm1, %v295_v56, %v2453_v60  ;;  %v542_v3 = vperm.slane %v534_v1, %v2442_v41 }
 0x12e   :  { %v506_v5 = vperm.slane %v500_v20, %v2455_v61  ;;  %v512_v6 = vsel %vm227_vm1, %v511_v22, %v486_v62  ;;  %v513_v7 = vrot.slane %v486_v62, 4  ;;  %v2520_v8 = vperm.slane %v296_v51, %v2442_v41 }
 0x12f   :  { %v502_v9 = vsel %vm227_vm1, %v494_v4, %v501_v2  ;;  %v518_v55 = vperm.slane %v512_v6, %v2455_v61  ;;  %v319_v10 = vrot.slane %v2508_v63, 4  ;;  %v532_v12 = vsel %vm227_vm1, %v531_v0, %v2422_v26 }
 0x130   :  { %v510_v60 = vperm.slane %v502_v9, %v2455_v61  ;;  %v514_v13 = vsel %vm227_vm1, %v498_v11, %v513_v7  ;;  %v523_v14 = vrot.slane %v506_v5, 4  ;;  %v307_v15 = vrot.slane %v2520_v8, 4 }
 0x131   :  { %v522_v16 = vperm.slane %v514_v13, %v2455_v61  ;;  %v527_v17 = vrot.slane %v518_v55, 4  ;;  %v538_v18 = vperm.slane %v532_v12, %v2442_v41  ;;  %v568_v4 = vsel %vm227_vm1, %v567_v49, %v542_v3 }
 0x132   :  { %v525_v19 = vrot.slane %v510_v60, 4  ;;  %v569_v21 = vrot.slane %v542_v3, 4  ;;  %v574_v22 = vperm.slane %v568_v4, %v2455_v61  ;;  %v524_v26 = vsel %vm227_vm1, 0.0, %v523_v14 }
 0x133   :  { %v528_v23 = vsel %vm227_vm1, 0.0, %v527_v17  ;;  %v529_v24 = vrot.slane %v522_v16, 4  ;;  %v556_v11 = vsel %vm227_vm1, %v555_v46, %v538_v18  ;;  %v557_v25 = vrot.slane %v538_v18, 4  ;;  %v217_v32 = vpop.permute.xlu0 %216 }
 0x134   :  { %v526_v27 = vsel %vm227_vm1, 0.0, %v525_v19  ;;  %v562_v29 = vperm.slane %v556_v11, %v2455_v61  ;;  %v570_v30 = vsel %vm227_vm1, %v554_v38, %v569_v21  ;;  %v583_v31 = vrot.slane %v574_v22, 4 }
 0x135   :  { %v530_v33 = vsel %vm227_vm1, 0.0, %v529_v24  ;;  %v592_v36 = vrot.slane %v526_v27, 4  ;;  %v598_v40 = vsel %vm227_vm1, %v529_v24, %v518_v55  ;;  %v558_v44 = vsel %vm227_vm1, %v550_v37, %v557_v25 }
 0x136   :  { %v2544_v49 = vperm.slane %v598_v40, %v2442_v41  ;;  %v603_v46 = vrot.slane %v530_v33, 4  ;;  %v566_v50 = vperm.slane %v558_v44, %v2455_v61  ;;  %v578_v52 = vperm.slane %v570_v30, %v2455_v61 }
 0x137   :  { %v579_v53 = vrot.slane %v562_v29, 4  ;;  %v584_v38 = vsel %vm227_vm1, 0.0, %v583_v31  ;;  %v283_v54 = vrot.slane %v217_v32, 4  ;;  %v286_v56 = vsel %vm227_vm1, %v217_v32, %v285_v59 }
 0x138   :  { %v604_v57 = vsel %vm227_vm1, %v603_v46, %v528_v23  ;;  %v581_v58 = vrot.slane %v566_v50, 4  ;;  %v585_v37 = vrot.slane %v578_v52, 4  ;;  %v294_v62 = vperm.slane %v286_v56, %v2442_v41 }
 0x139   :  { %v2555_v0 = vsel %vm227_vm1, 0.0, %v579_v53  ;;  %v284_v1 = vsel %vm227_vm1, %v283_v54, %v2430_v28  ;;  %v587_v20 = vsel %vm227_vm1, %v525_v19, %v506_v5  ;;  %v593_v2 = vsel %vm227_vm1, %v592_v36, %v524_v26 }
 0x13a   :  { %v2562_v51 = vsel %vm227_vm1, 0.0, %v581_v58  ;;  %v586_v59 = vsel %vm227_vm1, 0.0, %v585_v37  ;;  %v2566_v3 = vsel %vm227_vm1, %v581_v58, %v562_v29  ;;  %v652_v6 = vsel %vm227_vm1, %v585_v37, %v574_v22 }
 0x13b   :  { %v646_v7 = vrot.slane %v2562_v51, 4  ;;  %v2571_v9 = vperm.slane %v652_v6, %v2442_v41  ;;  %v657_v28 = vrot.slane %v586_v59, 4  ;;  %v290_v5 = vperm.slane %v284_v1, %v2442_v41 }
 0x13c   :  { %v320_v55 = vsel %vm227_vm1, %v319_v10, %v294_v62  ;;  %v321_v12 = vrot.slane %v294_v62, 4  ;;  %v591_v60 = vperm.slane %v587_v20, %v2442_v41  ;;  %v597_v13 = vperm.slane %v593_v2, %v2442_v41 }
 0x13d   :  { %v658_v14 = vsel %vm227_vm1, %v657_v28, %v584_v38  ;;  %v677_v16 = vrot.slane %v2571_v9, 4  ;;  %v308_v17 = vsel %vm227_vm1, %v307_v15, %v290_v5  ;;  %v309_v18 = vrot.slane %v290_v5, 4 }
 0x13e   :  { %v2581_v4 = vperm.slane %v658_v14, %v2442_v41  ;;  %v314_v19 = vperm.slane %v308_v17, %v2455_v61  ;;  %v322_v10 = vsel %vm227_vm1, %v2508_v63, %v321_v12  ;;  %v326_v21 = vperm.slane %v320_v55, %v2455_v61 }
 0x13f   :  { %v310_v22 = vsel %vm227_vm1, %v2520_v8, %v309_v18  ;;  %v330_v26 = vperm.slane %v322_v10, %v2455_v61  ;;  %v608_v23 = vperm.slane %v604_v57, %v2442_v41  ;;  %v611_v24 = vrot.slane %v591_v60, 4 }
 0x140   :  { %v318_v15 = vperm.slane %v310_v22, %v2455_v61  ;;  %v331_v11 = vrot.slane %v314_v19, 4  ;;  %v335_v25 = vrot.slane %v326_v21, 4  ;;  %v623_v27 = vrot.slane %v2544_v49, 4 }
 0x141   :  { %v337_v29 = vrot.slane %v330_v26, 4  ;;  %v612_v30 = vsel %vm227_vm1, %v597_v13, %v611_v24  ;;  %v609_v63 = vrot.slane %v597_v13, 4  ;;  %v621_v1 = vrot.slane %v608_v23, 4 }
 0x142   :  { %v332_v31 = vsel %vm227_vm1, 0.0, %v331_v11  ;;  %v333_v32 = vrot.slane %v318_v15, 4  ;;  %v336_v8 = vsel %vm227_vm1, 0.0, %v335_v25  ;;  %v620_v33 = vperm.slane %v612_v30, %v2455_v61 }
 0x143   :  { %v338_v36 = vsel %vm227_vm1, 0.0, %v337_v29  ;;  %v404_v40 = vsel %vm227_vm1, %v337_v29, %v326_v21  ;;  %v624_v44 = vsel %vm227_vm1, %v608_v23, %v623_v27  ;;  %v610_v46 = vsel %vm227_vm1, %v609_v63, %v591_v60 }
 0x144   :  { %v334_v50 = vsel %vm227_vm1, 0.0, %v333_v32  ;;  %v393_v52 = vsel %vm227_vm1, %v333_v32, %v314_v19  ;;  %v2604_v53 = vperm.slane %v404_v40, %v2442_v41  ;;  %v409_v38 = vrot.slane %v338_v36, 4 }
 0x145   :  { %v2607_v54 = vperm.slane %v393_v52, %v2442_v41  ;;  %v398_v56 = vrot.slane %v334_v50, 4  ;;  %v632_v57 = vperm.slane %v624_v44, %v2455_v61  ;;  %v616_v58 = vperm.slane %v610_v46, %v2455_v61 }
 0x146   :  { %v410_v37 = vsel %vm227_vm1, %v409_v38, %v336_v8  ;;  %v429_v62 = vrot.slane %v2604_v53, 4  ;;  %v639_v20 = vrot.slane %v620_v33, 4  ;;  %v622_v55 = vsel %vm227_vm1, %v621_v1, %v2544_v49 }
 0x147   :  { %v399_v2 = vsel %vm227_vm1, %v398_v56, %v332_v31  ;;  %v2615_v59 = vperm.slane %v410_v37, %v2442_v41  ;;  %v417_v6 = vrot.slane %v2607_v54, 4  ;;  %v637_v28 = vrot.slane %v632_v57, 4 }
 0x148   :  { %v2619_v5 = vperm.slane %v399_v2, %v2442_v41  ;;  %v640_v12 = vsel %vm227_vm1, %v632_v57, %v639_v20  ;;  %v635_v60 = vrot.slane %v616_v58, 4  ;;  %v628_v17 = vperm.slane %v622_v55, %v2455_v61 }
 0x149   :  { %v427_v13 = vrot.slane %v2615_v59, 4  ;;  %v638_v14 = vsel %vm227_vm1, %v637_v28, %v620_v33  ;;  %v698_v18 = vpack.c.bf16 %v640_v12, %v640_v12  ;;  %v345_v10 = vsel %vm227_vm1, %v344_v34, %v2484_v39 }
 0x14a   :  { %v697_v19 = vpack.c.bf16 %v638_v14, %v638_v14  ;;  %v356_v49 = vsel %vm227_vm1, %v355_v45, %v2496_v47  ;;  %v363_v21 = vrot.slane %v2490_v43, 4  ;;  %v633_v22 = vrot.slane %v628_v17, 4 }
 0x14b   :  { %v1013_v26 = vsel %vm951_vm2, %v698_v18, 0  ;;  %v636_v23 = vsel %vm227_vm1, %v628_v17, %v635_v60  ;;  %v349_v24 = vperm.slane %v345_v10, %v2442_v41  ;;  %v360_v39 = vperm.slane %v356_v49, %v2442_v41 }
 0x14c   :  { %v994_v15 = vsel %vm951_vm2, %v697_v19, 0  ;;  %1022 = vmatpush.bf16.xpose.msrb.mxu2 %v1013_v26  ;;  %v696_v35 = vpack.c.bf16 %v636_v23, %v636_v23  ;;  %v375_v34 = vrot.slane %v2499_v48, 4  ;;  %v634_v42 = vsel %vm227_vm1, %v633_v22, %v616_v58 }
 0x14d   :  { %1003 = vmatpush.bf16.xpose.msrb.mxu1 %v994_v15  ;;  %v364_v45 = vsel %vm227_vm1, %v349_v24, %v363_v21  ;;  %v645_v47 = vperm.slane %v2566_v3, %v2442_v41  ;;  %v647_v11 = vsel %vm227_vm1, %v646_v7, %v2555_v0  ;;  %v695_v25 = vpack.c.bf16 %v634_v42, %v634_v42 }
 0x14e   :  { %v975_v27 = vsel %vm951_vm2, %v696_v35, 0  ;;  %v372_v29 = vperm.slane %v364_v45, %v2455_v61  ;;  %v376_v30 = vsel %vm227_vm1, %v360_v39, %v375_v34  ;;  %v651_v31 = vperm.slane %v647_v11, %v2442_v41 }
 0x14f   :  { %984 = vmatpush.bf16.xpose.msrb.mxu0 %v975_v27  ;;  %v384_v63 = vperm.slane %v376_v30, %v2455_v61  ;;  %v665_v32 = vrot.slane %v645_v47, 4  ;;  %v678_v51 = vsel %vm227_vm1, %v2581_v4, %v677_v16  ;;  %v956_v0 = vsel %vm951_vm2, %v695_v25, 0 }
 0x150   :  { %v686_v3 = vperm.slane %v678_v51, %v2455_v61  ;;  %v361_v7 = vrot.slane %v349_v24, 4  ;;  %v373_v8 = vrot.slane %v360_v39, 4  ;;  %965 = vmatpush.bf16.xpose.msra.mxu3 %v956_v0  ;;  %v391_v40 = vrot.slane %v372_v29, 4 }
 0x151   :  { %v389_v33 = vrot.slane %v384_v63, 4  ;;  %v666_v36 = vsel %vm227_vm1, %v651_v31, %v665_v32  ;;  %v663_v44 = vrot.slane %v651_v31, 4  ;;  %v418_v14 = vsel %vm227_vm1, %v2619_v5, %v417_v6 }
 0x152   :  { %v674_v46 = vperm.slane %v666_v36, %v2455_v61  ;;  %v691_v50 = vrot.slane %v686_v3, 4  ;;  %v362_v52 = vsel %vm227_vm1, %v361_v7, %v2490_v43  ;;  %v374_v16 = vsel %vm227_vm1, %v373_v8, %v2499_v48 }
 0x153   :  { %v390_v38 = vsel %vm227_vm1, %v389_v33, %v372_v29  ;;  %v368_v56 = vperm.slane %v362_v52, %v2455_v61  ;;  %v380_v57 = vperm.slane %v374_v16, %v2455_v61  ;;  %v392_v58 = vsel %vm227_vm1, %v384_v63, %v391_v40 }
 0x154   :  { %v449_v37 = vpack.c.bf16 %v390_v38, %v390_v38  ;;  %v692_v1 = vsel %vm227_vm1, %v691_v50, %v674_v46  ;;  %v450_v20 = vpack.c.bf16 %v392_v58, %v392_v58  ;;  %v664_v2 = vsel %vm227_vm1, %v663_v44, %v645_v47 }
 0x155   :  { %v701_v28 = vpack.c.bf16 %v692_v1, %v692_v1  ;;  %v385_v55 = vrot.slane %v380_v57, 4  ;;  %v387_v43 = vrot.slane %v368_v56, 4  ;;  %v670_v12 = vperm.slane %v664_v2, %v2455_v61 }
 0x156   :  { %1997 = vmatmul.msk.bf16.vlgmr.msrb.gmra.mxu1 %vm951_vm2, %v449_v37  ;;  %1998 = vmatmul.msk.bf16.vlgmr.msrb.gmra.mxu2 %vm951_vm2, %v450_v20  ;;  %v675_v48 = vrot.slane %v2581_v4, 4  ;;  %v693_v60 = vrot.slane %v674_v46, 4  ;;  %v430_v17 = vsel %vm227_vm1, %v2615_v59, %v429_v62  ;;  %v2691_v4 = vld [vmem:[%s3142_s9 + $0x1] sm:$0x1]  ;;  %v426_v24 = vperm.slane %v418_v14, %v2455_v61 }
 0x157   :  { %v1070_v18 = vsel %vm951_vm2, %v701_v28, 0  ;;  %v386_v19 = vsel %vm227_vm1, %v385_v55, %v368_v56  ;;  %v689_v10 = vrot.slane %v670_v12, 4  ;;  %v388_v49 = vsel %vm227_vm1, %v380_v57, %v387_v43  ;;  %v171_v43 = vpop.f32.mrf.mxu1 }
 0x158   :  { %1079 = vmatpush.bf16.xpose.msra.mxu1 %v1070_v18  ;;  %v447_v21 = vpack.c.bf16 %v386_v19, %v386_v19  ;;  %v676_v6 = vsel %vm227_vm1, %v675_v48, %v2571_v9  ;;  %v694_v22 = vsel %vm227_vm1, %v686_v3, %v693_v60  ;;  %v448_v62 = vpack.c.bf16 %v388_v49, %v388_v49  ;;  %v2737_v48 = vld [vmem:[%s3141_s8] sm:$0x1] }
 0x159   :  { %v682_v26 = vperm.slane %v676_v6, %v2455_v61  ;;  %v702_v23 = vpack.c.bf16 %v694_v22, %v694_v22  ;;  %v438_v15 = vperm.slane %v430_v17, %v2455_v61  ;;  %v415_v35 = vrot.slane %v2619_v5, 4 }
 0x15a   :  { %1995 = vmatmul.msk.bf16.vlgmr.msra.gmra.mxu3 %vm951_vm2, %v447_v21  ;;  %1996 = vmatmul.msk.bf16.vlgmr.msrb.gmra.mxu0 %vm951_vm2, %v448_v62  ;;  %v428_v9 = vsel %vm227_vm1, %v427_v13, %v2604_v53  ;;  %2070 = vrsqrt.f32 %v2691_v4  ;;  %v2306_v45 = vmov 0   ;;  %v2714_v53 = vld [vmem:[%s3142_s9] sm:$0x1]  ;;  %v445_v27 = vrot.slane %v426_v24, 4  ;;  %s1977_s9 = sshll.u32 %s3145_s12, 4  ;;  %s1978_s9 = int_to_ptr.hbm [resolvable:$true] %s1977_s9 }
 0x15b   :  { %v687_v39 = vrot.slane %v682_v26, 4  ;;  %v1089_v34 = vsel %vm951_vm2, %v702_v23, 0  ;;  %v690_v42 = vsel %vm227_vm1, %v682_v26, %v689_v10  ;;  %2042 = vset.pattern.permute.xlu0 %v2306_v45  ;;  %2041 = vset.pattern.permute.xlu2 %v2306_v45  ;;  %v443_v11 = vrot.slane %v438_v15, 4  ;;  %v2752_v26 = vld [vmem:[%s3141_s8 + $0x1] sm:$0x1] }
 0x15c   :  { %1098 = vmatpush.bf16.xpose.msra.mxu2 %v1089_v34  ;;  %v700_v47 = vpack.c.bf16 %v690_v42, %v690_v42  ;;  %v416_v5 = vsel %vm227_vm1, %v415_v35, %v2607_v54  ;;  %2058 = vset.pattern.permute.xlu1 %v2306_v45  ;;  %v434_v25 = vperm.slane %v428_v9, %v2455_v61  ;;  %2072 = vrsqrt.f32 %v2714_v53 }
 0x15d   :  { %v688_v59 = vsel %vm227_vm1, %v687_v39, %v670_v12  ;;  %v422_v13 = vperm.slane %v416_v5, %v2455_v61  ;;  %v444_v31 = vsel %vm227_vm1, %v443_v11, %v426_v24  ;;  %v446_v0 = vsel %vm227_vm1, %v438_v15, %v445_v27 }
 0x15e   :  { %v699_v29 = vpack.c.bf16 %v688_v59, %v688_v59  ;;  %v1051_v30 = vsel %vm951_vm2, %v700_v47, 0  ;;  %v439_v32 = vrot.slane %v434_v25, 4  ;;  %v453_v8 = vpack.c.bf16 %v444_v31, %v444_v31 }
 0x15f   :  { %1060 = vmatpush.bf16.xpose.msra.mxu0 %v1051_v30  ;;  %v441_v51 = vrot.slane %v422_v13, 4  ;;  %v454_v33 = vpack.c.bf16 %v446_v0, %v446_v0  ;;  %vm1128_vm3 = vweird.f32 %v2691_v4  ;;  %vm1118_vm6 = vweird.f32 %v2714_v53  ;;  %v173_v12 = vpop.f32.mrf.mxu1 }
 0x160   :  { %v2071_v54 = vpop.eup %2070  ;;  %v1032_v63 = vsel %vm951_vm2, %v699_v29, 0  ;;  %v440_v40 = vsel %vm227_vm1, %v439_v32, %v422_v13  ;;  %vm1108_vm9 = vcmp.eq.f32.partialorder %v2737_v48, 0.0  ;;  %v2307_v60 = vmov 0.0  }
 0x161   :  { %1041 = vmatpush.bf16.xpose.msrb.mxu3 %v1032_v63  ;;  %v1123_v3 = vmul.f32 %v2071_v54, %v2691_v4  ;;  %v442_v44 = vsel %vm227_vm1, %v434_v25, %v441_v51  ;;  %vm1129_vm4 = vweird.f32 %v2071_v54  ;;  %v451_v16 = vpack.c.bf16 %v440_v40, %v440_v40  ;;  %v2061_v25 = vld [vmem:[%s3138_s5] ss:$0 sm:$0xff] }
 0x162   :  { %v2073_v36 = vpop.eup %2072  ;;  %v452_v38 = vpack.c.bf16 %v442_v44, %v442_v44  ;;  %vm1130_vm5 = vmor %vm1128_vm3, %vm1129_vm4  ;;  %v1110_v14 = vsel %vm1108_vm9, -1e+30, %v2307_v60  ;;  %vm1109_vm10 = vcmp.eq.f32.partialorder %v2752_v26, 0.0  ;;  %v2771_v31 = vadd.f32 %v2061_v25, %v171_v43 }
 0x163   :  { %v1124_v7 = vmul.f32 %v2071_v54, %v1123_v3  ;;  %v1113_v50 = vmul.f32 %v2073_v36, %v2714_v53  ;;  %vm1119_vm7 = vweird.f32 %v2073_v36  ;;  %v1154_v18 = vperm.slane %v1110_v14, 0 }
 0x164   :  { %vm1120_vm8 = vmor %vm1118_vm6, %vm1119_vm7  ;;  %v1111_v42 = vsel %vm1109_vm10, -1e+30, %v2307_v60  ;;  %v2773_v32 = vadd.f32 %v2061_v25, %v173_v12 }
 0x165   :  { %v1125_v46 = vmul.f32 0.5, %v1124_v7  ;;  %v1114_v56 = vmul.f32 %v2073_v36, %v1113_v50  ;;  %v1155_v13 = vperm.slane %v1111_v42, 0 }
 0x166   :  { %2001 = vmatmul.msk.bf16.vlgmr.msra.gmra.mxu1 %vm951_vm2, %v453_v8  ;;  %2002 = vmatmul.msk.bf16.vlgmr.msra.gmra.mxu2 %vm951_vm2, %v454_v33 }
 0x167   :  { %v1126_v52 = vsub.f32 1.5, %v1125_v46  ;;  %v1115_v58 = vmul.f32 0.5, %v1114_v56 }
 0x169   :  { %v1127_v57 = vmul.f32 %v2071_v54, %v1126_v52  ;;  %v1116_v20 = vsub.f32 1.5, %v1115_v58 }
 0x16a   :  { %1999 = vmatmul.msk.bf16.vlgmr.msrb.gmra.mxu3 %vm951_vm2, %v451_v16  ;;  %2000 = vmatmul.msk.bf16.vlgmr.msra.gmra.mxu0 %vm951_vm2, %v452_v38 }
 0x16b   :  { %v1131_v37 = vsel %vm1130_vm5, %v2071_v54, %v1127_v57  ;;  %v1117_v2 = vmul.f32 %v2073_v36, %v1116_v20 }
 0x16c   :  { %v1135_v1 = vperm.slane %v1131_v37, 0 }
 0x16d   :  { %v1121_v28 = vsel %vm1120_vm8, %v2073_v36, %v1117_v2  ;;  %v2043_v36 = vpack.i.bf16 %v2773_v32, %v2771_v31 }
 0x16e   :  { %1141 = vperm.xlu0 %2042, %v1135_v1   ;;  %v1134_v55 = vperm.slane %v1121_v28, 0 }
 0x170   :  { %1137 = vperm.xlu2 %2041, %v1134_v55  }
 0x1ca   :  { %v1138_v17 = vpop.permute.xlu2 %1137 }
 0x1d3   :  { %v2740_v19 = vpop.f32.mrf.mxu1 }
 0x1d4   :  { %v1146_v10 = vmul.f32 %v1138_v17, %v2740_v19 }
 0x1d6   :  { %v1160_v49 = vadd.f32 %v1154_v18, %v1146_v10 }
 0x1d7   :  { %v2743_v21 = vpop.f32.mrf.mxu0 }
 0x1d8   :  { %v1145_v6 = vmul.f32 %v1138_v17, %v2743_v21  ;;  %v1172_v22 = vsel %vm951_vm2, %v1160_v49, -inf }
 0x1d9   :  { %1173 = vmax.xlane.f32.xlu0 %v1172_v22  ;;  %v2747_v62 = vpop.f32.mrf.mxu2 }
 0x1da   :  { %v2754_v23 = vadd.f32 %v1154_v18, %v1145_v6  ;;  %v1147_v15 = vmul.f32 %v1138_v17, %v2747_v62 }
 0x1db   :  { %v1007_v24 = vpop.f32.mrf.mxu1 }
 0x1dc   :  { %v1169_v35 = vsel %vm951_vm2, %v2754_v23, -inf  ;;  %v1161_v47 = vadd.f32 %v1154_v18, %v1147_v15 }
 0x1dd   :  { %v2760_v9 = vpop.f32.mrf.mxu3  ;;  %1170 = vmax.xlane.f32.xlu2 %v1169_v35 }
 0x1de   :  { %v1144_v39 = vmul.f32 %v1138_v17, %v2760_v9  ;;  %v1175_v30 = vsel %vm951_vm2, %v1161_v47, -inf }
 0x1df   :  { %v988_v34 = vpop.f32.mrf.mxu0 }
 0x1e0   :  { %v1158_v45 = vadd.f32 %v1154_v18, %v1144_v39  ;;  %v1142_v11 = vpop.permute.xlu0 %1141 }
 0x1e1   :  { %v1026_v5 = vpop.f32.mrf.mxu2 }
 0x1e2   :  { %v1166_v59 = vsel %vm951_vm2, %v1158_v45, -inf }
 0x1e3   :  { %1167 = vmax.xlane.f32.xlu1 %v1166_v59  ;;  %v2767_v27 = vpop.f32.mrf.mxu1 }
 0x1e4   :  { %v1150_v29 = vmul.f32 %v1142_v11, %v2767_v27 }
 0x1e5   :  { %v969_v54 = vpop.f32.mrf.mxu3  ;;  %1176 = vmax.xlane.f32.xlu2 %v1175_v30 }
 0x1e6   :  { %v1164_v63 = vadd.f32 %v1155_v13, %v1150_v29 }
 0x1e7   :  { %v2775_v51 = vpop.f32.mrf.mxu0 }
 0x1e8   :  { %v1149_v0 = vmul.f32 %v1142_v11, %v2775_v51  ;;  %v1184_v3 = vsel %vm951_vm2, %v1164_v63, -inf }
 0x1e9   :  { %v2779_v7 = vpop.f32.mrf.mxu2 }
 0x1ea   :  { %v2781_v8 = vadd.f32 %v1155_v13, %v1149_v0  ;;  %v1151_v40 = vmul.f32 %v1142_v11, %v2779_v7 }
 0x1eb   :  { %1185 = vmax.xlane.f32.xlu1 %v1184_v3  ;;  %v1083_v33 = vpop.f32.mrf.mxu1 }
 0x1ec   :  { %v1181_v44 = vsel %vm951_vm2, %v2781_v8, -inf  ;;  %v1165_v38 = vadd.f32 %v1155_v13, %v1151_v40 }
 0x1ed   :  { %v2788_v46 = vpop.f32.mrf.mxu3  ;;  %1182 = vmax.xlane.f32.xlu2 %v1181_v44  ;;  %2044 = vrot.lane.b32.xlu0 %v2043_v36, %s2303_s3 }
 0x1ee   :  { %v1148_v50 = vmul.f32 %v1142_v11, %v2788_v46  ;;  %v1187_v58 = vsel %vm951_vm2, %v1165_v38, -inf }
 0x1ef   :  { %v1064_v52 = vpop.f32.mrf.mxu0 }
 0x1f0   :  { %v1162_v16 = vadd.f32 %v1155_v13, %v1148_v50 }
 0x1f1   :  { %v1102_v56 = vpop.f32.mrf.mxu2 }
 0x1f2   :  { %v1178_v57 = vsel %vm951_vm2, %v1162_v16, -inf }
 0x1f3   :  { %1179 = vmax.xlane.f32.xlu1 %v1178_v57 }
 0x1f5   :  { %v1045_v37 = vpop.f32.mrf.mxu3  ;;  %1188 = vmax.xlane.f32.xlu2 %v1187_v58 }
 0x20c   :  { %2049 = vrot.lane.b32.xlu1 %v2043_v36, %s2302_s14 }
 0x20d   :  { %2054 = vrot.lane.b32.xlu2 %v2043_v36, %s2301_s27 }
 0x24c   :  { %v1174_v1 = vpop.xlane.xlu0 %1173 }
 0x24d   :  { %v1192_v20 = vsub.f32 %v1160_v49, %v1174_v1 }
 0x24f   :  { %v1202_v2 = vmul.f32 1.442695, %v1192_v20 }
 0x250   :  { %v1171_v28 = vpop.xlane.xlu2 %1170 }
 0x251   :  { %2074 = vpow2.f32 %v1202_v2  ;;  %v1191_v17 = vsub.f32 %v2754_v23, %v1171_v28 }
 0x253   :  { %v1200_v22 = vmul.f32 1.442695, %v1191_v17  ;;  %v725_v17 = vrot.slane %v2771_v31, 4 }
 0x256   :  { %v1168_v55 = vpop.xlane.xlu1 %1167 }
 0x257   :  { %v2796_v43 = vpop.eup %2074  ;;  %v1190_v12 = vsub.f32 %v1158_v45, %v1168_v55 }
 0x258   :  { %v1177_v60 = vpop.xlane.xlu2 %1176  ;;  %v1220_v14 = vsel %vm951_vm2, %v2796_v43, 0.0 }
 0x259   :  { %v1198_v18 = vmul.f32 1.442695, %v1190_v12  ;;  %v1193_v10 = vsub.f32 %v1161_v47, %v1177_v60  ;;  %1221 = vadd.xlane.f32.xlu2 %v1220_v14 }
 0x25b   :  { %2076 = vpow2.f32 %v1198_v18  ;;  %v1204_v6 = vmul.f32 1.442695, %v1193_v10  ;;  %v781_v18 = vrot.slane %v2773_v32, 4 }
 0x25d   :  { %2078 = vpow2.f32 %v1204_v6 }
 0x25e   :  { %v1186_v49 = vpop.xlane.xlu1 %1185  ;;  %2080 = vpow2.f32 %v1200_v22 }
 0x25f   :  { %v1196_v24 = vsub.f32 %v1164_v63, %v1186_v49  ;;  %v2045_v36 = vpop.permute.xlu0 %2044 }
 0x260   :  { %v1183_v15 = vpop.xlane.xlu2 %1182 }
 0x261   :  { %v2801_v35 = vpop.eup %2076  ;;  %v1210_v39 = vmul.f32 1.442695, %v1196_v24  ;;  %v1195_v13 = vsub.f32 %v2781_v8, %v1183_v15 }
 0x262   :  { %v1214_v34 = vsel %vm951_vm2, %v2801_v35, 0.0 }
 0x263   :  { %v2805_v42 = vpop.eup %2078  ;;  %2082 = vpow2.f32 %v1210_v39  ;;  %1215 = vadd.xlane.f32.xlu0 %v1214_v34  ;;  %v1208_v0 = vmul.f32 1.442695, %v1195_v13 }
 0x264   :  { %v1223_v23 = vsel %vm951_vm2, %v2805_v42, 0.0  ;;  %v2809_v47 = vpop.eup %2080 }
 0x265   :  { %1224 = vadd.xlane.f32.xlu1 %v1223_v23  ;;  %v1217_v30 = vsel %vm951_vm2, %v2809_v47, 0.0 }
 0x266   :  { %v1180_v45 = vpop.xlane.xlu1 %1179 }
 0x267   :  { %v1194_v11 = vsub.f32 %v1162_v16, %v1180_v45  ;;  %v2047_v16 = vunpack.i.h.bf16 %v2045_v36 }
 0x268   :  { %v1189_v5 = vpop.xlane.xlu2 %1188 }
 0x269   :  { %v2811_v59 = vpop.eup %2082  ;;  %v1206_v25 = vmul.f32 1.442695, %v1194_v11  ;;  %v1197_v29 = vsub.f32 %v1165_v38, %v1189_v5  ;;  %v2046_v38 = vunpack.i.l.bf16 %v2045_v36  ;;  %v793_v37 = vrot.slane %v2047_v16, 4 }
 0x26a   :  { %v1232_v54 = vsel %vm951_vm2, %v2811_v59, 0.0 }
 0x26b   :  { %2084 = vpow2.f32 %v1206_v25  ;;  %v1212_v63 = vmul.f32 1.442695, %v1197_v29  ;;  %1218 = vadd.xlane.f32.xlu0 %v1217_v30  ;;  %1233 = vadd.xlane.f32.xlu2 %v1232_v54  ;;  %v737_v1 = vrot.slane %v2046_v38, 4 }
 0x26d   :  { %2086 = vpow2.f32 %v1212_v63 }
 0x26e   :  { %2088 = vpow2.f32 %v1208_v0 }
 0x26f   :  { %2090 = vrcp.f32 %v2691_v4 }
 0x270   :  { %v2055_v33 = vpop.permute.xlu2 %2054  ;;  %2092 = vrcp.f32 %v2714_v53 }
 0x271   :  { %v2818_v3 = vpop.eup %2084  ;;  %v2057_v44 = vunpack.i.h.bf16 %v2055_v33  ;;  %v2056_v50 = vunpack.i.l.bf16 %v2055_v33 }
 0x272   :  { %v1226_v8 = vsel %vm951_vm2, %v2818_v3, 0.0 }
 0x273   :  { %v2822_v40 = vpop.eup %2086  ;;  %1227 = vadd.xlane.f32.xlu1 %v1226_v8  ;;  %v791_v57 = vrot.slane %v2057_v44, 4  ;;  %v735_v58 = vrot.slane %v2056_v50, 4  ;;  %v794_v2 = vsel %vm227_vm1, %v2057_v44, %v793_v37  ;;  %v738_v28 = vsel %vm227_vm1, %v2056_v50, %v737_v1 }
 0x274   :  { %v1235_v52 = vsel %vm951_vm2, %v2822_v40, 0.0  ;;  %v2826_v56 = vpop.eup %2088  ;;  %v802_v60 = vperm.slane %v794_v2, %v2442_v41  ;;  %v746_v14 = vperm.slane %v738_v28, %v2442_v41 }
 0x275   :  { %1236 = vadd.xlane.f32.xlu0 %v1235_v52  ;;  %v1229_v20 = vsel %vm951_vm2, %v2826_v56, 0.0  ;;  %v792_v55 = vsel %vm227_vm1, %v791_v57, %v2047_v16  ;;  %v736_v12 = vsel %vm227_vm1, %v735_v58, %v2046_v38  ;;  %v2091_v24 = vpop.eup %2090 }
 0x276   :  { %v798_v4 = vperm.slane %v792_v55, %v2442_v41  ;;  %v742_v6 = vperm.slane %v736_v12, %v2442_v41  ;;  %v815_v45 = vrot.slane %v802_v60, 4  ;;  %v759_v11 = vrot.slane %v746_v14, 4  ;;  %v2093_v50 = vpop.eup %2092 }
 0x278   :  { %v803_v25 = vrot.slane %v798_v4, 4  ;;  %v747_v29 = vrot.slane %v742_v6, 4 }
 0x27b   :  { %1230 = vadd.xlane.f32.xlu1 %v1229_v20 }
 0x27e   :  { %v2050_v10 = vpop.permute.xlu1 %2049 }
 0x27f   :  { %v2052_v22 = vunpack.i.h.bf16 %v2050_v10  ;;  %v2051_v49 = vunpack.i.l.bf16 %v2050_v10 }
 0x281   :  { %v779_v15 = vrot.slane %v2052_v22, 4  ;;  %v782_v39 = vsel %vm227_vm1, %v2052_v22, %v781_v18  ;;  %v723_v34 = vrot.slane %v2051_v49, 4  ;;  %v726_v23 = vsel %vm227_vm1, %v2051_v49, %v725_v17 }
 0x282   :  { %v790_v5 = vperm.slane %v782_v39, %v2442_v41  ;;  %v734_v13 = vperm.slane %v726_v23, %v2442_v41 }
 0x283   :  { %v780_v30 = vsel %vm227_vm1, %v779_v15, %v2773_v32  ;;  %v724_v53 = vsel %vm227_vm1, %v723_v34, %v2771_v31  ;;  %1425 = vperm.xlu2 %2041, %v2091_v24  }
 0x284   :  { %v786_v54 = vperm.slane %v780_v30, %v2442_v41  ;;  %v816_v63 = vsel %vm227_vm1, %v815_v45, %v790_v5  ;;  %v817_v0 = vrot.slane %v790_v5, 4  ;;  %v730_v33 = vperm.slane %v724_v53, %v2442_v41 }
 0x285   :  { %v822_v36 = vperm.slane %v816_v63, %v2455_v61  ;;  %v760_v8 = vsel %vm227_vm1, %v759_v11, %v734_v13  ;;  %v761_v44 = vrot.slane %v734_v13, 4 }
 0x286   :  { %v804_v52 = vsel %vm227_vm1, %v803_v25, %v786_v54  ;;  %v805_v32 = vrot.slane %v786_v54, 4  ;;  %v818_v16 = vsel %vm227_vm1, %v802_v60, %v817_v0  ;;  %v748_v31 = vsel %vm227_vm1, %v747_v29, %v730_v33 }
 0x287   :  { %v810_v38 = vperm.slane %v804_v52, %v2455_v61  ;;  %v826_v57 = vperm.slane %v818_v16, %v2455_v61  ;;  %v831_v58 = vrot.slane %v822_v36, 4  ;;  %v749_v37 = vrot.slane %v730_v33, 4 }
 0x288   :  { %v806_v1 = vsel %vm227_vm1, %v798_v4, %v805_v32  ;;  %v754_v20 = vperm.slane %v748_v31, %v2455_v61  ;;  %v762_v2 = vsel %vm227_vm1, %v746_v14, %v761_v44  ;;  %v766_v28 = vperm.slane %v760_v8, %v2455_v61 }
 0x289   :  { %v814_v55 = vperm.slane %v806_v1, %v2455_v61  ;;  %v827_v12 = vrot.slane %v810_v38, 4  ;;  %v832_v60 = vsel %vm227_vm1, 0.0, %v831_v58  ;;  %v833_v17 = vrot.slane %v826_v57, 4  ;;  %1419 = vperm.xlu0 %2042, %v2093_v50  }
 0x28a   :  { %v750_v18 = vsel %vm227_vm1, %v742_v6, %v749_v37  ;;  %v770_v10 = vperm.slane %v762_v2, %v2455_v61  ;;  %v771_v22 = vrot.slane %v754_v20, 4  ;;  %v775_v49 = vrot.slane %v766_v28, 4 }
 0x28b   :  { %v828_v4 = vsel %vm227_vm1, 0.0, %v827_v12  ;;  %v829_v24 = vrot.slane %v814_v55, 4  ;;  %v834_v14 = vsel %vm227_vm1, 0.0, %v833_v17  ;;  %v900_v15 = vsel %vm227_vm1, %v833_v17, %v822_v36 }
 0x28c   :  { %v904_v39 = vperm.slane %v900_v15, %v2442_v41  ;;  %v905_v34 = vrot.slane %v834_v14, 4  ;;  %v758_v23 = vperm.slane %v750_v18, %v2455_v61  ;;  %v772_v45 = vsel %vm227_vm1, 0.0, %v771_v22 }
 0x28d   :  { %v830_v6 = vsel %vm227_vm1, 0.0, %v829_v24  ;;  %v776_v11 = vsel %vm227_vm1, 0.0, %v775_v49  ;;  %v777_v5 = vrot.slane %v770_v10, 4  ;;  %v889_v13 = vsel %vm227_vm1, %v829_v24, %v810_v38 }
 0x28e   :  { %v894_v25 = vrot.slane %v830_v6, 4  ;;  %v773_v29 = vrot.slane %v758_v23, 4  ;;  %v893_v30 = vperm.slane %v889_v13, %v2442_v41  ;;  %v906_v53 = vsel %vm227_vm1, %v905_v34, %v832_v60 }
 0x28f   :  { %v778_v54 = vsel %vm227_vm1, 0.0, %v777_v5  ;;  %v846_v63 = vsel %vm227_vm1, %v777_v5, %v766_v28  ;;  %v910_v0 = vperm.slane %v906_v53, %v2442_v41  ;;  %v925_v33 = vrot.slane %v904_v39, 4 }
 0x290   :  { %v774_v36 = vsel %vm227_vm1, 0.0, %v773_v29  ;;  %v850_v8 = vperm.slane %v846_v63, %v2442_v41  ;;  %v851_v44 = vrot.slane %v778_v54, 4  ;;  %v835_v50 = vsel %vm227_vm1, %v773_v29, %v754_v20 }
 0x291   :  { %v840_v52 = vrot.slane %v774_v36, 4  ;;  %v839_v32 = vperm.slane %v835_v50, %v2442_v41  ;;  %v895_v16 = vsel %vm227_vm1, %v894_v25, %v828_v4  ;;  %v913_v31 = vrot.slane %v893_v30, 4 }
 0x292   :  { %v852_v38 = vsel %vm227_vm1, %v851_v44, %v776_v11  ;;  %v871_v57 = vrot.slane %v850_v8, 4  ;;  %v899_v58 = vperm.slane %v895_v16, %v2442_v41  ;;  %v926_v37 = vsel %vm227_vm1, %v910_v0, %v925_v33 }
 0x293   :  { %v841_v1 = vsel %vm227_vm1, %v840_v52, %v772_v45  ;;  %v856_v2 = vperm.slane %v852_v38, %v2442_v41  ;;  %v859_v28 = vrot.slane %v839_v32, 4  ;;  %v934_v20 = vperm.slane %v926_v37, %v2455_v61 }
 0x294   :  { %v845_v55 = vperm.slane %v841_v1, %v2442_v41  ;;  %v914_v12 = vsel %vm227_vm1, %v899_v58, %v913_v31  ;;  %v911_v60 = vrot.slane %v899_v58, 4  ;;  %v923_v17 = vrot.slane %v910_v0, 4 }
 0x295   :  { %v872_v18 = vsel %vm227_vm1, %v856_v2, %v871_v57  ;;  %v922_v10 = vperm.slane %v914_v12, %v2455_v61  ;;  %v939_v22 = vrot.slane %v934_v20, 4  ;;  %v869_v49 = vrot.slane %v856_v2, 4 }
 0x296   :  { %v860_v4 = vsel %vm227_vm1, %v845_v55, %v859_v28  ;;  %v880_v24 = vperm.slane %v872_v18, %v2455_v61  ;;  %v857_v14 = vrot.slane %v845_v55, 4  ;;  %v912_v15 = vsel %vm227_vm1, %v911_v60, %v893_v30 }
 0x297   :  { %v868_v34 = vperm.slane %v860_v4, %v2455_v61  ;;  %v940_v23 = vsel %vm227_vm1, %v939_v22, %v922_v10  ;;  %v870_v45 = vsel %vm227_vm1, %v869_v49, %v850_v8  ;;  %v918_v6 = vperm.slane %v912_v15, %v2455_v61 }
 0x298   :  { %v885_v11 = vrot.slane %v880_v24, 4  ;;  %v949_v5 = vpack.c.bf16 %v940_v23, %v940_v23  ;;  %v858_v13 = vsel %vm227_vm1, %v857_v14, %v839_v32  ;;  %v876_v25 = vperm.slane %v870_v45, %v2455_v61 }
 0x299   :  { %v864_v29 = vperm.slane %v858_v13, %v2455_v61  ;;  %v887_v53 = vrot.slane %v868_v34, 4  ;;  %v924_v54 = vsel %vm227_vm1, %v923_v17, %v904_v39  ;;  %v941_v30 = vrot.slane %v922_v10, 4 }
 0x29a   :  { %v886_v63 = vsel %vm227_vm1, %v885_v11, %v868_v34  ;;  %v1381_v0 = vsel %vm1265_vm11, %v949_v5, 0  ;;  %v881_v33 = vrot.slane %v876_v25, 4  ;;  %v930_v36 = vperm.slane %v924_v54, %v2455_v61 }
 0x29b   :  { %v945_v8 = vpack.c.bf16 %v886_v63, %v886_v63  ;;  %v888_v44 = vsel %vm227_vm1, %v880_v24, %v887_v53  ;;  %v942_v50 = vsel %vm227_vm1, %v934_v20, %v941_v30  ;;  %v883_v52 = vrot.slane %v864_v29, 4 }
 0x29c   :  { %v882_v32 = vsel %vm227_vm1, %v881_v33, %v864_v29  ;;  %v946_v16 = vpack.c.bf16 %v888_v44, %v888_v44  ;;  %v935_v31 = vrot.slane %v930_v36, 4  ;;  %v950_v38 = vpack.c.bf16 %v942_v50, %v942_v50 }
 0x29d   :  { %v1305_v39 = vsel %vm1265_vm11, %v945_v8, 0  ;;  %v943_v57 = vpack.c.bf16 %v882_v32, %v882_v32  ;;  %v884_v58 = vsel %vm227_vm1, %v876_v25, %v883_v52  ;;  %v937_v37 = vrot.slane %v918_v6, 4 }
 0x29e   :  { %1314 = vmatpush.bf16.msrb.mxu1 %v1305_v39  ;;  %v1324_v1 = vsel %vm1265_vm11, %v946_v16, 0  ;;  %v936_v2 = vsel %vm227_vm1, %v935_v31, %v918_v6  ;;  %v1400_v28 = vsel %vm1265_vm11, %v950_v38, 0  ;;  %v944_v20 = vpack.c.bf16 %v884_v58, %v884_v58 }
 0x29f   :  { %v1267_v55 = vsel %vm1265_vm11, %v943_v57, 0  ;;  %1333 = vmatpush.bf16.msrb.mxu2 %v1324_v1  ;;  %v947_v12 = vpack.c.bf16 %v936_v2, %v936_v2  ;;  %v938_v60 = vsel %vm227_vm1, %v930_v36, %v937_v37 }
 0x2a0   :  { %1276 = vmatpush.bf16.msra.mxu3 %v1267_v55  ;;  %v1286_v17 = vsel %vm1265_vm11, %v944_v20, 0  ;;  %v948_v18 = vpack.c.bf16 %v938_v60, %v938_v60 }
 0x2a1   :  { %v1343_v10 = vsel %vm1265_vm11, %v947_v12, 0  ;;  %1295 = vmatpush.bf16.msrb.mxu0 %v1286_v17 }
 0x2a2   :  { %1390 = vmatpush.bf16.msra.mxu1 %v1381_v0  ;;  %v1362_v22 = vsel %vm1265_vm11, %v948_v18, 0 }
 0x2a3   :  { %1409 = vmatpush.bf16.msra.mxu2 %v1400_v28 }
 0x2a4   :  { %1352 = vmatpush.bf16.msrb.mxu3 %v1343_v10 }
 0x2a5   :  { %1371 = vmatpush.bf16.msra.mxu0 %v1362_v22 }
 0x2cc   :  { %v1222_v49 = vpop.xlane.xlu2 %1221 }
 0x2cd   :  { %2094 = vrcp.f32 %v1222_v49 }
 0x2d3   :  { %v2095_v4 = vpop.eup %2094 }
 0x2d4   :  { %v1248_v24 = vmul.f32 %v2095_v4, %v2796_v43 }
 0x2d6   :  { %v1256_v14 = vpack.c.bf16 %v1248_v24, %v1248_v24  ;;  %v1216_v15 = vpop.xlane.xlu0 %1215  ;;  %v2062_v24 = vld [vmem:[%s3143_s10] ss:$0 sm:$0xff] }
 0x2d7   :  { %2096 = vrcp.f32 %v1216_v15 }
 0x2d8   :  { %v1225_v34 = vpop.xlane.xlu1 %1224  ;;  %2005 = vmatmul.msk.bf16.vlgmr.msrb.gmra.mxu1 %vm951_vm2, %v1256_v14 }
 0x2d9   :  { %2098 = vrcp.f32 %v1225_v34 }
 0x2dd   :  { %v2097_v23 = vpop.eup %2096 }
 0x2de   :  { %v1246_v45 = vmul.f32 %v2097_v23, %v2801_v35  ;;  %v1219_v6 = vpop.xlane.xlu0 %1218  ;;  %v1234_v11 = vpop.xlane.xlu2 %1233  ;;  %v2063_v23 = vld [vmem:[%s3144_s11] ss:$0 sm:$0xff] }
 0x2df   :  { %v2099_v5 = vpop.eup %2098  ;;  %2100 = vrcp.f32 %v1219_v6 }
 0x2e0   :  { %v1254_v13 = vpack.c.bf16 %v1246_v45, %v1246_v45  ;;  %v1249_v25 = vmul.f32 %v2099_v5, %v2805_v42  ;;  %2102 = vrcp.f32 %v1234_v11  ;;  %v2064_v11 = vld [vmem:[%s3143_s10 + $0x2] ss:$0 sm:$0xff] }
 0x2e2   :  { %v1257_v29 = vpack.c.bf16 %v1249_v25, %v1249_v25  ;;  %2003 = vmatmul.msk.bf16.vlgmr.msra.gmra.mxu3 %vm951_vm2, %v1254_v13 }
 0x2e4   :  { %2006 = vmatmul.msk.bf16.vlgmr.msrb.gmra.mxu2 %vm951_vm2, %v1257_v29  ;;  %v2065_v29 = vld [vmem:[%s3144_s11 + $0x2] ss:$0 sm:$0xff] }
 0x2e5   :  { %v2101_v43 = vpop.eup %2100 }
 0x2e6   :  { %v2103_v53 = vpop.eup %2102  ;;  %v1247_v54 = vmul.f32 %v2101_v43, %v2809_v47  ;;  %v1426_v30 = vpop.permute.xlu2 %1425 }
 0x2e7   :  { %v1228_v63 = vpop.xlane.xlu1 %1227  ;;  %v1252_v35 = vmul.f32 %v2103_v53, %v2811_v59  ;;  %v1428_v0 = vperm.slane %v1426_v30, 0 }
 0x2e8   :  { %2104 = vrcp.f32 %v1228_v63  ;;  %v1255_v33 = vpack.c.bf16 %v1247_v54, %v1247_v54  ;;  %v1237_v36 = vpop.xlane.xlu0 %1236 }
 0x2e9   :  { %v1260_v8 = vpack.c.bf16 %v1252_v35, %v1252_v35  ;;  %v1430_v42 = vmul.f32 %v1428_v0, %v2752_v26  ;;  %2106 = vrcp.f32 %v1237_v36 }
 0x2ea   :  { %2004 = vmatmul.msk.bf16.vlgmr.msrb.gmra.mxu0 %vm951_vm2, %v1255_v33 }
 0x2eb   :  { %v1434_v44 = vperm.slane %v1430_v42, 0  ;;  %2009 = vmatmul.msk.bf16.vlgmr.msra.gmra.mxu1 %vm951_vm2, %v1260_v8 }
 0x2ed   :  { %v1441_v47 = vmul.f32 %v1434_v44, %v2788_v46 }
 0x2ee   :  { %v2105_v50 = vpop.eup %2104 }
 0x2ef   :  { %v1250_v52 = vmul.f32 %v2105_v50, %v2818_v3  ;;  %v1231_v32 = vpop.xlane.xlu1 %1230  ;;  %v2107_v59 = vpop.eup %2106  ;;  %v1457_v16 = vsel %vm951_vm2, %v1441_v47, 0.0 }
 0x2f0   :  { %2108 = vrcp.f32 %v1231_v32  ;;  %v1253_v38 = vmul.f32 %v2107_v59, %v2822_v40  ;;  %1458 = vadd.xlane.f32.xlu2 %v1457_v16 }
 0x2f1   :  { %v1258_v31 = vpack.c.bf16 %v1250_v52, %v1250_v52 }
 0x2f2   :  { %v1261_v26 = vpack.c.bf16 %v1253_v38, %v1253_v38 }
 0x2f3   :  { %2007 = vmatmul.msk.bf16.vlgmr.msrb.gmra.mxu3 %vm951_vm2, %v1258_v31  ;;  %v2066_v31 = vld [vmem:[%s3143_s10 + $0x3] ss:$0 sm:$0xff] }
 0x2f4   :  { %2010 = vmatmul.msk.bf16.vlgmr.msra.gmra.mxu2 %vm951_vm2, %v1261_v26 }
 0x2f6   :  { %v2109_v39 = vpop.eup %2108 }
 0x2f7   :  { %v1251_v57 = vmul.f32 %v2109_v39, %v2826_v56  ;;  %v1443_v56 = vmul.f32 %v1434_v44, %v2767_v27  ;;  %v1442_v27 = vmul.f32 %v1434_v44, %v2775_v51 }
 0x2f9   :  { %v1259_v46 = vpack.c.bf16 %v1251_v57, %v1251_v57  ;;  %v1463_v55 = vsel %vm951_vm2, %v1443_v56, 0.0  ;;  %v1460_v18 = vsel %vm951_vm2, %v1442_v27, 0.0 }
 0x2fb   :  { %2008 = vmatmul.msk.bf16.vlgmr.msra.gmra.mxu0 %vm951_vm2, %v1259_v46  ;;  %v1420_v3 = vpop.permute.xlu0 %1419  ;;  %v2067_v46 = vld [vmem:[%s3144_s11 + $0x3] ss:$0 sm:$0xff] }
 0x2fc   :  { %v1422_v58 = vperm.slane %v1420_v3, 0 }
 0x2fe   :  { %v1429_v37 = vmul.f32 %v1422_v58, %v2737_v48 }
 0x300   :  { %v1433_v1 = vperm.slane %v1429_v37, 0 }
 0x302   :  { %v1437_v2 = vmul.f32 %v1433_v1, %v2760_v9  ;;  %v1439_v40 = vmul.f32 %v1433_v1, %v2740_v19  ;;  %v1440_v12 = vmul.f32 %v1433_v1, %v2747_v62  ;;  %v1444_v9 = vmul.f32 %v1434_v44, %v2779_v7 }
 0x303   :  { %v1438_v60 = vmul.f32 %v1433_v1, %v2743_v21 }
 0x304   :  { %v1445_v28 = vsel %vm951_vm2, %v1437_v2, 0.0  ;;  %v1451_v20 = vsel %vm951_vm2, %v1439_v40, 0.0  ;;  %v1454_v48 = vsel %vm951_vm2, %v1440_v12, 0.0  ;;  %v1466_v19 = vsel %vm951_vm2, %v1444_v9, 0.0 }
 0x305   :  { %1446 = vadd.xlane.f32.xlu0 %v1445_v28  ;;  %1452 = vadd.xlane.f32.xlu1 %v1451_v20  ;;  %v1448_v17 = vsel %vm951_vm2, %v1438_v60, 0.0 }
 0x30d   :  { %1464 = vadd.xlane.f32.xlu1 %v1463_v55 }
 0x315   :  { %1455 = vadd.xlane.f32.xlu1 %v1454_v48 }
 0x31d   :  { %1467 = vadd.xlane.f32.xlu1 %v1466_v19 }
 0x325   :  { %1449 = vadd.xlane.f32.xlu1 %v1448_v17 }
 0x32d   :  { %1461 = vadd.xlane.f32.xlu1 %v1460_v18 }
 0x355   :  { %v2958_v10 = vpop.f32.mrf.mxu1 }
 0x35d   :  { %v1318_v62 = vpop.f32.mrf.mxu1 }
 0x363   :  { %v1459_v51 = vpop.xlane.xlu2 %1458 }
 0x364   :  { %v1489_v45 = vmul.f32 %v2062_v24, %v1459_v51 }
 0x365   :  { %v2960_v22 = vpop.f32.mrf.mxu3 }
 0x366   :  { %v1513_v5 = vadd.f32 %v2063_v23, %v1489_v45 }
 0x367   :  { %v2962_v49 = vpop.f32.mrf.mxu0  ;;  %v2964_v7 = vpop.f32.mrf.mxu2 }
 0x368   :  { %v2966_v4 = vpop.f32.mrf.mxu1  ;;  %v2015_v63 = vmul.f32 -1.442695, %v1513_v5 }
 0x36a   :  { %2110 = vpow2.f32 %v2015_v63 }
 0x36d   :  { %v1280_v21 = vpop.f32.mrf.mxu3 }
 0x36f   :  { %v1299_v14 = vpop.f32.mrf.mxu0  ;;  %v1337_v15 = vpop.f32.mrf.mxu2 }
 0x370   :  { %v1394_v34 = vpop.f32.mrf.mxu1  ;;  %v2111_v32 = vpop.eup %2110 }
 0x371   :  { %v2989_v39 = vadd.f32 1.0, %v2111_v32 }
 0x376   :  { %v2974_v6 = vpop.f32.mrf.mxu3 }
 0x377   :  { %v2981_v25 = vpop.f32.mrf.mxu2 }
 0x378   :  { %v2979_v13 = vpop.f32.mrf.mxu0  ;;  %v1447_v43 = vpop.xlane.xlu0 %1446 }
 0x379   :  { %v1453_v53 = vpop.xlane.xlu1 %1452  ;;  %v1485_v54 = vmul.f32 %v2062_v24, %v1447_v43 }
 0x37a   :  { %v1487_v30 = vmul.f32 %v2064_v11, %v1453_v53  ;;  %v2069_v53 = vld [vmem:[%s3144_s11 + $0x1] ss:$0 sm:$0xff]  ;;  %s2309_s11 = smov 24  }
 0x37b   :  { %v1509_v35 = vadd.f32 %v2063_v23, %v1485_v54  ;;  %v2068_v23 = vld [vmem:[%s3143_s10 + $0x1] ss:$0 sm:$0xff]  ;;  %s2308_s10 = smov 16  }
 0x37c   :  { %v1511_v0 = vadd.f32 %v2065_v29, %v1487_v30 }
 0x37d   :  { %v2011_v33 = vmul.f32 -1.442695, %v1509_v35 }
 0x37e   :  { %v2013_v36 = vmul.f32 -1.442695, %v1511_v0  ;;  %v1356_v8 = vpop.f32.mrf.mxu3 }
 0x37f   :  { %2112 = vpow2.f32 %v2011_v33  ;;  %v1413_v44 = vpop.f32.mrf.mxu2 }
 0x380   :  { %v1375_v42 = vpop.f32.mrf.mxu0  ;;  %2114 = vpow2.f32 %v2013_v36 }
 0x381   :  { %v1465_v50 = vpop.xlane.xlu1 %1464 }
 0x382   :  { %v1491_v47 = vmul.f32 %v2064_v11, %v1465_v50 }
 0x384   :  { %v1515_v52 = vadd.f32 %v2065_v29, %v1491_v47 }
 0x385   :  { %v2113_v59 = vpop.eup %2112 }
 0x386   :  { %v2017_v16 = vmul.f32 -1.442695, %v1515_v52  ;;  %v2115_v38 = vpop.eup %2114  ;;  %v1541_v26 = vadd.f32 1.0, %v2113_v59 }
 0x387   :  { %v1543_v57 = vadd.f32 1.0, %v2115_v38 }
 0x388   :  { %2116 = vpow2.f32 %v2017_v16  ;;  %v1558_v60 = vand.u32 2147483647, %v1541_v26  ;;  %v1560_v17 = vand.u32 2147483648, %v1541_v26  ;;  %vm1554_vm14 = vweird.f32 %v1541_v26 }
 0x389   :  { %2118 = vrcp.f32 %v1541_v26  ;;  %v1456_v3 = vpop.xlane.xlu1 %1455  ;;  %v1590_v21 = vand.u32 2147483648, %v1543_v57  ;;  %v1588_v51 = vand.u32 2147483647, %v1543_v57  ;;  %vm1584_vm15 = vweird.f32 %v1543_v57 }
 0x38a   :  { %2120 = vrcp.f32 %v1543_v57  ;;  %v1488_v58 = vmul.f32 %v2066_v31, %v1456_v3  ;;  %vm1559_vm4 = vcmp.eq.f32.partialorder %v1558_v60, 8.507059e+37  ;;  %v1561_v29 = vor.u32 1.1754944e-38, %v1560_v17 }
 0x38b   :  { %2122 = vrcp.f32 %v2989_v39  ;;  %v1591_v30 = vor.u32 1.1754944e-38, %v1590_v21  ;;  %vm1589_vm6 = vcmp.eq.f32.partialorder %v1588_v51, 8.507059e+37 }
 0x38c   :  { %v1512_v37 = vadd.f32 %v2067_v46, %v1488_v58 }
 0x38e   :  { %v2117_v1 = vpop.eup %2116  ;;  %v2014_v2 = vmul.f32 -1.442695, %v1512_v37 }
 0x38f   :  { %v2119_v40 = vpop.eup %2118  ;;  %v2995_v28 = vadd.f32 1.0, %v2117_v1 }
 0x390   :  { %v2121_v20 = vpop.eup %2120  ;;  %2124 = vpow2.f32 %v2014_v2  ;;  %v1550_v56 = vmul.f32 %v2119_v40, %v1541_v26  ;;  %vm1555_vm12 = vweird.f32 %v2119_v40 }
 0x391   :  { %2126 = vrcp.f32 %v2995_v28  ;;  %v1468_v55 = vpop.xlane.xlu1 %1467  ;;  %v1580_v12 = vmul.f32 %v2121_v20, %v1543_v57  ;;  %v2998_v48 = vpop.eup %2122  ;;  %vm1585_vm13 = vweird.f32 %v2121_v20  ;;  %vm1556_vm3 = vmor %vm1554_vm14, %vm1555_vm12  ;;  %v1650_v50 = vand.u32 2147483648, %v2995_v28 }
 0x392   :  { %v1492_v9 = vmul.f32 %v2066_v31, %v1468_v55  ;;  %v1551_v19 = vsub.f32 1.0, %v1550_v56  ;;  %v1610_v14 = vmul.f32 %v2998_v48, %v2989_v39  ;;  %vm1586_vm5 = vmor %vm1584_vm15, %vm1585_vm13  ;;  %v1648_v32 = vand.u32 2147483647, %v2995_v28 }
 0x393   :  { %v1581_v27 = vsub.f32 1.0, %v1580_v12  ;;  %vm1644_vm8 = vweird.f32 %v2995_v28  ;;  %vm1615_vm11 = vweird.f32 %v2998_v48  ;;  %vm1614_vm12 = vweird.f32 %v2989_v39 }
 0x394   :  { %v1516_v18 = vadd.f32 %v2067_v46, %v1492_v9  ;;  %v1552_v62 = vmul.f32 %v2119_v40, %v1551_v19  ;;  %v1611_v44 = vsub.f32 1.0, %v1610_v14  ;;  %v1651_v46 = vor.u32 1.1754944e-38, %v1650_v50  ;;  %vm3025_vm14 = vmor %vm1614_vm12, %vm1615_vm11 }
 0x395   :  { %v1582_v24 = vmul.f32 %v2121_v20, %v1581_v27  ;;  %vm1649_vm10 = vcmp.eq.f32.partialorder %v1648_v32, 8.507059e+37  ;;  %v1620_v56 = vand.u32 2147483648, %v2989_v39 }
 0x396   :  { %v2125_v15 = vpop.eup %2124  ;;  %v2018_v34 = vmul.f32 -1.442695, %v1516_v18  ;;  %v1553_v45 = vadd.f32 %v2119_v40, %v1552_v62  ;;  %v1612_v38 = vmul.f32 %v2998_v48, %v1611_v44 }
 0x397   :  { %v2127_v11 = vpop.eup %2126  ;;  %v3005_v5 = vadd.f32 1.0, %v2125_v15  ;;  %v1583_v43 = vadd.f32 %v2121_v20, %v1582_v24  ;;  %v1621_v24 = vor.u32 1.1754944e-38, %v1620_v56 }
 0x398   :  { %2128 = vpow2.f32 %v2018_v34  ;;  %v1557_v54 = vsel %vm1556_vm3, %v2119_v40, %v1553_v45  ;;  %v1640_v63 = vmul.f32 %v2127_v11, %v2995_v28  ;;  %vm1645_vm7 = vweird.f32 %v2127_v11 }
 0x399   :  { %2130 = vrcp.f32 %v3005_v5  ;;  %v1450_v35 = vpop.xlane.xlu1 %1449  ;;  %v1562_v0 = vsel %vm1559_vm4, %v1561_v29, %v1557_v54  ;;  %v1587_v33 = vsel %vm1586_vm5, %v2121_v20, %v1583_v43  ;;  %vm1646_vm9 = vmor %vm1644_vm8, %vm1645_vm7  ;;  %v1613_v40 = vadd.f32 %v2998_v48, %v1612_v38 }
 0x39a   :  { %v1486_v36 = vmul.f32 %v2068_v23, %v1450_v35  ;;  %1671 = vperm.xlu2 %2041, %v1562_v0   ;;  %v1592_v8 = vsel %vm1589_vm6, %v1591_v30, %v1587_v33  ;;  %v1641_v42 = vsub.f32 1.0, %v1640_v63  ;;  %v1618_v20 = vand.u32 2147483647, %v2989_v39 }
 0x39b   :  { %1681 = vperm.xlu1 %2058, %v1592_v8   ;;  %v1605_v55 = vand.u32 2147483648, %v3005_v5  ;;  %v1603_v19 = vand.u32 2147483647, %v3005_v5  ;;  %v1617_v18 = vsel %vm3025_vm14, %v2998_v48, %v1613_v40  ;;  %vm1599_vm15 = vweird.f32 %v3005_v5 }
 0x39c   :  { %v1510_v47 = vadd.f32 %v2069_v53, %v1486_v36  ;;  %v1642_v52 = vmul.f32 %v2127_v11, %v1641_v42  ;;  %vm1619_vm3 = vcmp.eq.f32.partialorder %v1618_v20, 8.507059e+37 }
 0x39d   :  { %v1606_v51 = vor.u32 1.1754944e-38, %v1605_v55  ;;  %vm1604_vm5 = vcmp.eq.f32.partialorder %v1603_v19, 8.507059e+37  ;;  %v1622_v34 = vsel %vm1619_vm3, %v1621_v24, %v1617_v18 }
 0x39e   :  { %v2129_v59 = vpop.eup %2128  ;;  %v2012_v16 = vmul.f32 -1.442695, %v1510_v47  ;;  %v1643_v31 = vadd.f32 %v2127_v11, %v1642_v52 }
 0x39f   :  { %v2131_v26 = vpop.eup %2130  ;;  %v1548_v57 = vadd.f32 1.0, %v2129_v59 }
 0x3a0   :  { %2132 = vpow2.f32 %v2012_v16  ;;  %v1647_v3 = vsel %vm1646_vm9, %v2127_v11, %v1643_v31  ;;  %v1595_v58 = vmul.f32 %v2131_v26, %v3005_v5  ;;  %vm1600_vm13 = vweird.f32 %v2131_v26 }
 0x3a1   :  { %2134 = vrcp.f32 %v1548_v57  ;;  %v1462_v37 = vpop.xlane.xlu1 %1461  ;;  %v1652_v1 = vsel %vm1649_vm10, %v1651_v46, %v1647_v3  ;;  %vm1601_vm4 = vmor %vm1599_vm15, %vm1600_vm13  ;;  %v1665_v48 = vand.u32 2147483648, %v1548_v57  ;;  %v1663_v5 = vand.u32 2147483647, %v1548_v57 }
 0x3a2   :  { %v1490_v2 = vmul.f32 %v2068_v23, %v1462_v37  ;;  %1701 = vperm.xlu0 %2042, %v1652_v1   ;;  %v1596_v28 = vsub.f32 1.0, %v1595_v58  ;;  %vm1659_vm7 = vweird.f32 %v1548_v57 }
 0x3a3   :  { %v1666_v30 = vor.u32 1.1754944e-38, %v1665_v48  ;;  %vm1664_vm9 = vcmp.eq.f32.partialorder %v1663_v5, 8.507059e+37 }
 0x3a4   :  { %v1514_v12 = vadd.f32 %v2069_v53, %v1490_v2  ;;  %v1597_v9 = vmul.f32 %v2131_v26, %v1596_v28 }
 0x3a6   :  { %v2133_v17 = vpop.eup %2132  ;;  %v2016_v27 = vmul.f32 -1.442695, %v1514_v12  ;;  %v1598_v62 = vadd.f32 %v2131_v26, %v1597_v9 }
 0x3a7   :  { %v2135_v39 = vpop.eup %2134  ;;  %v1542_v21 = vadd.f32 1.0, %v2133_v17 }
 0x3a8   :  { %2136 = vpow2.f32 %v2016_v27  ;;  %v1602_v14 = vsel %vm1601_vm4, %v2131_v26, %v1598_v62  ;;  %v1655_v15 = vmul.f32 %v2135_v39, %v1548_v57  ;;  %vm1660_vm6 = vweird.f32 %v2135_v39 }
 0x3a9   :  { %2138 = vrcp.f32 %v1542_v21  ;;  %v1607_v23 = vsel %vm1604_vm5, %v1606_v51, %v1602_v14  ;;  %vm1661_vm8 = vmor %vm1659_vm7, %vm1660_vm6  ;;  %v1575_v36 = vand.u32 2147483648, %v1542_v21  ;;  %v1573_v42 = vand.u32 2147483647, %v1542_v21 }
 0x3aa   :  { %1691 = vperm.xlu0 %2042, %v1622_v34   ;;  %1686 = vperm.xlu1 %2058, %v1607_v23   ;;  %v1656_v45 = vsub.f32 1.0, %v1655_v15  ;;  %vm1569_vm11 = vweird.f32 %v1542_v21  ;;  %vm1963_vm5 = vcmask 130048   ;;  %vm1966_vm6 = vcmask 195584  }
 0x3ab   :  { %v1576_v47 = vor.u32 1.1754944e-38, %v1575_v36  ;;  %vm1574_vm13 = vcmp.eq.f32.partialorder %v1573_v42, 8.507059e+37 }
 0x3ac   :  { %v1657_v11 = vmul.f32 %v2135_v39, %v1656_v45 }
 0x3ae   :  { %v2137_v29 = vpop.eup %2136  ;;  %v1658_v43 = vadd.f32 %v2135_v39, %v1657_v11 }
 0x3af   :  { %v2139_v53 = vpop.eup %2138  ;;  %v1546_v54 = vadd.f32 1.0, %v2137_v29 }
 0x3b0   :  { %v1662_v63 = vsel %vm1661_vm8, %v2135_v39, %v1658_v43  ;;  %v1565_v35 = vmul.f32 %v2139_v53, %v1542_v21  ;;  %vm1570_vm10 = vweird.f32 %v2139_v53 }
 0x3b1   :  { %2140 = vrcp.f32 %v1546_v54  ;;  %v1667_v0 = vsel %vm1664_vm9, %v1666_v30, %v1662_v63  ;;  %vm1571_vm12 = vmor %vm1569_vm11, %vm1570_vm10  ;;  %v1635_v31 = vand.u32 2147483648, %v1546_v54  ;;  %v1633_v26 = vand.u32 2147483647, %v1546_v54 }
 0x3b2   :  { %1706 = vperm.xlu1 %2058, %v1667_v0   ;;  %v1566_v33 = vsub.f32 1.0, %v1565_v35  ;;  %vm1629_vm15 = vweird.f32 %v1546_v54 }
 0x3b3   :  { %v1636_v46 = vor.u32 1.1754944e-38, %v1635_v31  ;;  %vm1634_vm4 = vcmp.eq.f32.partialorder %v1633_v26, 8.507059e+37 }
 0x3b4   :  { %v1567_v8 = vmul.f32 %v2139_v53, %v1566_v33 }
 0x3b6   :  { %v1568_v44 = vadd.f32 %v2139_v53, %v1567_v8 }
 0x3b7   :  { %v2141_v50 = vpop.eup %2140 }
 0x3b8   :  { %v1572_v52 = vsel %vm1571_vm12, %v2139_v53, %v1568_v44  ;;  %v1625_v32 = vmul.f32 %v2141_v50, %v1546_v54  ;;  %vm1630_vm14 = vweird.f32 %v2141_v50 }
 0x3b9   :  { %v1577_v59 = vsel %vm1574_vm13, %v1576_v47, %v1572_v52  ;;  %vm1631_vm3 = vmor %vm1629_vm15, %vm1630_vm14 }
 0x3ba   :  { %1676 = vperm.xlu0 %2042, %v1577_v59   ;;  %v1626_v16 = vsub.f32 1.0, %v1625_v32 }
 0x3bc   :  { %v1627_v38 = vmul.f32 %v2141_v50, %v1626_v16 }
 0x3be   :  { %v1628_v57 = vadd.f32 %v2141_v50, %v1627_v38 }
 0x3c0   :  { %v1632_v3 = vsel %vm1631_vm3, %v2141_v50, %v1628_v57 }
 0x3c1   :  { %v1637_v58 = vsel %vm1634_vm4, %v1636_v46, %v1632_v3 }
 0x3c2   :  { %1696 = vperm.xlu2 %2041, %v1637_v58  }
 0x3f4   :  { %v1672_v2 = vpop.permute.xlu2 %1671 }
 0x3f5   :  { %v1709_v19 = vmul.f32 %v1672_v2, %v2960_v22 }
 0x3f7   :  { %v1719_v39 = vrot.slane %v1709_v19, 4 }
 0x40d   :  { %v1682_v1 = vpop.permute.xlu1 %1681 }
 0x40e   :  { %v1711_v55 = vmul.f32 %v1682_v1, %v2958_v10 }
 0x410   :  { %v1717_v18 = vrot.slane %v1711_v55, 4  ;;  %v1720_v51 = vsel %vm227_vm1, %v1711_v55, %v1719_v39 }
 0x411   :  { %v1728_v48 = vperm.slane %v1720_v51, %v2442_v41 }
 0x412   :  { %v1718_v10 = vsel %vm227_vm1, %v1717_v18, %v1709_v19 }
 0x413   :  { %v1724_v45 = vperm.slane %v1718_v10, %v2442_v41  ;;  %v1755_v33 = vrot.slane %v1728_v48, 4 }
 0x414   :  { %v1702_v37 = vpop.permute.xlu0 %1701 }
 0x415   :  { %v1715_v56 = vmul.f32 %v1702_v37, %v2966_v4  ;;  %v1743_v44 = vrot.slane %v1724_v45, 4 }
 0x417   :  { %v1773_v60 = vrot.slane %v1715_v56, 4 }
 0x41c   :  { %v1692_v40 = vpop.permute.xlu0 %1691  ;;  %v1687_v20 = vpop.permute.xlu1 %1686 }
 0x41d   :  { %v1713_v28 = vmul.f32 %v1692_v40, %v2974_v6  ;;  %v1697_v9 = vpop.permute.xlu2 %1696  ;;  %v1712_v14 = vmul.f32 %v1687_v20, %v2964_v7 }
 0x41e   :  { %v1714_v27 = vmul.f32 %v1697_v9, %v2979_v13 }
 0x41f   :  { %v1775_v12 = vrot.slane %v1713_v28, 4  ;;  %v1774_v62 = vsel %vm227_vm1, %v1773_v60, %v1713_v28  ;;  %v1729_v53 = vrot.slane %v1712_v14, 4 }
 0x420   :  { %v1787_v24 = vrot.slane %v1714_v27, 4  ;;  %v1780_v22 = vperm.slane %v1774_v62, %v2442_v41 }
 0x421   :  { %v1776_v17 = vsel %vm227_vm1, %v1715_v56, %v1775_v12 }
 0x422   :  { %v1784_v6 = vperm.slane %v1776_v17, %v2442_v41  ;;  %v1799_v11 = vrot.slane %v1780_v22, 4 }
 0x424   :  { %v1707_v21 = vpop.permute.xlu1 %1706  ;;  %v1811_v34 = vrot.slane %v1784_v6, 4 }
 0x425   :  { %v1716_v4 = vmul.f32 %v1707_v21, %v2981_v25 }
 0x427   :  { %v1785_v15 = vrot.slane %v1716_v4, 4  ;;  %v1788_v13 = vsel %vm227_vm1, %v1716_v4, %v1787_v24 }
 0x428   :  { %v1796_v23 = vperm.slane %v1788_v13, %v2442_v41 }
 0x429   :  { %v1786_v25 = vsel %vm227_vm1, %v1785_v15, %v1714_v27 }
 0x42a   :  { %v1792_v5 = vperm.slane %v1786_v25, %v2442_v41  ;;  %v1809_v29 = vrot.slane %v1796_v23, 4  ;;  %v1812_v43 = vsel %vm227_vm1, %v1796_v23, %v1811_v34 }
 0x42b   :  { %v1820_v7 = vperm.slane %v1812_v43, %v2455_v61 }
 0x42c   :  { %v1677_v54 = vpop.permute.xlu0 %1676  ;;  %v1797_v30 = vrot.slane %v1792_v5, 4  ;;  %v1800_v63 = vsel %vm227_vm1, %v1792_v5, %v1799_v11  ;;  %v1810_v35 = vsel %vm227_vm1, %v1809_v29, %v1784_v6 }
 0x42d   :  { %v1710_v0 = vmul.f32 %v1677_v54, %v2962_v49  ;;  %v1808_v36 = vperm.slane %v1800_v63, %v2455_v61  ;;  %v1816_v8 = vperm.slane %v1810_v35, %v2455_v61  ;;  %v1827_v42 = vrot.slane %v1820_v7, 4 }
 0x42e   :  { %v1798_v50 = vsel %vm227_vm1, %v1797_v30, %v1780_v22 }
 0x42f   :  { %v1730_v47 = vsel %vm227_vm1, %v1729_v53, %v1710_v0  ;;  %v1731_v52 = vrot.slane %v1710_v0, 4  ;;  %v1804_v32 = vperm.slane %v1798_v50, %v2455_v61  ;;  %v1823_v59 = vrot.slane %v1808_v36, 4 }
 0x430   :  { %v1825_v16 = vrot.slane %v1816_v8, 4  ;;  %v1828_v31 = vsel %vm227_vm1, 0.0, %v1827_v42  ;;  %v1736_v26 = vperm.slane %v1730_v47, %v2442_v41  ;;  %v1894_v57 = vsel %vm227_vm1, %v1827_v42, %v1816_v8 }
 0x431   :  { %v1899_v38 = vrot.slane %v1828_v31, 4  ;;  %v1732_v49 = vsel %vm227_vm1, %v1712_v14, %v1731_v52  ;;  %v1821_v46 = vrot.slane %v1804_v32, 4  ;;  %v1824_v3 = vsel %vm227_vm1, 0.0, %v1823_v59 }
 0x432   :  { %v1740_v58 = vperm.slane %v1732_v49, %v2442_v41  ;;  %v1826_v37 = vsel %vm227_vm1, 0.0, %v1825_v16  ;;  %v1888_v1 = vrot.slane %v1824_v3, 4  ;;  %v1741_v2 = vrot.slane %v1736_v26, 4 }
 0x433   :  { %v1744_v40 = vsel %vm227_vm1, %v1736_v26, %v1743_v44  ;;  %v1883_v28 = vsel %vm227_vm1, %v1823_v59, %v1804_v32  ;;  %v1822_v12 = vsel %vm227_vm1, 0.0, %v1821_v46  ;;  %v1898_v24 = vperm.slane %v1894_v57, %v2442_v41 }
 0x434   :  { %v1752_v20 = vperm.slane %v1744_v40, %v2455_v61  ;;  %v1753_v56 = vrot.slane %v1740_v58, 4  ;;  %v1756_v55 = vsel %vm227_vm1, %v1740_v58, %v1755_v33  ;;  %v1742_v9 = vsel %vm227_vm1, %v1741_v2, %v1724_v45 }
 0x435   :  { %v1764_v19 = vperm.slane %v1756_v55, %v2455_v61  ;;  %v1887_v60 = vperm.slane %v1883_v28, %v2442_v41  ;;  %v1889_v17 = vsel %vm227_vm1, %v1888_v1, %v1822_v12  ;;  %v1748_v27 = vperm.slane %v1742_v9, %v2455_v61 }
 0x436   :  { %v1754_v18 = vsel %vm227_vm1, %v1753_v56, %v1728_v48  ;;  %v1767_v62 = vrot.slane %v1752_v20, 4  ;;  %v1893_v39 = vperm.slane %v1889_v17, %v2442_v41  ;;  %v1900_v4 = vsel %vm227_vm1, %v1899_v38, %v1826_v37 }
 0x437   :  { %v1760_v6 = vperm.slane %v1754_v18, %v2455_v61  ;;  %v1771_v21 = vrot.slane %v1764_v19, 4  ;;  %v1765_v10 = vrot.slane %v1748_v27, 4  ;;  %v1904_v22 = vperm.slane %v1900_v4, %v2442_v41 }
 0x438   :  { %v1768_v51 = vsel %vm227_vm1, 0.0, %v1767_v62  ;;  %v1905_v14 = vrot.slane %v1893_v39, 4  ;;  %v1829_v23 = vsel %vm227_vm1, %v1767_v62, %v1748_v27  ;;  %v1907_v44 = vrot.slane %v1887_v60, 4 }
 0x439   :  { %v1769_v15 = vrot.slane %v1760_v6, 4  ;;  %v1772_v13 = vsel %vm227_vm1, 0.0, %v1771_v21  ;;  %v1834_v34 = vrot.slane %v1768_v51, 4  ;;  %v1917_v25 = vrot.slane %v1904_v22, 4 }
 0x43a   :  { %v1845_v45 = vrot.slane %v1772_v13, 4  ;;  %v1906_v48 = vsel %vm227_vm1, %v1905_v14, %v1887_v60  ;;  %v1766_v11 = vsel %vm227_vm1, 0.0, %v1765_v10  ;;  %v1833_v43 = vperm.slane %v1829_v23, %v2442_v41 }
 0x43b   :  { %v1912_v5 = vperm.slane %v1906_v48, %v2455_v61  ;;  %v1770_v29 = vsel %vm227_vm1, 0.0, %v1769_v15  ;;  %v1835_v53 = vsel %vm227_vm1, %v1834_v34, %v1766_v11  ;;  %v1918_v7 = vsel %vm227_vm1, %v1917_v25, %v1898_v24 }
 0x43c   :  { %v1839_v54 = vperm.slane %v1835_v53, %v2442_v41  ;;  %v1840_v30 = vsel %vm227_vm1, %v1771_v21, %v1760_v6  ;;  %v1846_v63 = vsel %vm227_vm1, %v1845_v45, %v1770_v29  ;;  %v1924_v35 = vperm.slane %v1918_v7, %v2455_v61 }
 0x43d   :  { %v1931_v0 = vrot.slane %v1912_v5, 4  ;;  %v1844_v33 = vperm.slane %v1840_v30, %v2442_v41  ;;  %v1850_v36 = vperm.slane %v1846_v63, %v2442_v41  ;;  %v1853_v8 = vrot.slane %v1833_v43, 4 }
 0x43e   :  { %v1851_v42 = vrot.slane %v1839_v54, 4  ;;  %v1919_v50 = vrot.slane %v1898_v24, 4  ;;  %v1929_v47 = vrot.slane %v1924_v35, 4  ;;  %v1908_v1 = vsel %vm227_vm1, %v1893_v39, %v1907_v44 }
 0x43f   :  { %v1932_v52 = vsel %vm227_vm1, %v1924_v35, %v1931_v0  ;;  %v1865_v32 = vrot.slane %v1844_v33, 4  ;;  %v1863_v59 = vrot.slane %v1850_v36, 4  ;;  %v1854_v16 = vsel %vm227_vm1, %v1839_v54, %v1853_v8 }
 0x440   :  { %1941 = vrot.lane.b32.xlu0 %v1932_v52, %s2296_s30  ;;  %v1852_v31 = vsel %vm227_vm1, %v1851_v42, %v1833_v43  ;;  %v1862_v38 = vperm.slane %v1854_v16, %v2455_v61  ;;  %v1920_v3 = vsel %vm227_vm1, %v1904_v22, %v1919_v50  ;;  %v1930_v2 = vsel %vm227_vm1, %v1929_v47, %v1912_v5 }
 0x441   :  { %v1866_v49 = vsel %vm227_vm1, %v1850_v36, %v1865_v32  ;;  %v1858_v41 = vperm.slane %v1852_v31, %v2455_v61  ;;  %v1864_v26 = vsel %vm227_vm1, %v1863_v59, %v1844_v33  ;;  %v1928_v56 = vperm.slane %v1920_v3, %v2455_v61 }
 0x442   :  { %v1874_v57 = vperm.slane %v1866_v49, %v2455_v61  ;;  %v1870_v46 = vperm.slane %v1864_v26, %v2455_v61  ;;  %v1881_v37 = vrot.slane %v1862_v38, 4  ;;  %v1916_v12 = vperm.slane %v1908_v1, %v2455_v61 }
 0x443   :  { %v1877_v58 = vrot.slane %v1858_v41, 4  ;;  %v1933_v60 = vrot.slane %v1928_v56, 4 }
 0x444   :  { %v1879_v40 = vrot.slane %v1874_v57, 4  ;;  %v1875_v28 = vrot.slane %v1870_v46, 4  ;;  %v1882_v19 = vsel %vm227_vm1, %v1874_v57, %v1881_v37  ;;  %v1935_v17 = vrot.slane %v1916_v12, 4 }
 0x445   :  { %v1878_v20 = vsel %vm227_vm1, %v1870_v46, %v1877_v58  ;;  %v1934_v27 = vsel %vm227_vm1, %v1933_v60, %v1916_v12 }
 0x446   :  { %v1880_v55 = vsel %vm227_vm1, %v1879_v40, %v1862_v38  ;;  %1939 = vrot.lane.b32.xlu1 %v1878_v20, %s2296_s30  ;;  %v1876_v9 = vsel %vm227_vm1, %v1875_v28, %v1858_v41  ;;  %v1936_v18 = vsel %vm227_vm1, %v1928_v56, %v1935_v17 }
 0x447   :  { %1947 = vrot.lane.b32.xlu2 %v1880_v55, %s2308_s10 }
 0x448   :  { %1955 = vrot.lane.b32.xlu0 %v1882_v19, %s2309_s11 }
 0x44e   :  { %1949 = vrot.lane.b32.xlu1 %v1934_v27, %s2308_s10 }
 0x44f   :  { %1957 = vrot.lane.b32.xlu2 %v1936_v18, %s2309_s11 }
 0x4a1   :  { %v1948_v39 = vpop.permute.xlu2 %1947 }
 0x4a9   :  { %v1958_v22 = vpop.permute.xlu2 %1957 }
 0x4b2   :  { %v1942_v62 = vpop.permute.xlu0 %1941 }
 0x4b3   :  { %v1962_v10 = vsel %vm951_vm2, %v1930_v2, %v1942_v62 }
 0x4b8   :  { %v1940_v61 = vpop.permute.xlu1 %1939 }
 0x4b9   :  { %v1961_v6 = vsel %vm951_vm2, %v1876_v9, %v1940_v61 }
 0x4ba   :  { %v1964_v21 = vsel %vm1963_vm5, %v1961_v6, %v1948_v39  ;;  %v1956_v24 = vpop.permute.xlu0 %1955 }
 0x4bb   :  { %v1967_v4 = vsel %vm1966_vm6, %v1964_v21, %v1956_v24 }
 0x4bc   :  { %1969 = vst.msk [vmem:[#allocation11] sm:$0xff] %vm134_vm0, %v1967_v4 }
 0x4c0   :  { %v1950_v51 = vpop.permute.xlu1 %1949 }
 0x4c1   :  { %v1965_v14 = vsel %vm1963_vm5, %v1962_v10, %v1950_v51 }
 0x4c2   :  { %v1968_v15 = vsel %vm1966_vm6, %v1965_v14, %v1958_v22 }
 0x4c3   :  { %1970 = vst.msk [vmem:[#allocation11 + $0x8] sm:$0xff] %vm134_vm0, %v1968_v15 }
 0x4c4   :  { %1983 = dma.vmem_to_hbm [thread:$0]  %s1976_s15, 256, %s1978_s9, [#allocation4], %s2295_s29, %s2295_s29, %s2296_s30  }
 0x4c5   :  { %2292 = dma.done.wait [#allocation4], 256  }
 0x4c6   :  { %2293 = vsyncadd [#allocation4], 4294967040 }
 0x4c7   :  { %1988 = vsyncpa [#allocation3], 1 }
 0x4c8   :  { %1989 = vsyncpa [#allocation6], 1 }
 0x4c9   :  { %1990 = vsyncpa [#allocation9], 1 }
 0x4ca   :  { %1991 = vsyncpa [#allocation4], 1 }

// kernel: tpu_custom_call.1
= control target key start
LH: loop header
LB: loop body
LE: loop exit
PB: predicated region body
PF: predicated region fallthrough
CT: control target
= control target key end

     0   :  { %17 = vsyncpa [#allocation3], 0  ;;  %s3133_s0 = inlined_call_operand.hbm [shape: f32[2,8,32], index: 0, kind: input, shape index: {}]   ;;  %s3134_s1 = inlined_call_operand.hbm [shape: f32[2,8,32], index: 1, kind: input, shape index: {}]   ;;  %s3135_s2 = inlined_call_operand.hbm [shape: f32[32,32], index: 2, kind: input, shape index: {}]   ;;  %s3136_s3 = inlined_call_operand.vmem [shape: f32[1,32], index: 3, kind: input, shape index: {}]   ;;  %s3137_s4 = inlined_call_operand.hbm [shape: f32[32,32], index: 4, kind: input, shape index: {}]   ;;  %s3138_s5 = inlined_call_operand.vmem [shape: f32[1,32], index: 5, kind: input, shape index: {}]   ;;  %s3139_s6 = inlined_call_operand.hbm [shape: f32[32,32], index: 6, kind: input, shape index: {}]   ;;  %s3140_s7 = inlined_call_operand.vmem [shape: f32[1,32], index: 7, kind: input, shape index: {}]   ;;  %s3141_s8 = inlined_call_operand.vmem [shape: f32[2,1,8], index: 8, kind: input, shape index: {}]   ;;  %s3142_s9 = inlined_call_operand.vmem [shape: f32[2,1,1], index: 9, kind: input, shape index: {}]   ;;  %s3143_s10 = inlined_call_operand.vmem [shape: f32[1,4,1,1], index: 10, kind: input, shape index: {}]   ;;  %s3144_s11 = inlined_call_operand.vmem [shape: f32[1,4,1,1], index: 11, kind: input, shape index: {}]   ;;  %s3145_s12 = inlined_call_operand.hbm [shape: f32[2,8,32], index: 12, kind: output, shape index: {}]  }
   0x1   :  { %18 = vsyncpa [#allocation6], 0 }
   0x2   :  { %19 = vsyncpa [#allocation9], 0 }
   0x3   :  { %20 = vsyncpa [#allocation4], 0  ;;  %s38_s23 = sshll.u32 %s3134_s1, 4  ;;  %s2294_s24 = smov [#allocation5]   ;;  %s39_s23 = int_to_ptr.hbm [resolvable:$true] %s38_s23 }
   0x4   :  { %s40_s25 = sshll.u32 %s2294_s24, 4  ;;  %s66_s28 = sshll.u32 %s3137_s4, 4  ;;  %s41_s25 = int_to_ptr.vmem [resolvable:$true] %s40_s25  ;;  %s67_s28 = int_to_ptr.hbm [resolvable:$true] %s66_s28 }
   0x5   :  { %s2295_s29 = smov 128   ;;  %s2296_s30 = smov 8  }
   0x6   :  { %46 = dma.hbm_to_vmem [thread:$0]  %s39_s23, 256, %s41_s25, [#allocation6], %s2295_s29, %s2295_s29, %s2296_s30  }
   0x7   :  { %s2297_s13 = smov [#allocation8]   ;;  %s25_s1 = sshll.u32 %s3133_s0, 4  ;;  %s26_s1 = int_to_ptr.hbm [resolvable:$true] %s25_s1 }
   0x8   :  { %s68_s14 = sshll.u32 %s2297_s13, 4  ;;  %s51_s18 = sshll.u32 %s3135_s2, 4  ;;  %s69_s14 = int_to_ptr.vmem [resolvable:$true] %s68_s14  ;;  %s52_s18 = int_to_ptr.hbm [resolvable:$true] %s51_s18 }
   0x9   :  { %74 = dma.hbm_to_vmem [thread:$0]  %s67_s28, 512, %s69_s14, [#allocation9], %s2295_s29, %s2295_s29, %s2296_s30  }
   0xa   :  { %s2298_s19 = smov [#allocation2]   ;;  %s2299_s21 = smov [#allocation7]  }
   0xb   :  { %s27_s20 = sshll.u32 %s2298_s19, 4  ;;  %s53_s0 = sshll.u32 %s2299_s21, 4  ;;  %s28_s20 = int_to_ptr.vmem [resolvable:$true] %s27_s20  ;;  %s54_s0 = int_to_ptr.vmem [resolvable:$true] %s53_s0 }
   0xc   :  { %33 = dma.hbm_to_vmem [thread:$0]  %s26_s1, 256, %s28_s20, [#allocation3], %s2295_s29, %s2295_s29, %s2296_s30  }
   0xd   :  { %s81_s24 = sshll.u32 %s3139_s6, 4  ;;  %s2300_s2 = smov [#allocation10]   ;;  %s82_s24 = int_to_ptr.hbm [resolvable:$true] %s81_s24 }
   0xe   :  { %59 = dma.hbm_to_vmem [thread:$0]  %s52_s18, 512, %s54_s0, [#allocation6], %s2295_s29, %s2295_s29, %s2296_s30  }
   0xf   :  { %s83_s25 = sshll.u32 %s2300_s2, 4  ;;  %s84_s25 = int_to_ptr.vmem [resolvable:$true] %s83_s25 }
  0x10   :  { %89 = dma.hbm_to_vmem [thread:$0]  %s82_s24, 512, %s84_s25, [#allocation9], %s2295_s29, %s2295_s29, %s2296_s30  }
  0x11   :  { %2286 = dma.done.wait [#allocation3], 256  }
  0x12   :  { %2287 = vsyncadd [#allocation3], 4294967040 }
  0x13   :  { %2288 = dma.done.wait [#allocation6], 768  }
  0x14   :  { %2289 = vsyncadd [#allocation6], 4294966528 }
  0x15   :  { %2290 = dma.done.wait [#allocation9], 1024  }
  0x16   :  { %2291 = vsyncadd [#allocation9], 4294966272  ;;  %v126_v0 = vld [vmem:[#allocation7 + $0x10] sm:$0xff]  ;;  %v127_v1 = vld [vmem:[#allocation7 + $0x18] sm:$0xff]  ;;  %vm134_vm0 = vcmask 261120   ;;  %s2301_s27 = smov 104  }
  0x17   :  { %v181_v2 = vld [vmem:[#allocation10 + $0x10] sm:$0xff]  ;;  %v129_v3 = vpack.c.bf16 %v127_v1, %v126_v0  ;;  %v182_v4 = vld [vmem:[#allocation10 + $0x18] sm:$0xff]  ;;  %v124_v5 = vld [vmem:[#allocation7] sm:$0xff]  ;;  %s2302_s14 = smov 112   ;;  %v2304_v35 = vmov 1983009808  }
  0x18   :  { %v125_v6 = vld [vmem:[#allocation7 + $0x8] sm:$0xff]  ;;  %v184_v7 = vpack.c.bf16 %v182_v4, %v181_v2  ;;  %v179_v8 = vld [vmem:[#allocation10] sm:$0xff]  ;;  %v176_v13 = vld [vmem:[#allocation5] sm:$0xff]  ;;  %v232_v36 = vunpack.c.l.s4 %v2304_v35  ;;  %vm227_vm1 = vcmask 1047556   ;;  %v2305_v45 = vmov 1934713408  }
  0x19   :  { %v180_v9 = vld [vmem:[#allocation10 + $0x8] sm:$0xff]  ;;  %144 = vmatpush.bf16.msra.mxu0 %v129_v3  ;;  %v128_v10 = vpack.c.bf16 %v125_v6, %v124_v5  ;;  %v121_v11 = vld [vmem:[#allocation2] sm:$0xff]  ;;  %v177_v15 = vld [vmem:[#allocation5 + $0x8] sm:$0xff]  ;;  %v256_v46 = vunpack.c.l.s4 %v2305_v45  ;;  %vm951_vm2 = vcmask 64512   ;;  %vm1265_vm11 = vcmask 1043456  }
  0x1a   :  { %v122_v12 = vld [vmem:[#allocation2 + $0x8] sm:$0xff]  ;;  %198 = vmatpush.bf16.msra.mxu2 %v184_v7  ;;  %v183_v14 = vpack.c.bf16 %v180_v9, %v179_v8  ;;  %v178_v17 = vpack.c.bf16 %v177_v15, %v176_v13  ;;  %v2059_v18 = vld [vmem:[%s3136_s3] ss:$0 sm:$0xff]  ;;  %s2303_s3 = smov 120   ;;  %v154_v30 = vld [vmem:[#allocation8 + $0x10] sm:$0xff]  ;;  %v2442_v41 = vunpack.c.0.s8 %v232_v36 }
  0x1b   :  { %v123_v16 = vpack.c.bf16 %v122_v12, %v121_v11  ;;  %v2060_v21 = vld [vmem:[%s3140_s7] ss:$0 sm:$0xff]  ;;  %v155_v31 = vld [vmem:[#allocation8 + $0x18] sm:$0xff]  ;;  %v153_v38 = vld [vmem:[#allocation8 + $0x8] sm:$0xff]  ;;  %v2455_v61 = vunpack.c.0.s8 %v256_v46  ;;  %s2310_s7 = smov [#allocation11]  }
  0x1c   :  { %v157_v33 = vpack.c.bf16 %v155_v31, %v154_v30  ;;  %v152_v37 = vld [vmem:[#allocation8] sm:$0xff]  ;;  %s1975_s15 = sshll.u32 %s2310_s7, 4  ;;  %s1976_s15 = int_to_ptr.vmem [resolvable:$true] %s1975_s15 }
  0x1d   :  { %145 = vmatpush.bf16.msra.mxu0 %v128_v10  ;;  %v156_v39 = vpack.c.bf16 %v153_v38, %v152_v37 }
  0x1e   :  { %199 = vmatpush.bf16.msra.mxu2 %v183_v14  ;;  %168 = vmatpush.bf16.msra.mxu1 %v157_v33 }
  0x20   :  { %1992 = vmatmul.msk.bf16.vlgmr.msra.gmra.mxu0 %vm134_vm0, %v123_v16 }
  0x21   :  { %1994 = vmatmul.msk.bf16.vlgmr.msra.gmra.mxu2 %vm134_vm0, %v178_v17 }
  0x22   :  { %169 = vmatpush.bf16.msra.mxu1 %v156_v39 }
  0x25   :  { %1993 = vmatmul.msk.bf16.vlgmr.msra.gmra.mxu1 %vm134_vm0, %v123_v16 }
  0x9d   :  { %v147_v19 = vpop.f32.mrf.mxu0 }
  0x9e   :  { %v2411_v20 = vadd.f32 %v2059_v18, %v147_v19 }
  0xa0   :  { %469 = vrot.lane.b32.xlu1 %v2411_v20, %s2301_s27  ;;  %v477_v51 = vrot.slane %v2411_v20, 4 }
  0xa4   :  { %v201_v22 = vpop.f32.mrf.mxu2 }
  0xa5   :  { %v202_v23 = vadd.f32 %v2060_v21, %v201_v22  ;;  %v149_v25 = vpop.f32.mrf.mxu0 }
  0xa6   :  { %v2422_v26 = vadd.f32 %v2059_v18, %v149_v25 }
  0xa7   :  { %220 = vrot.lane.b32.xlu2 %v202_v23, %s2301_s27  ;;  %v2036_v24 = vpack.i.bf16 %v202_v23, %v2411_v20  ;;  %v229_v40 = vrot.slane %v202_v23, 4 }
  0xa8   :  { %214 = vrot.lane.b32.xlu1 %v202_v23, %s2302_s14  ;;  %v533_v55 = vrot.slane %v2422_v26, 4 }
  0xa9   :  { %2037 = vrot.lane.b32.xlu0 %v2036_v24, %s2303_s3 }
  0xac   :  { %v203_v27 = vpop.f32.mrf.mxu2 }
  0xad   :  { %v2430_v28 = vadd.f32 %v2060_v21, %v203_v27 }
  0xaf   :  { %459 = vrot.lane.b32.xlu2 %v2422_v26, %s2303_s3  ;;  %v285_v59 = vrot.slane %v2430_v28, 4 }
  0xb0   :  { %471 = vrot.lane.b32.xlu1 %v2422_v26, %s2301_s27 }
  0xb1   :  { %463 = vrot.lane.b32.xlu0 %v2411_v20, %s2302_s14 }
  0xb7   :  { %210 = vrot.lane.b32.xlu2 %v2430_v28, %s2303_s3 }
  0xb8   :  { %222 = vrot.lane.b32.xlu1 %v2430_v28, %s2301_s27 }
  0xb9   :  { %465 = vrot.lane.b32.xlu0 %v2422_v26, %s2302_s14 }
  0xc1   :  { %216 = vrot.lane.b32.xlu0 %v2430_v28, %s2302_s14 }
 0x101   :  { %v221_v29 = vpop.permute.xlu2 %220 }
 0x102   :  { %v239_v48 = vrot.slane %v221_v29, 4 }
 0x109   :  { %v2440_v34 = vpop.permute.xlu2 %459 }
 0x10a   :  { %v545_v1 = vrot.slane %v2440_v34, 4 }
 0x111   :  { %v2453_v60 = vpop.permute.xlu2 %210 }
 0x112   :  { %v470_v32 = vpop.permute.xlu1 %469  ;;  %v297_v9 = vrot.slane %v2453_v60, 4 }
 0x113   :  { %v487_v52 = vrot.slane %v470_v32, 4 }
 0x11a   :  { %v215_v42 = vpop.permute.xlu1 %214 }
 0x11b   :  { %v226_v43 = vrot.slane %v215_v42, 4  ;;  %v230_v44 = vsel %vm227_vm1, %v215_v42, %v229_v40  ;;  %v2038_v47 = vpop.permute.xlu0 %2037 }
 0x11c   :  { %v2040_v49 = vunpack.i.h.bf16 %v2038_v47  ;;  %v2039_v50 = vunpack.i.l.bf16 %v2038_v47  ;;  %v238_v54 = vperm.slane %v230_v44, %v2442_v41 }
 0x11d   :  { %v228_v53 = vsel %vm227_vm1, %v226_v43, %v202_v23 }
 0x11e   :  { %v234_v56 = vperm.slane %v228_v53, %v2442_v41  ;;  %v240_v57 = vsel %vm227_vm1, %v239_v48, %v2040_v49  ;;  %v241_v58 = vrot.slane %v2040_v49, 4  ;;  %v488_v63 = vsel %vm227_vm1, %v487_v52, %v2039_v50 }
 0x11f   :  { %v246_v62 = vperm.slane %v240_v57, %v2442_v41  ;;  %v489_v0 = vrot.slane %v2039_v50, 4  ;;  %v494_v4 = vperm.slane %v488_v63, %v2442_v41  ;;  %v265_v5 = vrot.slane %v238_v54, 4 }
 0x120   :  { %v253_v2 = vrot.slane %v234_v56, 4  ;;  %v242_v3 = vsel %vm227_vm1, %v221_v29, %v241_v58 }
 0x121   :  { %v250_v6 = vperm.slane %v242_v3, %v2442_v41  ;;  %v251_v7 = vrot.slane %v246_v62, 4  ;;  %v490_v8 = vsel %vm227_vm1, %v470_v32, %v489_v0  ;;  %v499_v12 = vrot.slane %v494_v4, 4 }
 0x122   :  { %v254_v10 = vsel %vm227_vm1, %v246_v62, %v253_v2  ;;  %v498_v11 = vperm.slane %v490_v8, %v2442_v41  ;;  %v472_v13 = vpop.permute.xlu1 %471 }
 0x123   :  { %v252_v14 = vsel %vm227_vm1, %v251_v7, %v234_v56  ;;  %v262_v15 = vperm.slane %v254_v10, %v2455_v61  ;;  %v263_v16 = vrot.slane %v250_v6, 4  ;;  %v266_v17 = vsel %vm227_vm1, %v250_v6, %v265_v5  ;;  %v464_v18 = vpop.permute.xlu0 %463 }
 0x124   :  { %v258_v19 = vperm.slane %v252_v14, %v2455_v61  ;;  %v274_v21 = vperm.slane %v266_v17, %v2455_v61  ;;  %v511_v22 = vrot.slane %v498_v11, 4  ;;  %v543_v23 = vrot.slane %v472_v13, 4 }
 0x125   :  { %v264_v24 = vsel %vm227_vm1, %v263_v16, %v238_v54  ;;  %v277_v25 = vrot.slane %v262_v15, 4  ;;  %v546_v27 = vsel %vm227_vm1, %v472_v13, %v545_v1  ;;  %v475_v29 = vrot.slane %v464_v18, 4 }
 0x126   :  { %v270_v30 = vperm.slane %v264_v24, %v2455_v61  ;;  %v275_v31 = vrot.slane %v258_v19, 4  ;;  %v281_v32 = vrot.slane %v274_v21, 4  ;;  %v544_v33 = vsel %vm227_vm1, %v543_v23, %v2440_v34 }
 0x127   :  { %v2478_v35 = vsel %vm227_vm1, 0.0, %v277_v25  ;;  %v339_v36 = vsel %vm227_vm1, %v277_v25, %v258_v19  ;;  %v550_v37 = vperm.slane %v544_v33, %v2442_v41  ;;  %v554_v38 = vperm.slane %v546_v27, %v2442_v41 }
 0x128   :  { %v2484_v39 = vsel %vm227_vm1, 0.0, %v275_v31  ;;  %v279_v40 = vrot.slane %v270_v30, 4  ;;  %v2487_v42 = vsel %vm227_vm1, 0.0, %v281_v32  ;;  %v2490_v43 = vperm.slane %v339_v36, %v2442_v41 }
 0x129   :  { %v344_v34 = vrot.slane %v2478_v35, 4  ;;  %v350_v44 = vsel %vm227_vm1, %v281_v32, %v270_v30  ;;  %v355_v45 = vrot.slane %v2487_v42, 4  ;;  %v555_v46 = vrot.slane %v550_v37, 4 }
 0x12a   :  { %v2496_v47 = vsel %vm227_vm1, 0.0, %v279_v40  ;;  %v2499_v48 = vperm.slane %v350_v44, %v2442_v41  ;;  %v567_v49 = vrot.slane %v554_v38, 4  ;;  %v476_v50 = vsel %vm227_vm1, %v475_v29, %v2411_v20  ;;  %v223_v52 = vpop.permute.xlu1 %222 }
 0x12b   :  { %v478_v53 = vsel %vm227_vm1, %v464_v18, %v477_v51  ;;  %v482_v54 = vperm.slane %v476_v50, %v2442_v41  ;;  %v295_v56 = vrot.slane %v223_v52, 4  ;;  %v298_v57 = vsel %vm227_vm1, %v223_v52, %v297_v9  ;;  %v466_v58 = vpop.permute.xlu0 %465 }
 0x12c   :  { %v486_v62 = vperm.slane %v478_v53, %v2442_v41  ;;  %v2508_v63 = vperm.slane %v298_v57, %v2442_v41  ;;  %v531_v0 = vrot.slane %v466_v58, 4  ;;  %v534_v1 = vsel %vm227_vm1, %v466_v58, %v533_v55 }
 0x12d   :  { %v500_v20 = vsel %vm227_vm1, %v499_v12, %v482_v54  ;;  %v501_v2 = vrot.slane %v482_v54, 4  ;;  %v296_v51 = vsel %vm227_vm1, %v295_v56, %v2453_v60  ;;  %v542_v3 = vperm.slane %v534_v1, %v2442_v41 }
 0x12e   :  { %v506_v5 = vperm.slane %v500_v20, %v2455_v61  ;;  %v512_v6 = vsel %vm227_vm1, %v511_v22, %v486_v62  ;;  %v513_v7 = vrot.slane %v486_v62, 4  ;;  %v2520_v8 = vperm.slane %v296_v51, %v2442_v41 }
 0x12f   :  { %v502_v9 = vsel %vm227_vm1, %v494_v4, %v501_v2  ;;  %v518_v55 = vperm.slane %v512_v6, %v2455_v61  ;;  %v319_v10 = vrot.slane %v2508_v63, 4  ;;  %v532_v12 = vsel %vm227_vm1, %v531_v0, %v2422_v26 }
 0x130   :  { %v510_v60 = vperm.slane %v502_v9, %v2455_v61  ;;  %v514_v13 = vsel %vm227_vm1, %v498_v11, %v513_v7  ;;  %v523_v14 = vrot.slane %v506_v5, 4  ;;  %v307_v15 = vrot.slane %v2520_v8, 4 }
 0x131   :  { %v522_v16 = vperm.slane %v514_v13, %v2455_v61  ;;  %v527_v17 = vrot.slane %v518_v55, 4  ;;  %v538_v18 = vperm.slane %v532_v12, %v2442_v41  ;;  %v568_v4 = vsel %vm227_vm1, %v567_v49, %v542_v3 }
 0x132   :  { %v525_v19 = vrot.slane %v510_v60, 4  ;;  %v569_v21 = vrot.slane %v542_v3, 4  ;;  %v574_v22 = vperm.slane %v568_v4, %v2455_v61  ;;  %v524_v26 = vsel %vm227_vm1, 0.0, %v523_v14 }
 0x133   :  { %v528_v23 = vsel %vm227_vm1, 0.0, %v527_v17  ;;  %v529_v24 = vrot.slane %v522_v16, 4  ;;  %v556_v11 = vsel %vm227_vm1, %v555_v46, %v538_v18  ;;  %v557_v25 = vrot.slane %v538_v18, 4  ;;  %v217_v32 = vpop.permute.xlu0 %216 }
 0x134   :  { %v526_v27 = vsel %vm227_vm1, 0.0, %v525_v19  ;;  %v562_v29 = vperm.slane %v556_v11, %v2455_v61  ;;  %v570_v30 = vsel %vm227_vm1, %v554_v38, %v569_v21  ;;  %v583_v31 = vrot.slane %v574_v22, 4 }
 0x135   :  { %v530_v33 = vsel %vm227_vm1, 0.0, %v529_v24  ;;  %v592_v36 = vrot.slane %v526_v27, 4  ;;  %v598_v40 = vsel %vm227_vm1, %v529_v24, %v518_v55  ;;  %v558_v44 = vsel %vm227_vm1, %v550_v37, %v557_v25 }
 0x136   :  { %v2544_v49 = vperm.slane %v598_v40, %v2442_v41  ;;  %v603_v46 = vrot.slane %v530_v33, 4  ;;  %v566_v50 = vperm.slane %v558_v44, %v2455_v61  ;;  %v578_v52 = vperm.slane %v570_v30, %v2455_v61 }
 0x137   :  { %v579_v53 = vrot.slane %v562_v29, 4  ;;  %v584_v38 = vsel %vm227_vm1, 0.0, %v583_v31  ;;  %v283_v54 = vrot.slane %v217_v32, 4  ;;  %v286_v56 = vsel %vm227_vm1, %v217_v32, %v285_v59 }
 0x138   :  { %v604_v57 = vsel %vm227_vm1, %v603_v46, %v528_v23  ;;  %v581_v58 = vrot.slane %v566_v50, 4  ;;  %v585_v37 = vrot.slane %v578_v52, 4  ;;  %v294_v62 = vperm.slane %v286_v56, %v2442_v41 }
 0x139   :  { %v2555_v0 = vsel %vm227_vm1, 0.0, %v579_v53  ;;  %v284_v1 = vsel %vm227_vm1, %v283_v54, %v2430_v28  ;;  %v587_v20 = vsel %vm227_vm1, %v525_v19, %v506_v5  ;;  %v593_v2 = vsel %vm227_vm1, %v592_v36, %v524_v26 }
 0x13a   :  { %v2562_v51 = vsel %vm227_vm1, 0.0, %v581_v58  ;;  %v586_v59 = vsel %vm227_vm1, 0.0, %v585_v37  ;;  %v2566_v3 = vsel %vm227_vm1, %v581_v58, %v562_v29  ;;  %v652_v6 = vsel %vm227_vm1, %v585_v37, %v574_v22 }
 0x13b   :  { %v646_v7 = vrot.slane %v2562_v51, 4  ;;  %v2571_v9 = vperm.slane %v652_v6, %v2442_v41  ;;  %v657_v28 = vrot.slane %v586_v59, 4  ;;  %v290_v5 = vperm.slane %v284_v1, %v2442_v41 }
 0x13c   :  { %v320_v55 = vsel %vm227_vm1, %v319_v10, %v294_v62  ;;  %v321_v12 = vrot.slane %v294_v62, 4  ;;  %v591_v60 = vperm.slane %v587_v20, %v2442_v41  ;;  %v597_v13 = vperm.slane %v593_v2, %v2442_v41 }
 0x13d   :  { %v658_v14 = vsel %vm227_vm1, %v657_v28, %v584_v38  ;;  %v677_v16 = vrot.slane %v2571_v9, 4  ;;  %v308_v17 = vsel %vm227_vm1, %v307_v15, %v290_v5  ;;  %v309_v18 = vrot.slane %v290_v5, 4 }
 0x13e   :  { %v2581_v4 = vperm.slane %v658_v14, %v2442_v41  ;;  %v314_v19 = vperm.slane %v308_v17, %v2455_v61  ;;  %v322_v10 = vsel %vm227_vm1, %v2508_v63, %v321_v12  ;;  %v326_v21 = vperm.slane %v320_v55, %v2455_v61 }
 0x13f   :  { %v310_v22 = vsel %vm227_vm1, %v2520_v8, %v309_v18  ;;  %v330_v26 = vperm.slane %v322_v10, %v2455_v61  ;;  %v608_v23 = vperm.slane %v604_v57, %v2442_v41  ;;  %v611_v24 = vrot.slane %v591_v60, 4 }
 0x140   :  { %v318_v15 = vperm.slane %v310_v22, %v2455_v61  ;;  %v331_v11 = vrot.slane %v314_v19, 4  ;;  %v335_v25 = vrot.slane %v326_v21, 4  ;;  %v623_v27 = vrot.slane %v2544_v49, 4 }
 0x141   :  { %v337_v29 = vrot.slane %v330_v26, 4  ;;  %v612_v30 = vsel %vm227_vm1, %v597_v13, %v611_v24  ;;  %v609_v63 = vrot.slane %v597_v13, 4  ;;  %v621_v1 = vrot.slane %v608_v23, 4 }
 0x142   :  { %v332_v31 = vsel %vm227_vm1, 0.0, %v331_v11  ;;  %v333_v32 = vrot.slane %v318_v15, 4  ;;  %v336_v8 = vsel %vm227_vm1, 0.0, %v335_v25  ;;  %v620_v33 = vperm.slane %v612_v30, %v2455_v61 }
 0x143   :  { %v338_v36 = vsel %vm227_vm1, 0.0, %v337_v29  ;;  %v404_v40 = vsel %vm227_vm1, %v337_v29, %v326_v21  ;;  %v624_v44 = vsel %vm227_vm1, %v608_v23, %v623_v27  ;;  %v610_v46 = vsel %vm227_vm1, %v609_v63, %v591_v60 }
 0x144   :  { %v334_v50 = vsel %vm227_vm1, 0.0, %v333_v32  ;;  %v393_v52 = vsel %vm227_vm1, %v333_v32, %v314_v19  ;;  %v2604_v53 = vperm.slane %v404_v40, %v2442_v41  ;;  %v409_v38 = vrot.slane %v338_v36, 4 }
 0x145   :  { %v2607_v54 = vperm.slane %v393_v52, %v2442_v41  ;;  %v398_v56 = vrot.slane %v334_v50, 4  ;;  %v632_v57 = vperm.slane %v624_v44, %v2455_v61  ;;  %v616_v58 = vperm.slane %v610_v46, %v2455_v61 }
 0x146   :  { %v410_v37 = vsel %vm227_vm1, %v409_v38, %v336_v8  ;;  %v429_v62 = vrot.slane %v2604_v53, 4  ;;  %v639_v20 = vrot.slane %v620_v33, 4  ;;  %v622_v55 = vsel %vm227_vm1, %v621_v1, %v2544_v49 }
 0x147   :  { %v399_v2 = vsel %vm227_vm1, %v398_v56, %v332_v31  ;;  %v2615_v59 = vperm.slane %v410_v37, %v2442_v41  ;;  %v417_v6 = vrot.slane %v2607_v54, 4  ;;  %v637_v28 = vrot.slane %v632_v57, 4 }
 0x148   :  { %v2619_v5 = vperm.slane %v399_v2, %v2442_v41  ;;  %v640_v12 = vsel %vm227_vm1, %v632_v57, %v639_v20  ;;  %v635_v60 = vrot.slane %v616_v58, 4  ;;  %v628_v17 = vperm.slane %v622_v55, %v2455_v61 }
 0x149   :  { %v427_v13 = vrot.slane %v2615_v59, 4  ;;  %v638_v14 = vsel %vm227_vm1, %v637_v28, %v620_v33  ;;  %v698_v18 = vpack.c.bf16 %v640_v12, %v640_v12  ;;  %v345_v10 = vsel %vm227_vm1, %v344_v34, %v2484_v39 }
 0x14a   :  { %v697_v19 = vpack.c.bf16 %v638_v14, %v638_v14  ;;  %v356_v49 = vsel %vm227_vm1, %v355_v45, %v2496_v47  ;;  %v363_v21 = vrot.slane %v2490_v43, 4  ;;  %v633_v22 = vrot.slane %v628_v17, 4 }
 0x14b   :  { %v1013_v26 = vsel %vm951_vm2, %v698_v18, 0  ;;  %v636_v23 = vsel %vm227_vm1, %v628_v17, %v635_v60  ;;  %v349_v24 = vperm.slane %v345_v10, %v2442_v41  ;;  %v360_v39 = vperm.slane %v356_v49, %v2442_v41 }
 0x14c   :  { %v994_v15 = vsel %vm951_vm2, %v697_v19, 0  ;;  %1022 = vmatpush.bf16.xpose.msrb.mxu2 %v1013_v26  ;;  %v696_v35 = vpack.c.bf16 %v636_v23, %v636_v23  ;;  %v375_v34 = vrot.slane %v2499_v48, 4  ;;  %v634_v42 = vsel %vm227_vm1, %v633_v22, %v616_v58 }
 0x14d   :  { %1003 = vmatpush.bf16.xpose.msrb.mxu1 %v994_v15  ;;  %v364_v45 = vsel %vm227_vm1, %v349_v24, %v363_v21  ;;  %v645_v47 = vperm.slane %v2566_v3, %v2442_v41  ;;  %v647_v11 = vsel %vm227_vm1, %v646_v7, %v2555_v0  ;;  %v695_v25 = vpack.c.bf16 %v634_v42, %v634_v42 }
 0x14e   :  { %v975_v27 = vsel %vm951_vm2, %v696_v35, 0  ;;  %v372_v29 = vperm.slane %v364_v45, %v2455_v61  ;;  %v376_v30 = vsel %vm227_vm1, %v360_v39, %v375_v34  ;;  %v651_v31 = vperm.slane %v647_v11, %v2442_v41 }
 0x14f   :  { %984 = vmatpush.bf16.xpose.msrb.mxu0 %v975_v27  ;;  %v384_v63 = vperm.slane %v376_v30, %v2455_v61  ;;  %v665_v32 = vrot.slane %v645_v47, 4  ;;  %v678_v51 = vsel %vm227_vm1, %v2581_v4, %v677_v16  ;;  %v956_v0 = vsel %vm951_vm2, %v695_v25, 0 }
 0x150   :  { %v686_v3 = vperm.slane %v678_v51, %v2455_v61  ;;  %v361_v7 = vrot.slane %v349_v24, 4  ;;  %v373_v8 = vrot.slane %v360_v39, 4  ;;  %965 = vmatpush.bf16.xpose.msra.mxu3 %v956_v0  ;;  %v391_v40 = vrot.slane %v372_v29, 4 }
 0x151   :  { %v389_v33 = vrot.slane %v384_v63, 4  ;;  %v666_v36 = vsel %vm227_vm1, %v651_v31, %v665_v32  ;;  %v663_v44 = vrot.slane %v651_v31, 4  ;;  %v418_v14 = vsel %vm227_vm1, %v2619_v5, %v417_v6 }
 0x152   :  { %v674_v46 = vperm.slane %v666_v36, %v2455_v61  ;;  %v691_v50 = vrot.slane %v686_v3, 4  ;;  %v362_v52 = vsel %vm227_vm1, %v361_v7, %v2490_v43  ;;  %v374_v16 = vsel %vm227_vm1, %v373_v8, %v2499_v48 }
 0x153   :  { %v390_v38 = vsel %vm227_vm1, %v389_v33, %v372_v29  ;;  %v368_v56 = vperm.slane %v362_v52, %v2455_v61  ;;  %v380_v57 = vperm.slane %v374_v16, %v2455_v61  ;;  %v392_v58 = vsel %vm227_vm1, %v384_v63, %v391_v40 }
 0x154   :  { %v449_v37 = vpack.c.bf16 %v390_v38, %v390_v38  ;;  %v692_v1 = vsel %vm227_vm1, %v691_v50, %v674_v46  ;;  %v450_v20 = vpack.c.bf16 %v392_v58, %v392_v58  ;;  %v664_v2 = vsel %vm227_vm1, %v663_v44, %v645_v47 }
 0x155   :  { %v701_v28 = vpack.c.bf16 %v692_v1, %v692_v1  ;;  %v385_v55 = vrot.slane %v380_v57, 4  ;;  %v387_v43 = vrot.slane %v368_v56, 4  ;;  %v670_v12 = vperm.slane %v664_v2, %v2455_v61 }
 0x156   :  { %1997 = vmatmul.msk.bf16.vlgmr.msrb.gmra.mxu1 %vm951_vm2, %v449_v37  ;;  %1998 = vmatmul.msk.bf16.vlgmr.msrb.gmra.mxu2 %vm951_vm2, %v450_v20  ;;  %v675_v48 = vrot.slane %v2581_v4, 4  ;;  %v693_v60 = vrot.slane %v674_v46, 4  ;;  %v430_v17 = vsel %vm227_vm1, %v2615_v59, %v429_v62  ;;  %v2691_v4 = vld [vmem:[%s3142_s9 + $0x1] sm:$0x1]  ;;  %v426_v24 = vperm.slane %v418_v14, %v2455_v61 }
 0x157   :  { %v1070_v18 = vsel %vm951_vm2, %v701_v28, 0  ;;  %v386_v19 = vsel %vm227_vm1, %v385_v55, %v368_v56  ;;  %v689_v10 = vrot.slane %v670_v12, 4  ;;  %v388_v49 = vsel %vm227_vm1, %v380_v57, %v387_v43  ;;  %v171_v43 = vpop.f32.mrf.mxu1 }
 0x158   :  { %1079 = vmatpush.bf16.xpose.msra.mxu1 %v1070_v18  ;;  %v447_v21 = vpack.c.bf16 %v386_v19, %v386_v19  ;;  %v676_v6 = vsel %vm227_vm1, %v675_v48, %v2571_v9  ;;  %v694_v22 = vsel %vm227_vm1, %v686_v3, %v693_v60  ;;  %v448_v62 = vpack.c.bf16 %v388_v49, %v388_v49  ;;  %v2737_v48 = vld [vmem:[%s3141_s8] sm:$0x1] }
 0x159   :  { %v682_v26 = vperm.slane %v676_v6, %v2455_v61  ;;  %v702_v23 = vpack.c.bf16 %v694_v22, %v694_v22  ;;  %v438_v15 = vperm.slane %v430_v17, %v2455_v61  ;;  %v415_v35 = vrot.slane %v2619_v5, 4 }
 0x15a   :  { %1995 = vmatmul.msk.bf16.vlgmr.msra.gmra.mxu3 %vm951_vm2, %v447_v21  ;;  %1996 = vmatmul.msk.bf16.vlgmr.msrb.gmra.mxu0 %vm951_vm2, %v448_v62  ;;  %v428_v9 = vsel %vm227_vm1, %v427_v13, %v2604_v53  ;;  %2070 = vrsqrt.f32 %v2691_v4  ;;  %v2306_v45 = vmov 0   ;;  %v2714_v53 = vld [vmem:[%s3142_s9] sm:$0x1]  ;;  %v445_v27 = vrot.slane %v426_v24, 4  ;;  %s1977_s9 = sshll.u32 %s3145_s12, 4  ;;  %s1978_s9 = int_to_ptr.hbm [resolvable:$true] %s1977_s9 }
 0x15b   :  { %v687_v39 = vrot.slane %v682_v26, 4  ;;  %v1089_v34 = vsel %vm951_vm2, %v702_v23, 0  ;;  %v690_v42 = vsel %vm227_vm1, %v682_v26, %v689_v10  ;;  %2042 = vset.pattern.permute.xlu0 %v2306_v45  ;;  %2041 = vset.pattern.permute.xlu2 %v2306_v45  ;;  %v443_v11 = vrot.slane %v438_v15, 4  ;;  %v2752_v26 = vld [vmem:[%s3141_s8 + $0x1] sm:$0x1] }
 0x15c   :  { %1098 = vmatpush.bf16.xpose.msra.mxu2 %v1089_v34  ;;  %v700_v47 = vpack.c.bf16 %v690_v42, %v690_v42  ;;  %v416_v5 = vsel %vm227_vm1, %v415_v35, %v2607_v54  ;;  %2058 = vset.pattern.permute.xlu1 %v2306_v45  ;;  %v434_v25 = vperm.slane %v428_v9, %v2455_v61  ;;  %2072 = vrsqrt.f32 %v2714_v53 }
 0x15d   :  { %v688_v59 = vsel %vm227_vm1, %v687_v39, %v670_v12  ;;  %v422_v13 = vperm.slane %v416_v5, %v2455_v61  ;;  %v444_v31 = vsel %vm227_vm1, %v443_v11, %v426_v24  ;;  %v446_v0 = vsel %vm227_vm1, %v438_v15, %v445_v27 }
 0x15e   :  { %v699_v29 = vpack.c.bf16 %v688_v59, %v688_v59  ;;  %v1051_v30 = vsel %vm951_vm2, %v700_v47, 0  ;;  %v439_v32 = vrot.slane %v434_v25, 4  ;;  %v453_v8 = vpack.c.bf16 %v444_v31, %v444_v31 }
 0x15f   :  { %1060 = vmatpush.bf16.xpose.msra.mxu0 %v1051_v30  ;;  %v441_v51 = vrot.slane %v422_v13, 4  ;;  %v454_v33 = vpack.c.bf16 %v446_v0, %v446_v0  ;;  %vm1128_vm3 = vweird.f32 %v2691_v4  ;;  %vm1118_vm6 = vweird.f32 %v2714_v53  ;;  %v173_v12 = vpop.f32.mrf.mxu1 }
 0x160   :  { %v2071_v54 = vpop.eup %2070  ;;  %v1032_v63 = vsel %vm951_vm2, %v699_v29, 0  ;;  %v440_v40 = vsel %vm227_vm1, %v439_v32, %v422_v13  ;;  %vm1108_vm9 = vcmp.eq.f32.partialorder %v2737_v48, 0.0  ;;  %v2307_v60 = vmov 0.0  }
 0x161   :  { %1041 = vmatpush.bf16.xpose.msrb.mxu3 %v1032_v63  ;;  %v1123_v3 = vmul.f32 %v2071_v54, %v2691_v4  ;;  %v442_v44 = vsel %vm227_vm1, %v434_v25, %v441_v51  ;;  %vm1129_vm4 = vweird.f32 %v2071_v54  ;;  %v451_v16 = vpack.c.bf16 %v440_v40, %v440_v40  ;;  %v2061_v25 = vld [vmem:[%s3138_s5] ss:$0 sm:$0xff] }
 0x162   :  { %v2073_v36 = vpop.eup %2072  ;;  %v452_v38 = vpack.c.bf16 %v442_v44, %v442_v44  ;;  %vm1130_vm5 = vmor %vm1128_vm3, %vm1129_vm4  ;;  %v1110_v14 = vsel %vm1108_vm9, -1e+30, %v2307_v60  ;;  %vm1109_vm10 = vcmp.eq.f32.partialorder %v2752_v26, 0.0  ;;  %v2771_v31 = vadd.f32 %v2061_v25, %v171_v43 }
 0x163   :  { %v1124_v7 = vmul.f32 %v2071_v54, %v1123_v3  ;;  %v1113_v50 = vmul.f32 %v2073_v36, %v2714_v53  ;;  %vm1119_vm7 = vweird.f32 %v2073_v36  ;;  %v1154_v18 = vperm.slane %v1110_v14, 0 }
 0x164   :  { %vm1120_vm8 = vmor %vm1118_vm6, %vm1119_vm7  ;;  %v1111_v42 = vsel %vm1109_vm10, -1e+30, %v2307_v60  ;;  %v2773_v32 = vadd.f32 %v2061_v25, %v173_v12 }
 0x165   :  { %v1125_v46 = vmul.f32 0.5, %v1124_v7  ;;  %v1114_v56 = vmul.f32 %v2073_v36, %v1113_v50  ;;  %v1155_v13 = vperm.slane %v1111_v42, 0 }
 0x166   :  { %2001 = vmatmul.msk.bf16.vlgmr.msra.gmra.mxu1 %vm951_vm2, %v453_v8  ;;  %2002 = vmatmul.msk.bf16.vlgmr.msra.gmra.mxu2 %vm951_vm2, %v454_v33 }
 0x167   :  { %v1126_v52 = vsub.f32 1.5, %v1125_v46  ;;  %v1115_v58 = vmul.f32 0.5, %v1114_v56 }
 0x169   :  { %v1127_v57 = vmul.f32 %v2071_v54, %v1126_v52  ;;  %v1116_v20 = vsub.f32 1.5, %v1115_v58 }
 0x16a   :  { %1999 = vmatmul.msk.bf16.vlgmr.msrb.gmra.mxu3 %vm951_vm2, %v451_v16  ;;  %2000 = vmatmul.msk.bf16.vlgmr.msra.gmra.mxu0 %vm951_vm2, %v452_v38 }
 0x16b   :  { %v1131_v37 = vsel %vm1130_vm5, %v2071_v54, %v1127_v57  ;;  %v1117_v2 = vmul.f32 %v2073_v36, %v1116_v20 }
 0x16c   :  { %v1135_v1 = vperm.slane %v1131_v37, 0 }
 0x16d   :  { %v1121_v28 = vsel %vm1120_vm8, %v2073_v36, %v1117_v2  ;;  %v2043_v36 = vpack.i.bf16 %v2773_v32, %v2771_v31 }
 0x16e   :  { %1141 = vperm.xlu0 %2042, %v1135_v1   ;;  %v1134_v55 = vperm.slane %v1121_v28, 0 }
 0x170   :  { %1137 = vperm.xlu2 %2041, %v1134_v55  }
 0x1ca   :  { %v1138_v17 = vpop.permute.xlu2 %1137 }
 0x1d3   :  { %v2740_v19 = vpop.f32.mrf.mxu1 }
 0x1d4   :  { %v1146_v10 = vmul.f32 %v1138_v17, %v2740_v19 }
 0x1d6   :  { %v1160_v49 = vadd.f32 %v1154_v18, %v1146_v10 }
 0x1d7   :  { %v2743_v21 = vpop.f32.mrf.mxu0 }
 0x1d8   :  { %v1145_v6 = vmul.f32 %v1138_v17, %v2743_v21  ;;  %v1172_v22 = vsel %vm951_vm2, %v1160_v49, -inf }
 0x1d9   :  { %1173 = vmax.xlane.f32.xlu0 %v1172_v22  ;;  %v2747_v62 = vpop.f32.mrf.mxu2 }
 0x1da   :  { %v2754_v23 = vadd.f32 %v1154_v18, %v1145_v6  ;;  %v1147_v15 = vmul.f32 %v1138_v17, %v2747_v62 }
 0x1db   :  { %v1007_v24 = vpop.f32.mrf.mxu1 }
 0x1dc   :  { %v1169_v35 = vsel %vm951_vm2, %v2754_v23, -inf  ;;  %v1161_v47 = vadd.f32 %v1154_v18, %v1147_v15 }
 0x1dd   :  { %v2760_v9 = vpop.f32.mrf.mxu3  ;;  %1170 = vmax.xlane.f32.xlu2 %v1169_v35 }
 0x1de   :  { %v1144_v39 = vmul.f32 %v1138_v17, %v2760_v9  ;;  %v1175_v30 = vsel %vm951_vm2, %v1161_v47, -inf }
 0x1df   :  { %v988_v34 = vpop.f32.mrf.mxu0 }
 0x1e0   :  { %v1158_v45 = vadd.f32 %v1154_v18, %v1144_v39  ;;  %v1142_v11 = vpop.permute.xlu0 %1141 }
 0x1e1   :  { %v1026_v5 = vpop.f32.mrf.mxu2 }
 0x1e2   :  { %v1166_v59 = vsel %vm951_vm2, %v1158_v45, -inf }
 0x1e3   :  { %1167 = vmax.xlane.f32.xlu1 %v1166_v59  ;;  %v2767_v27 = vpop.f32.mrf.mxu1 }
 0x1e4   :  { %v1150_v29 = vmul.f32 %v1142_v11, %v2767_v27 }
 0x1e5   :  { %v969_v54 = vpop.f32.mrf.mxu3  ;;  %1176 = vmax.xlane.f32.xlu2 %v1175_v30 }
 0x1e6   :  { %v1164_v63 = vadd.f32 %v1155_v13, %v1150_v29 }
 0x1e7   :  { %v2775_v51 = vpop.f32.mrf.mxu0 }
 0x1e8   :  { %v1149_v0 = vmul.f32 %v1142_v11, %v2775_v51  ;;  %v1184_v3 = vsel %vm951_vm2, %v1164_v63, -inf }
 0x1e9   :  { %v2779_v7 = vpop.f32.mrf.mxu2 }
 0x1ea   :  { %v2781_v8 = vadd.f32 %v1155_v13, %v1149_v0  ;;  %v1151_v40 = vmul.f32 %v1142_v11, %v2779_v7 }
 0x1eb   :  { %1185 = vmax.xlane.f32.xlu1 %v1184_v3  ;;  %v1083_v33 = vpop.f32.mrf.mxu1 }
 0x1ec   :  { %v1181_v44 = vsel %vm951_vm2, %v2781_v8, -inf  ;;  %v1165_v38 = vadd.f32 %v1155_v13, %v1151_v40 }
 0x1ed   :  { %v2788_v46 = vpop.f32.mrf.mxu3  ;;  %1182 = vmax.xlane.f32.xlu2 %v1181_v44  ;;  %2044 = vrot.lane.b32.xlu0 %v2043_v36, %s2303_s3 }
 0x1ee   :  { %v1148_v50 = vmul.f32 %v1142_v11, %v2788_v46  ;;  %v1187_v58 = vsel %vm951_vm2, %v1165_v38, -inf }
 0x1ef   :  { %v1064_v52 = vpop.f32.mrf.mxu0 }
 0x1f0   :  { %v1162_v16 = vadd.f32 %v1155_v13, %v1148_v50 }
 0x1f1   :  { %v1102_v56 = vpop.f32.mrf.mxu2 }
 0x1f2   :  { %v1178_v57 = vsel %vm951_vm2, %v1162_v16, -inf }
 0x1f3   :  { %1179 = vmax.xlane.f32.xlu1 %v1178_v57 }
 0x1f5   :  { %v1045_v37 = vpop.f32.mrf.mxu3  ;;  %1188 = vmax.xlane.f32.xlu2 %v1187_v58 }
 0x20c   :  { %2049 = vrot.lane.b32.xlu1 %v2043_v36, %s2302_s14 }
 0x20d   :  { %2054 = vrot.lane.b32.xlu2 %v2043_v36, %s2301_s27 }
 0x24c   :  { %v1174_v1 = vpop.xlane.xlu0 %1173 }
 0x24d   :  { %v1192_v20 = vsub.f32 %v1160_v49, %v1174_v1 }
 0x24f   :  { %v1202_v2 = vmul.f32 1.442695, %v1192_v20 }
 0x250   :  { %v1171_v28 = vpop.xlane.xlu2 %1170 }
 0x251   :  { %2074 = vpow2.f32 %v1202_v2  ;;  %v1191_v17 = vsub.f32 %v2754_v23, %v1171_v28 }
 0x253   :  { %v1200_v22 = vmul.f32 1.442695, %v1191_v17  ;;  %v725_v17 = vrot.slane %v2771_v31, 4 }
 0x256   :  { %v1168_v55 = vpop.xlane.xlu1 %1167 }
 0x257   :  { %v2796_v43 = vpop.eup %2074  ;;  %v1190_v12 = vsub.f32 %v1158_v45, %v1168_v55 }
 0x258   :  { %v1177_v60 = vpop.xlane.xlu2 %1176  ;;  %v1220_v14 = vsel %vm951_vm2, %v2796_v43, 0.0 }
 0x259   :  { %v1198_v18 = vmul.f32 1.442695, %v1190_v12  ;;  %v1193_v10 = vsub.f32 %v1161_v47, %v1177_v60  ;;  %1221 = vadd.xlane.f32.xlu2 %v1220_v14 }
 0x25b   :  { %2076 = vpow2.f32 %v1198_v18  ;;  %v1204_v6 = vmul.f32 1.442695, %v1193_v10  ;;  %v781_v18 = vrot.slane %v2773_v32, 4 }
 0x25d   :  { %2078 = vpow2.f32 %v1204_v6 }
 0x25e   :  { %v1186_v49 = vpop.xlane.xlu1 %1185  ;;  %2080 = vpow2.f32 %v1200_v22 }
 0x25f   :  { %v1196_v24 = vsub.f32 %v1164_v63, %v1186_v49  ;;  %v2045_v36 = vpop.permute.xlu0 %2044 }
 0x260   :  { %v1183_v15 = vpop.xlane.xlu2 %1182 }
 0x261   :  { %v2801_v35 = vpop.eup %2076  ;;  %v1210_v39 = vmul.f32 1.442695, %v1196_v24  ;;  %v1195_v13 = vsub.f32 %v2781_v8, %v1183_v15 }
 0x262   :  { %v1214_v34 = vsel %vm951_vm2, %v2801_v35, 0.0 }
 0x263   :  { %v2805_v42 = vpop.eup %2078  ;;  %2082 = vpow2.f32 %v1210_v39  ;;  %1215 = vadd.xlane.f32.xlu0 %v1214_v34  ;;  %v1208_v0 = vmul.f32 1.442695, %v1195_v13 }
 0x264   :  { %v1223_v23 = vsel %vm951_vm2, %v2805_v42, 0.0  ;;  %v2809_v47 = vpop.eup %2080 }
 0x265   :  { %1224 = vadd.xlane.f32.xlu1 %v1223_v23  ;;  %v1217_v30 = vsel %vm951_vm2, %v2809_v47, 0.0 }
 0x266   :  { %v1180_v45 = vpop.xlane.xlu1 %1179 }
 0x267   :  { %v1194_v11 = vsub.f32 %v1162_v16, %v1180_v45  ;;  %v2047_v16 = vunpack.i.h.bf16 %v2045_v36 }
 0x268   :  { %v1189_v5 = vpop.xlane.xlu2 %1188 }
 0x269   :  { %v2811_v59 = vpop.eup %2082  ;;  %v1206_v25 = vmul.f32 1.442695, %v1194_v11  ;;  %v1197_v29 = vsub.f32 %v1165_v38, %v1189_v5  ;;  %v2046_v38 = vunpack.i.l.bf16 %v2045_v36  ;;  %v793_v37 = vrot.slane %v2047_v16, 4 }
 0x26a   :  { %v1232_v54 = vsel %vm951_vm2, %v2811_v59, 0.0 }
 0x26b   :  { %2084 = vpow2.f32 %v1206_v25  ;;  %v1212_v63 = vmul.f32 1.442695, %v1197_v29  ;;  %1218 = vadd.xlane.f32.xlu0 %v1217_v30  ;;  %1233 = vadd.xlane.f32.xlu2 %v1232_v54  ;;  %v737_v1 = vrot.slane %v2046_v38, 4 }
 0x26d   :  { %2086 = vpow2.f32 %v1212_v63 }
 0x26e   :  { %2088 = vpow2.f32 %v1208_v0 }
 0x26f   :  { %2090 = vrcp.f32 %v2691_v4 }
 0x270   :  { %v2055_v33 = vpop.permute.xlu2 %2054  ;;  %2092 = vrcp.f32 %v2714_v53 }
 0x271   :  { %v2818_v3 = vpop.eup %2084  ;;  %v2057_v44 = vunpack.i.h.bf16 %v2055_v33  ;;  %v2056_v50 = vunpack.i.l.bf16 %v2055_v33 }
 0x272   :  { %v1226_v8 = vsel %vm951_vm2, %v2818_v3, 0.0 }
 0x273   :  { %v2822_v40 = vpop.eup %2086  ;;  %1227 = vadd.xlane.f32.xlu1 %v1226_v8  ;;  %v791_v57 = vrot.slane %v2057_v44, 4  ;;  %v735_v58 = vrot.slane %v2056_v50, 4  ;;  %v794_v2 = vsel %vm227_vm1, %v2057_v44, %v793_v37  ;;  %v738_v28 = vsel %vm227_vm1, %v2056_v50, %v737_v1 }
 0x274   :  { %v1235_v52 = vsel %vm951_vm2, %v2822_v40, 0.0  ;;  %v2826_v56 = vpop.eup %2088  ;;  %v802_v60 = vperm.slane %v794_v2, %v2442_v41  ;;  %v746_v14 = vperm.slane %v738_v28, %v2442_v41 }
 0x275   :  { %1236 = vadd.xlane.f32.xlu0 %v1235_v52  ;;  %v1229_v20 = vsel %vm951_vm2, %v2826_v56, 0.0  ;;  %v792_v55 = vsel %vm227_vm1, %v791_v57, %v2047_v16  ;;  %v736_v12 = vsel %vm227_vm1, %v735_v58, %v2046_v38  ;;  %v2091_v24 = vpop.eup %2090 }
 0x276   :  { %v798_v4 = vperm.slane %v792_v55, %v2442_v41  ;;  %v742_v6 = vperm.slane %v736_v12, %v2442_v41  ;;  %v815_v45 = vrot.slane %v802_v60, 4  ;;  %v759_v11 = vrot.slane %v746_v14, 4  ;;  %v2093_v50 = vpop.eup %2092 }
 0x278   :  { %v803_v25 = vrot.slane %v798_v4, 4  ;;  %v747_v29 = vrot.slane %v742_v6, 4 }
 0x27b   :  { %1230 = vadd.xlane.f32.xlu1 %v1229_v20 }
 0x27e   :  { %v2050_v10 = vpop.permute.xlu1 %2049 }
 0x27f   :  { %v2052_v22 = vunpack.i.h.bf16 %v2050_v10  ;;  %v2051_v49 = vunpack.i.l.bf16 %v2050_v10 }
 0x281   :  { %v779_v15 = vrot.slane %v2052_v22, 4  ;;  %v782_v39 = vsel %vm227_vm1, %v2052_v22, %v781_v18  ;;  %v723_v34 = vrot.slane %v2051_v49, 4  ;;  %v726_v23 = vsel %vm227_vm1, %v2051_v49, %v725_v17 }
 0x282   :  { %v790_v5 = vperm.slane %v782_v39, %v2442_v41  ;;  %v734_v13 = vperm.slane %v726_v23, %v2442_v41 }
 0x283   :  { %v780_v30 = vsel %vm227_vm1, %v779_v15, %v2773_v32  ;;  %v724_v53 = vsel %vm227_vm1, %v723_v34, %v2771_v31  ;;  %1425 = vperm.xlu2 %2041, %v2091_v24  }
 0x284   :  { %v786_v54 = vperm.slane %v780_v30, %v2442_v41  ;;  %v816_v63 = vsel %vm227_vm1, %v815_v45, %v790_v5  ;;  %v817_v0 = vrot.slane %v790_v5, 4  ;;  %v730_v33 = vperm.slane %v724_v53, %v2442_v41 }
 0x285   :  { %v822_v36 = vperm.slane %v816_v63, %v2455_v61  ;;  %v760_v8 = vsel %vm227_vm1, %v759_v11, %v734_v13  ;;  %v761_v44 = vrot.slane %v734_v13, 4 }
 0x286   :  { %v804_v52 = vsel %vm227_vm1, %v803_v25, %v786_v54  ;;  %v805_v32 = vrot.slane %v786_v54, 4  ;;  %v818_v16 = vsel %vm227_vm1, %v802_v60, %v817_v0  ;;  %v748_v31 = vsel %vm227_vm1, %v747_v29, %v730_v33 }
 0x287   :  { %v810_v38 = vperm.slane %v804_v52, %v2455_v61  ;;  %v826_v57 = vperm.slane %v818_v16, %v2455_v61  ;;  %v831_v58 = vrot.slane %v822_v36, 4  ;;  %v749_v37 = vrot.slane %v730_v33, 4 }
 0x288   :  { %v806_v1 = vsel %vm227_vm1, %v798_v4, %v805_v32  ;;  %v754_v20 = vperm.slane %v748_v31, %v2455_v61  ;;  %v762_v2 = vsel %vm227_vm1, %v746_v14, %v761_v44  ;;  %v766_v28 = vperm.slane %v760_v8, %v2455_v61 }
 0x289   :  { %v814_v55 = vperm.slane %v806_v1, %v2455_v61  ;;  %v827_v12 = vrot.slane %v810_v38, 4  ;;  %v832_v60 = vsel %vm227_vm1, 0.0, %v831_v58  ;;  %v833_v17 = vrot.slane %v826_v57, 4  ;;  %1419 = vperm.xlu0 %2042, %v2093_v50  }
 0x28a   :  { %v750_v18 = vsel %vm227_vm1, %v742_v6, %v749_v37  ;;  %v770_v10 = vperm.slane %v762_v2, %v2455_v61  ;;  %v771_v22 = vrot.slane %v754_v20, 4  ;;  %v775_v49 = vrot.slane %v766_v28, 4 }
 0x28b   :  { %v828_v4 = vsel %vm227_vm1, 0.0, %v827_v12  ;;  %v829_v24 = vrot.slane %v814_v55, 4  ;;  %v834_v14 = vsel %vm227_vm1, 0.0, %v833_v17  ;;  %v900_v15 = vsel %vm227_vm1, %v833_v17, %v822_v36 }
 0x28c   :  { %v904_v39 = vperm.slane %v900_v15, %v2442_v41  ;;  %v905_v34 = vrot.slane %v834_v14, 4  ;;  %v758_v23 = vperm.slane %v750_v18, %v2455_v61  ;;  %v772_v45 = vsel %vm227_vm1, 0.0, %v771_v22 }
 0x28d   :  { %v830_v6 = vsel %vm227_vm1, 0.0, %v829_v24  ;;  %v776_v11 = vsel %vm227_vm1, 0.0, %v775_v49  ;;  %v777_v5 = vrot.slane %v770_v10, 4  ;;  %v889_v13 = vsel %vm227_vm1, %v829_v24, %v810_v38 }
 0x28e   :  { %v894_v25 = vrot.slane %v830_v6, 4  ;;  %v773_v29 = vrot.slane %v758_v23, 4  ;;  %v893_v30 = vperm.slane %v889_v13, %v2442_v41  ;;  %v906_v53 = vsel %vm227_vm1, %v905_v34, %v832_v60 }
 0x28f   :  { %v778_v54 = vsel %vm227_vm1, 0.0, %v777_v5  ;;  %v846_v63 = vsel %vm227_vm1, %v777_v5, %v766_v28  ;;  %v910_v0 = vperm.slane %v906_v53, %v2442_v41  ;;  %v925_v33 = vrot.slane %v904_v39, 4 }
 0x290   :  { %v774_v36 = vsel %vm227_vm1, 0.0, %v773_v29  ;;  %v850_v8 = vperm.slane %v846_v63, %v2442_v41  ;;  %v851_v44 = vrot.slane %v778_v54, 4  ;;  %v835_v50 = vsel %vm227_vm1, %v773_v29, %v754_v20 }
 0x291   :  { %v840_v52 = vrot.slane %v774_v36, 4  ;;  %v839_v32 = vperm.slane %v835_v50, %v2442_v41  ;;  %v895_v16 = vsel %vm227_vm1, %v894_v25, %v828_v4  ;;  %v913_v31 = vrot.slane %v893_v30, 4 }
 0x292   :  { %v852_v38 = vsel %vm227_vm1, %v851_v44, %v776_v11  ;;  %v871_v57 = vrot.slane %v850_v8, 4  ;;  %v899_v58 = vperm.slane %v895_v16, %v2442_v41  ;;  %v926_v37 = vsel %vm227_vm1, %v910_v0, %v925_v33 }
 0x293   :  { %v841_v1 = vsel %vm227_vm1, %v840_v52, %v772_v45  ;;  %v856_v2 = vperm.slane %v852_v38, %v2442_v41  ;;  %v859_v28 = vrot.slane %v839_v32, 4  ;;  %v934_v20 = vperm.slane %v926_v37, %v2455_v61 }
 0x294   :  { %v845_v55 = vperm.slane %v841_v1, %v2442_v41  ;;  %v914_v12 = vsel %vm227_vm1, %v899_v58, %v913_v31  ;;  %v911_v60 = vrot.slane %v899_v58, 4  ;;  %v923_v17 = vrot.slane %v910_v0, 4 }
 0x295   :  { %v872_v18 = vsel %vm227_vm1, %v856_v2, %v871_v57  ;;  %v922_v10 = vperm.slane %v914_v12, %v2455_v61  ;;  %v939_v22 = vrot.slane %v934_v20, 4  ;;  %v869_v49 = vrot.slane %v856_v2, 4 }
 0x296   :  { %v860_v4 = vsel %vm227_vm1, %v845_v55, %v859_v28  ;;  %v880_v24 = vperm.slane %v872_v18, %v2455_v61  ;;  %v857_v14 = vrot.slane %v845_v55, 4  ;;  %v912_v15 = vsel %vm227_vm1, %v911_v60, %v893_v30 }
 0x297   :  { %v868_v34 = vperm.slane %v860_v4, %v2455_v61  ;;  %v940_v23 = vsel %vm227_vm1, %v939_v22, %v922_v10  ;;  %v870_v45 = vsel %vm227_vm1, %v869_v49, %v850_v8  ;;  %v918_v6 = vperm.slane %v912_v15, %v2455_v61 }
 0x298   :  { %v885_v11 = vrot.slane %v880_v24, 4  ;;  %v949_v5 = vpack.c.bf16 %v940_v23, %v940_v23  ;;  %v858_v13 = vsel %vm227_vm1, %v857_v14, %v839_v32  ;;  %v876_v25 = vperm.slane %v870_v45, %v2455_v61 }
 0x299   :  { %v864_v29 = vperm.slane %v858_v13, %v2455_v61  ;;  %v887_v53 = vrot.slane %v868_v34, 4  ;;  %v924_v54 = vsel %vm227_vm1, %v923_v17, %v904_v39  ;;  %v941_v30 = vrot.slane %v922_v10, 4 }
 0x29a   :  { %v886_v63 = vsel %vm227_vm1, %v885_v11, %v868_v34  ;;  %v1381_v0 = vsel %vm1265_vm11, %v949_v5, 0  ;;  %v881_v33 = vrot.slane %v876_v25, 4  ;;  %v930_v36 = vperm.slane %v924_v54, %v2455_v61 }
 0x29b   :  { %v945_v8 = vpack.c.bf16 %v886_v63, %v886_v63  ;;  %v888_v44 = vsel %vm227_vm1, %v880_v24, %v887_v53  ;;  %v942_v50 = vsel %vm227_vm1, %v934_v20, %v941_v30  ;;  %v883_v52 = vrot.slane %v864_v29, 4 }
 0x29c   :  { %v882_v32 = vsel %vm227_vm1, %v881_v33, %v864_v29  ;;  %v946_v16 = vpack.c.bf16 %v888_v44, %v888_v44  ;;  %v935_v31 = vrot.slane %v930_v36, 4  ;;  %v950_v38 = vpack.c.bf16 %v942_v50, %v942_v50 }
 0x29d   :  { %v1305_v39 = vsel %vm1265_vm11, %v945_v8, 0  ;;  %v943_v57 = vpack.c.bf16 %v882_v32, %v882_v32  ;;  %v884_v58 = vsel %vm227_vm1, %v876_v25, %v883_v52  ;;  %v937_v37 = vrot.slane %v918_v6, 4 }
 0x29e   :  { %1314 = vmatpush.bf16.msrb.mxu1 %v1305_v39  ;;  %v1324_v1 = vsel %vm1265_vm11, %v946_v16, 0  ;;  %v936_v2 = vsel %vm227_vm1, %v935_v31, %v918_v6  ;;  %v1400_v28 = vsel %vm1265_vm11, %v950_v38, 0  ;;  %v944_v20 = vpack.c.bf16 %v884_v58, %v884_v58 }
 0x29f   :  { %v1267_v55 = vsel %vm1265_vm11, %v943_v57, 0  ;;  %1333 = vmatpush.bf16.msrb.mxu2 %v1324_v1  ;;  %v947_v12 = vpack.c.bf16 %v936_v2, %v936_v2  ;;  %v938_v60 = vsel %vm227_vm1, %v930_v36, %v937_v37 }
 0x2a0   :  { %1276 = vmatpush.bf16.msra.mxu3 %v1267_v55  ;;  %v1286_v17 = vsel %vm1265_vm11, %v944_v20, 0  ;;  %v948_v18 = vpack.c.bf16 %v938_v60, %v938_v60 }
 0x2a1   :  { %v1343_v10 = vsel %vm1265_vm11, %v947_v12, 0  ;;  %1295 = vmatpush.bf16.msrb.mxu0 %v1286_v17 }
 0x2a2   :  { %1390 = vmatpush.bf16.msra.mxu1 %v1381_v0  ;;  %v1362_v22 = vsel %vm1265_vm11, %v948_v18, 0 }
 0x2a3   :  { %1409 = vmatpush.bf16.msra.mxu2 %v1400_v28 }
 0x2a4   :  { %1352 = vmatpush.bf16.msrb.mxu3 %v1343_v10 }
 0x2a5   :  { %1371 = vmatpush.bf16.msra.mxu0 %v1362_v22 }
 0x2cc   :  { %v1222_v49 = vpop.xlane.xlu2 %1221 }
 0x2cd   :  { %2094 = vrcp.f32 %v1222_v49 }
 0x2d3   :  { %v2095_v4 = vpop.eup %2094 }
 0x2d4   :  { %v1248_v24 = vmul.f32 %v2095_v4, %v2796_v43 }
 0x2d6   :  { %v1256_v14 = vpack.c.bf16 %v1248_v24, %v1248_v24  ;;  %v1216_v15 = vpop.xlane.xlu0 %1215  ;;  %v2062_v24 = vld [vmem:[%s3143_s10] ss:$0 sm:$0xff] }
 0x2d7   :  { %2096 = vrcp.f32 %v1216_v15 }
 0x2d8   :  { %v1225_v34 = vpop.xlane.xlu1 %1224  ;;  %2005 = vmatmul.msk.bf16.vlgmr.msrb.gmra.mxu1 %vm951_vm2, %v1256_v14 }
 0x2d9   :  { %2098 = vrcp.f32 %v1225_v34 }
 0x2dd   :  { %v2097_v23 = vpop.eup %2096 }
 0x2de   :  { %v1246_v45 = vmul.f32 %v2097_v23, %v2801_v35  ;;  %v1219_v6 = vpop.xlane.xlu0 %1218  ;;  %v1234_v11 = vpop.xlane.xlu2 %1233  ;;  %v2063_v23 = vld [vmem:[%s3144_s11] ss:$0 sm:$0xff] }
 0x2df   :  { %v2099_v5 = vpop.eup %2098  ;;  %2100 = vrcp.f32 %v1219_v6 }
 0x2e0   :  { %v1254_v13 = vpack.c.bf16 %v1246_v45, %v1246_v45  ;;  %v1249_v25 = vmul.f32 %v2099_v5, %v2805_v42  ;;  %2102 = vrcp.f32 %v1234_v11  ;;  %v2064_v11 = vld [vmem:[%s3143_s10 + $0x2] ss:$0 sm:$0xff] }
 0x2e2   :  { %v1257_v29 = vpack.c.bf16 %v1249_v25, %v1249_v25  ;;  %2003 = vmatmul.msk.bf16.vlgmr.msra.gmra.mxu3 %vm951_vm2, %v1254_v13 }
 0x2e4   :  { %2006 = vmatmul.msk.bf16.vlgmr.msrb.gmra.mxu2 %vm951_vm2, %v1257_v29  ;;  %v2065_v29 = vld [vmem:[%s3144_s11 + $0x2] ss:$0 sm:$0xff] }
 0x2e5   :  { %v2101_v43 = vpop.eup %2100 }
 0x2e6   :  { %v2103_v53 = vpop.eup %2102  ;;  %v1247_v54 = vmul.f32 %v2101_v43, %v2809_v47  ;;  %v1426_v30 = vpop.permute.xlu2 %1425 }
 0x2e7   :  { %v1228_v63 = vpop.xlane.xlu1 %1227  ;;  %v1252_v35 = vmul.f32 %v2103_v53, %v2811_v59  ;;  %v1428_v0 = vperm.slane %v1426_v30, 0 }
 0x2e8   :  { %2104 = vrcp.f32 %v1228_v63  ;;  %v1255_v33 = vpack.c.bf16 %v1247_v54, %v1247_v54  ;;  %v1237_v36 = vpop.xlane.xlu0 %1236 }
 0x2e9   :  { %v1260_v8 = vpack.c.bf16 %v1252_v35, %v1252_v35  ;;  %v1430_v42 = vmul.f32 %v1428_v0, %v2752_v26  ;;  %2106 = vrcp.f32 %v1237_v36 }
 0x2ea   :  { %2004 = vmatmul.msk.bf16.vlgmr.msrb.gmra.mxu0 %vm951_vm2, %v1255_v33 }
 0x2eb   :  { %v1434_v44 = vperm.slane %v1430_v42, 0  ;;  %2009 = vmatmul.msk.bf16.vlgmr.msra.gmra.mxu1 %vm951_vm2, %v1260_v8 }
 0x2ed   :  { %v1441_v47 = vmul.f32 %v1434_v44, %v2788_v46 }
 0x2ee   :  { %v2105_v50 = vpop.eup %2104 }
 0x2ef   :  { %v1250_v52 = vmul.f32 %v2105_v50, %v2818_v3  ;;  %v1231_v32 = vpop.xlane.xlu1 %1230  ;;  %v2107_v59 = vpop.eup %2106  ;;  %v1457_v16 = vsel %vm951_vm2, %v1441_v47, 0.0 }
 0x2f0   :  { %2108 = vrcp.f32 %v1231_v32  ;;  %v1253_v38 = vmul.f32 %v2107_v59, %v2822_v40  ;;  %1458 = vadd.xlane.f32.xlu2 %v1457_v16 }
 0x2f1   :  { %v1258_v31 = vpack.c.bf16 %v1250_v52, %v1250_v52 }
 0x2f2   :  { %v1261_v26 = vpack.c.bf16 %v1253_v38, %v1253_v38 }
 0x2f3   :  { %2007 = vmatmul.msk.bf16.vlgmr.msrb.gmra.mxu3 %vm951_vm2, %v1258_v31  ;;  %v2066_v31 = vld [vmem:[%s3143_s10 + $0x3] ss:$0 sm:$0xff] }
 0x2f4   :  { %2010 = vmatmul.msk.bf16.vlgmr.msra.gmra.mxu2 %vm951_vm2, %v1261_v26 }
 0x2f6   :  { %v2109_v39 = vpop.eup %2108 }
 0x2f7   :  { %v1251_v57 = vmul.f32 %v2109_v39, %v2826_v56  ;;  %v1443_v56 = vmul.f32 %v1434_v44, %v2767_v27  ;;  %v1442_v27 = vmul.f32 %v1434_v44, %v2775_v51 }
 0x2f9   :  { %v1259_v46 = vpack.c.bf16 %v1251_v57, %v1251_v57  ;;  %v1463_v55 = vsel %vm951_vm2, %v1443_v56, 0.0  ;;  %v1460_v18 = vsel %vm951_vm2, %v1442_v27, 0.0 }
 0x2fb   :  { %2008 = vmatmul.msk.bf16.vlgmr.msra.gmra.mxu0 %vm951_vm2, %v1259_v46  ;;  %v1420_v3 = vpop.permute.xlu0 %1419  ;;  %v2067_v46 = vld [vmem:[%s3144_s11 + $0x3] ss:$0 sm:$0xff] }
 0x2fc   :  { %v1422_v58 = vperm.slane %v1420_v3, 0 }
 0x2fe   :  { %v1429_v37 = vmul.f32 %v1422_v58, %v2737_v48 }
 0x300   :  { %v1433_v1 = vperm.slane %v1429_v37, 0 }
 0x302   :  { %v1437_v2 = vmul.f32 %v1433_v1, %v2760_v9  ;;  %v1439_v40 = vmul.f32 %v1433_v1, %v2740_v19  ;;  %v1440_v12 = vmul.f32 %v1433_v1, %v2747_v62  ;;  %v1444_v9 = vmul.f32 %v1434_v44, %v2779_v7 }
 0x303   :  { %v1438_v60 = vmul.f32 %v1433_v1, %v2743_v21 }
 0x304   :  { %v1445_v28 = vsel %vm951_vm2, %v1437_v2, 0.0  ;;  %v1451_v20 = vsel %vm951_vm2, %v1439_v40, 0.0  ;;  %v1454_v48 = vsel %vm951_vm2, %v1440_v12, 0.0  ;;  %v1466_v19 = vsel %vm951_vm2, %v1444_v9, 0.0 }
 0x305   :  { %1446 = vadd.xlane.f32.xlu0 %v1445_v28  ;;  %1452 = vadd.xlane.f32.xlu1 %v1451_v20  ;;  %v1448_v17 = vsel %vm951_vm2, %v1438_v60, 0.0 }
 0x30d   :  { %1464 = vadd.xlane.f32.xlu1 %v1463_v55 }
 0x315   :  { %1455 = vadd.xlane.f32.xlu1 %v1454_v48 }
 0x31d   :  { %1467 = vadd.xlane.f32.xlu1 %v1466_v19 }
 0x325   :  { %1449 = vadd.xlane.f32.xlu1 %v1448_v17 }
 0x32d   :  { %1461 = vadd.xlane.f32.xlu1 %v1460_v18 }
 0x355   :  { %v2958_v10 = vpop.f32.mrf.mxu1 }
 0x35d   :  { %v1318_v62 = vpop.f32.mrf.mxu1 }
 0x363   :  { %v1459_v51 = vpop.xlane.xlu2 %1458 }
 0x364   :  { %v1489_v45 = vmul.f32 %v2062_v24, %v1459_v51 }
 0x365   :  { %v2960_v22 = vpop.f32.mrf.mxu3 }
 0x366   :  { %v1513_v5 = vadd.f32 %v2063_v23, %v1489_v45 }
 0x367   :  { %v2962_v49 = vpop.f32.mrf.mxu0  ;;  %v2964_v7 = vpop.f32.mrf.mxu2 }
 0x368   :  { %v2966_v4 = vpop.f32.mrf.mxu1  ;;  %v2015_v63 = vmul.f32 -1.442695, %v1513_v5 }
 0x36a   :  { %2110 = vpow2.f32 %v2015_v63 }
 0x36d   :  { %v1280_v21 = vpop.f32.mrf.mxu3 }
 0x36f   :  { %v1299_v14 = vpop.f32.mrf.mxu0  ;;  %v1337_v15 = vpop.f32.mrf.mxu2 }
 0x370   :  { %v1394_v34 = vpop.f32.mrf.mxu1  ;;  %v2111_v32 = vpop.eup %2110 }
 0x371   :  { %v2989_v39 = vadd.f32 1.0, %v2111_v32 }
 0x376   :  { %v2974_v6 = vpop.f32.mrf.mxu3 }
 0x377   :  { %v2981_v25 = vpop.f32.mrf.mxu2 }
 0x378   :  { %v2979_v13 = vpop.f32.mrf.mxu0  ;;  %v1447_v43 = vpop.xlane.xlu0 %1446 }
 0x379   :  { %v1453_v53 = vpop.xlane.xlu1 %1452  ;;  %v1485_v54 = vmul.f32 %v2062_v24, %v1447_v43 }
 0x37a   :  { %v1487_v30 = vmul.f32 %v2064_v11, %v1453_v53  ;;  %v2069_v53 = vld [vmem:[%s3144_s11 + $0x1] ss:$0 sm:$0xff]  ;;  %s2309_s11 = smov 24  }
 0x37b   :  { %v1509_v35 = vadd.f32 %v2063_v23, %v1485_v54  ;;  %v2068_v23 = vld [vmem:[%s3143_s10 + $0x1] ss:$0 sm:$0xff]  ;;  %s2308_s10 = smov 16  }
 0x37c   :  { %v1511_v0 = vadd.f32 %v2065_v29, %v1487_v30 }
 0x37d   :  { %v2011_v33 = vmul.f32 -1.442695, %v1509_v35 }
 0x37e   :  { %v2013_v36 = vmul.f32 -1.442695, %v1511_v0  ;;  %v1356_v8 = vpop.f32.mrf.mxu3 }
 0x37f   :  { %2112 = vpow2.f32 %v2011_v33  ;;  %v1413_v44 = vpop.f32.mrf.mxu2 }
 0x380   :  { %v1375_v42 = vpop.f32.mrf.mxu0  ;;  %2114 = vpow2.f32 %v2013_v36 }
 0x381   :  { %v1465_v50 = vpop.xlane.xlu1 %1464 }
 0x382   :  { %v1491_v47 = vmul.f32 %v2064_v11, %v1465_v50 }
 0x384   :  { %v1515_v52 = vadd.f32 %v2065_v29, %v1491_v47 }
 0x385   :  { %v2113_v59 = vpop.eup %2112 }
 0x386   :  { %v2017_v16 = vmul.f32 -1.442695, %v1515_v52  ;;  %v2115_v38 = vpop.eup %2114  ;;  %v1541_v26 = vadd.f32 1.0, %v2113_v59 }
 0x387   :  { %v1543_v57 = vadd.f32 1.0, %v2115_v38 }
 0x388   :  { %2116 = vpow2.f32 %v2017_v16  ;;  %v1558_v60 = vand.u32 2147483647, %v1541_v26  ;;  %v1560_v17 = vand.u32 2147483648, %v1541_v26  ;;  %vm1554_vm14 = vweird.f32 %v1541_v26 }
 0x389   :  { %2118 = vrcp.f32 %v1541_v26  ;;  %v1456_v3 = vpop.xlane.xlu1 %1455  ;;  %v1590_v21 = vand.u32 2147483648, %v1543_v57  ;;  %v1588_v51 = vand.u32 2147483647, %v1543_v57  ;;  %vm1584_vm15 = vweird.f32 %v1543_v57 }
 0x38a   :  { %2120 = vrcp.f32 %v1543_v57  ;;  %v1488_v58 = vmul.f32 %v2066_v31, %v1456_v3  ;;  %vm1559_vm4 = vcmp.eq.f32.partialorder %v1558_v60, 8.507059e+37  ;;  %v1561_v29 = vor.u32 1.1754944e-38, %v1560_v17 }
 0x38b   :  { %2122 = vrcp.f32 %v2989_v39  ;;  %v1591_v30 = vor.u32 1.1754944e-38, %v1590_v21  ;;  %vm1589_vm6 = vcmp.eq.f32.partialorder %v1588_v51, 8.507059e+37 }
 0x38c   :  { %v1512_v37 = vadd.f32 %v2067_v46, %v1488_v58 }
 0x38e   :  { %v2117_v1 = vpop.eup %2116  ;;  %v2014_v2 = vmul.f32 -1.442695, %v1512_v37 }
 0x38f   :  { %v2119_v40 = vpop.eup %2118  ;;  %v2995_v28 = vadd.f32 1.0, %v2117_v1 }
 0x390   :  { %v2121_v20 = vpop.eup %2120  ;;  %2124 = vpow2.f32 %v2014_v2  ;;  %v1550_v56 = vmul.f32 %v2119_v40, %v1541_v26  ;;  %vm1555_vm12 = vweird.f32 %v2119_v40 }
 0x391   :  { %2126 = vrcp.f32 %v2995_v28  ;;  %v1468_v55 = vpop.xlane.xlu1 %1467  ;;  %v1580_v12 = vmul.f32 %v2121_v20, %v1543_v57  ;;  %v2998_v48 = vpop.eup %2122  ;;  %vm1585_vm13 = vweird.f32 %v2121_v20  ;;  %vm1556_vm3 = vmor %vm1554_vm14, %vm1555_vm12  ;;  %v1650_v50 = vand.u32 2147483648, %v2995_v28 }
 0x392   :  { %v1492_v9 = vmul.f32 %v2066_v31, %v1468_v55  ;;  %v1551_v19 = vsub.f32 1.0, %v1550_v56  ;;  %v1610_v14 = vmul.f32 %v2998_v48, %v2989_v39  ;;  %vm1586_vm5 = vmor %vm1584_vm15, %vm1585_vm13  ;;  %v1648_v32 = vand.u32 2147483647, %v2995_v28 }
 0x393   :  { %v1581_v27 = vsub.f32 1.0, %v1580_v12  ;;  %vm1644_vm8 = vweird.f32 %v2995_v28  ;;  %vm1615_vm11 = vweird.f32 %v2998_v48  ;;  %vm1614_vm12 = vweird.f32 %v2989_v39 }
 0x394   :  { %v1516_v18 = vadd.f32 %v2067_v46, %v1492_v9  ;;  %v1552_v62 = vmul.f32 %v2119_v40, %v1551_v19  ;;  %v1611_v44 = vsub.f32 1.0, %v1610_v14  ;;  %v1651_v46 = vor.u32 1.1754944e-38, %v1650_v50  ;;  %vm3025_vm14 = vmor %vm1614_vm12, %vm1615_vm11 }
 0x395   :  { %v1582_v24 = vmul.f32 %v2121_v20, %v1581_v27  ;;  %vm1649_vm10 = vcmp.eq.f32.partialorder %v1648_v32, 8.507059e+37  ;;  %v1620_v56 = vand.u32 2147483648, %v2989_v39 }
 0x396   :  { %v2125_v15 = vpop.eup %2124  ;;  %v2018_v34 = vmul.f32 -1.442695, %v1516_v18  ;;  %v1553_v45 = vadd.f32 %v2119_v40, %v1552_v62  ;;  %v1612_v38 = vmul.f32 %v2998_v48, %v1611_v44 }
 0x397   :  { %v2127_v11 = vpop.eup %2126  ;;  %v3005_v5 = vadd.f32 1.0, %v2125_v15  ;;  %v1583_v43 = vadd.f32 %v2121_v20, %v1582_v24  ;;  %v1621_v24 = vor.u32 1.1754944e-38, %v1620_v56 }
 0x398   :  { %2128 = vpow2.f32 %v2018_v34  ;;  %v1557_v54 = vsel %vm1556_vm3, %v2119_v40, %v1553_v45  ;;  %v1640_v63 = vmul.f32 %v2127_v11, %v2995_v28  ;;  %vm1645_vm7 = vweird.f32 %v2127_v11 }
 0x399   :  { %2130 = vrcp.f32 %v3005_v5  ;;  %v1450_v35 = vpop.xlane.xlu1 %1449  ;;  %v1562_v0 = vsel %vm1559_vm4, %v1561_v29, %v1557_v54  ;;  %v1587_v33 = vsel %vm1586_vm5, %v2121_v20, %v1583_v43  ;;  %vm1646_vm9 = vmor %vm1644_vm8, %vm1645_vm7  ;;  %v1613_v40 = vadd.f32 %v2998_v48, %v1612_v38 }
 0x39a   :  { %v1486_v36 = vmul.f32 %v2068_v23, %v1450_v35  ;;  %1671 = vperm.xlu2 %2041, %v1562_v0   ;;  %v1592_v8 = vsel %vm1589_vm6, %v1591_v30, %v1587_v33  ;;  %v1641_v42 = vsub.f32 1.0, %v1640_v63  ;;  %v1618_v20 = vand.u32 2147483647, %v2989_v39 }
 0x39b   :  { %1681 = vperm.xlu1 %2058, %v1592_v8   ;;  %v1605_v55 = vand.u32 2147483648, %v3005_v5  ;;  %v1603_v19 = vand.u32 2147483647, %v3005_v5  ;;  %v1617_v18 = vsel %vm3025_vm14, %v2998_v48, %v1613_v40  ;;  %vm1599_vm15 = vweird.f32 %v3005_v5 }
 0x39c   :  { %v1510_v47 = vadd.f32 %v2069_v53, %v1486_v36  ;;  %v1642_v52 = vmul.f32 %v2127_v11, %v1641_v42  ;;  %vm1619_vm3 = vcmp.eq.f32.partialorder %v1618_v20, 8.507059e+37 }
 0x39d   :  { %v1606_v51 = vor.u32 1.1754944e-38, %v1605_v55  ;;  %vm1604_vm5 = vcmp.eq.f32.partialorder %v1603_v19, 8.507059e+37  ;;  %v1622_v34 = vsel %vm1619_vm3, %v1621_v24, %v1617_v18 }
 0x39e   :  { %v2129_v59 = vpop.eup %2128  ;;  %v2012_v16 = vmul.f32 -1.442695, %v1510_v47  ;;  %v1643_v31 = vadd.f32 %v2127_v11, %v1642_v52 }
 0x39f   :  { %v2131_v26 = vpop.eup %2130  ;;  %v1548_v57 = vadd.f32 1.0, %v2129_v59 }
 0x3a0   :  { %2132 = vpow2.f32 %v2012_v16  ;;  %v1647_v3 = vsel %vm1646_vm9, %v2127_v11, %v1643_v31  ;;  %v1595_v58 = vmul.f32 %v2131_v26, %v3005_v5  ;;  %vm1600_vm13 = vweird.f32 %v2131_v26 }
 0x3a1   :  { %2134 = vrcp.f32 %v1548_v57  ;;  %v1462_v37 = vpop.xlane.xlu1 %1461  ;;  %v1652_v1 = vsel %vm1649_vm10, %v1651_v46, %v1647_v3  ;;  %vm1601_vm4 = vmor %vm1599_vm15, %vm1600_vm13  ;;  %v1665_v48 = vand.u32 2147483648, %v1548_v57  ;;  %v1663_v5 = vand.u32 2147483647, %v1548_v57 }
 0x3a2   :  { %v1490_v2 = vmul.f32 %v2068_v23, %v1462_v37  ;;  %1701 = vperm.xlu0 %2042, %v1652_v1   ;;  %v1596_v28 = vsub.f32 1.0, %v1595_v58  ;;  %vm1659_vm7 = vweird.f32 %v1548_v57 }
 0x3a3   :  { %v1666_v30 = vor.u32 1.1754944e-38, %v1665_v48  ;;  %vm1664_vm9 = vcmp.eq.f32.partialorder %v1663_v5, 8.507059e+37 }
 0x3a4   :  { %v1514_v12 = vadd.f32 %v2069_v53, %v1490_v2  ;;  %v1597_v9 = vmul.f32 %v2131_v26, %v1596_v28 }
 0x3a6   :  { %v2133_v17 = vpop.eup %2132  ;;  %v2016_v27 = vmul.f32 -1.442695, %v1514_v12  ;;  %v1598_v62 = vadd.f32 %v2131_v26, %v1597_v9 }
 0x3a7   :  { %v2135_v39 = vpop.eup %2134  ;;  %v1542_v21 = vadd.f32 1.0, %v2133_v17 }
 0x3a8   :  { %2136 = vpow2.f32 %v2016_v27  ;;  %v1602_v14 = vsel %vm1601_vm4, %v2131_v26, %v1598_v62  ;;  %v1655_v15 = vmul.f32 %v2135_v39, %v1548_v57  ;;  %vm1660_vm6 = vweird.f32 %v2135_v39 }
 0x3a9   :  { %2138 = vrcp.f32 %v1542_v21  ;;  %v1607_v23 = vsel %vm1604_vm5, %v1606_v51, %v1602_v14  ;;  %vm1661_vm8 = vmor %vm1659_vm7, %vm1660_vm6  ;;  %v1575_v36 = vand.u32 2147483648, %v1542_v21  ;;  %v1573_v42 = vand.u32 2147483647, %v1542_v21 }
 0x3aa   :  { %1691 = vperm.xlu0 %2042, %v1622_v34   ;;  %1686 = vperm.xlu1 %2058, %v1607_v23   ;;  %v1656_v45 = vsub.f32 1.0, %v1655_v15  ;;  %vm1569_vm11 = vweird.f32 %v1542_v21  ;;  %vm1963_vm5 = vcmask 130048   ;;  %vm1966_vm6 = vcmask 195584  }
 0x3ab   :  { %v1576_v47 = vor.u32 1.1754944e-38, %v1575_v36  ;;  %vm1574_vm13 = vcmp.eq.f32.partialorder %v1573_v42, 8.507059e+37 }
 0x3ac   :  { %v1657_v11 = vmul.f32 %v2135_v39, %v1656_v45 }
 0x3ae   :  { %v2137_v29 = vpop.eup %2136  ;;  %v1658_v43 = vadd.f32 %v2135_v39, %v1657_v11 }
 0x3af   :  { %v2139_v53 = vpop.eup %2138  ;;  %v1546_v54 = vadd.f32 1.0, %v2137_v29 }
 0x3b0   :  { %v1662_v63 = vsel %vm1661_vm8, %v2135_v39, %v1658_v43  ;;  %v1565_v35 = vmul.f32 %v2139_v53, %v1542_v21  ;;  %vm1570_vm10 = vweird.f32 %v2139_v53 }
 0x3b1   :  { %2140 = vrcp.f32 %v1546_v54  ;;  %v1667_v0 = vsel %vm1664_vm9, %v1666_v30, %v1662_v63  ;;  %vm1571_vm12 = vmor %vm1569_vm11, %vm1570_vm10  ;;  %v1635_v31 = vand.u32 2147483648, %v1546_v54  ;;  %v1633_v26 = vand.u32 2147483647, %v1546_v54 }
 0x3b2   :  { %1706 = vperm.xlu1 %2058, %v1667_v0   ;;  %v1566_v33 = vsub.f32 1.0, %v1565_v35  ;;  %vm1629_vm15 = vweird.f32 %v1546_v54 }
 0x3b3   :  { %v1636_v46 = vor.u32 1.1754944e-38, %v1635_v31  ;;  %vm1634_vm4 = vcmp.eq.f32.partialorder %v1633_v26, 8.507059e+37 }
 0x3b4   :  { %v1567_v8 = vmul.f32 %v2139_v53, %v1566_v33 }
 0x3b6   :  { %v1568_v44 = vadd.f32 %v2139_v53, %v1567_v8 }
 0x3b7   :  { %v2141_v50 = vpop.eup %2140 }
 0x3b8   :  { %v1572_v52 = vsel %vm1571_vm12, %v2139_v53, %v1568_v44  ;;  %v1625_v32 = vmul.f32 %v2141_v50, %v1546_v54  ;;  %vm1630_vm14 = vweird.f32 %v2141_v50 }
 0x3b9   :  { %v1577_v59 = vsel %vm1574_vm13, %v1576_v47, %v1572_v52  ;;  %vm1631_vm3 = vmor %vm1629_vm15, %vm1630_vm14 }
 0x3ba   :  { %1676 = vperm.xlu0 %2042, %v1577_v59   ;;  %v1626_v16 = vsub.f32 1.0, %v1625_v32 }
 0x3bc   :  { %v1627_v38 = vmul.f32 %v2141_v50, %v1626_v16 }
 0x3be   :  { %v1628_v57 = vadd.f32 %v2141_v50, %v1627_v38 }
 0x3c0   :  { %v1632_v3 = vsel %vm1631_vm3, %v2141_v50, %v1628_v57 }
 0x3c1   :  { %v1637_v58 = vsel %vm1634_vm4, %v1636_v46, %v1632_v3 }
 0x3c2   :  { %1696 = vperm.xlu2 %2041, %v1637_v58  }
 0x3f4   :  { %v1672_v2 = vpop.permute.xlu2 %1671 }
 0x3f5   :  { %v1709_v19 = vmul.f32 %v1672_v2, %v2960_v22 }
 0x3f7   :  { %v1719_v39 = vrot.slane %v1709_v19, 4 }
 0x40d   :  { %v1682_v1 = vpop.permute.xlu1 %1681 }
 0x40e   :  { %v1711_v55 = vmul.f32 %v1682_v1, %v2958_v10 }
 0x410   :  { %v1717_v18 = vrot.slane %v1711_v55, 4  ;;  %v1720_v51 = vsel %vm227_vm1, %v1711_v55, %v1719_v39 }
 0x411   :  { %v1728_v48 = vperm.slane %v1720_v51, %v2442_v41 }
 0x412   :  { %v1718_v10 = vsel %vm227_vm1, %v1717_v18, %v1709_v19 }
 0x413   :  { %v1724_v45 = vperm.slane %v1718_v10, %v2442_v41  ;;  %v1755_v33 = vrot.slane %v1728_v48, 4 }
 0x414   :  { %v1702_v37 = vpop.permute.xlu0 %1701 }
 0x415   :  { %v1715_v56 = vmul.f32 %v1702_v37, %v2966_v4  ;;  %v1743_v44 = vrot.slane %v1724_v45, 4 }
 0x417   :  { %v1773_v60 = vrot.slane %v1715_v56, 4 }
 0x41c   :  { %v1692_v40 = vpop.permute.xlu0 %1691  ;;  %v1687_v20 = vpop.permute.xlu1 %1686 }
 0x41d   :  { %v1713_v28 = vmul.f32 %v1692_v40, %v2974_v6  ;;  %v1697_v9 = vpop.permute.xlu2 %1696  ;;  %v1712_v14 = vmul.f32 %v1687_v20, %v2964_v7 }
 0x41e   :  { %v1714_v27 = vmul.f32 %v1697_v9, %v2979_v13 }
 0x41f   :  { %v1775_v12 = vrot.slane %v1713_v28, 4  ;;  %v1774_v62 = vsel %vm227_vm1, %v1773_v60, %v1713_v28  ;;  %v1729_v53 = vrot.slane %v1712_v14, 4 }
 0x420   :  { %v1787_v24 = vrot.slane %v1714_v27, 4  ;;  %v1780_v22 = vperm.slane %v1774_v62, %v2442_v41 }
 0x421   :  { %v1776_v17 = vsel %vm227_vm1, %v1715_v56, %v1775_v12 }
 0x422   :  { %v1784_v6 = vperm.slane %v1776_v17, %v2442_v41  ;;  %v1799_v11 = vrot.slane %v1780_v22, 4 }
 0x424   :  { %v1707_v21 = vpop.permute.xlu1 %1706  ;;  %v1811_v34 = vrot.slane %v1784_v6, 4 }
 0x425   :  { %v1716_v4 = vmul.f32 %v1707_v21, %v2981_v25 }
 0x427   :  { %v1785_v15 = vrot.slane %v1716_v4, 4  ;;  %v1788_v13 = vsel %vm227_vm1, %v1716_v4, %v1787_v24 }
 0x428   :  { %v1796_v23 = vperm.slane %v1788_v13, %v2442_v41 }
 0x429   :  { %v1786_v25 = vsel %vm227_vm1, %v1785_v15, %v1714_v27 }
 0x42a   :  { %v1792_v5 = vperm.slane %v1786_v25, %v2442_v41  ;;  %v1809_v29 = vrot.slane %v1796_v23, 4  ;;  %v1812_v43 = vsel %vm227_vm1, %v1796_v23, %v1811_v34 }
 0x42b   :  { %v1820_v7 = vperm.slane %v1812_v43, %v2455_v61 }
 0x42c   :  { %v1677_v54 = vpop.permute.xlu0 %1676  ;;  %v1797_v30 = vrot.slane %v1792_v5, 4  ;;  %v1800_v63 = vsel %vm227_vm1, %v1792_v5, %v1799_v11  ;;  %v1810_v35 = vsel %vm227_vm1, %v1809_v29, %v1784_v6 }
 0x42d   :  { %v1710_v0 = vmul.f32 %v1677_v54, %v2962_v49  ;;  %v1808_v36 = vperm.slane %v1800_v63, %v2455_v61  ;;  %v1816_v8 = vperm.slane %v1810_v35, %v2455_v61  ;;  %v1827_v42 = vrot.slane %v1820_v7, 4 }
 0x42e   :  { %v1798_v50 = vsel %vm227_vm1, %v1797_v30, %v1780_v22 }
 0x42f   :  { %v1730_v47 = vsel %vm227_vm1, %v1729_v53, %v1710_v0  ;;  %v1731_v52 = vrot.slane %v1710_v0, 4  ;;  %v1804_v32 = vperm.slane %v1798_v50, %v2455_v61  ;;  %v1823_v59 = vrot.slane %v1808_v36, 4 }
 0x430   :  { %v1825_v16 = vrot.slane %v1816_v8, 4  ;;  %v1828_v31 = vsel %vm227_vm1, 0.0, %v1827_v42  ;;  %v1736_v26 = vperm.slane %v1730_v47, %v2442_v41  ;;  %v1894_v57 = vsel %vm227_vm1, %v1827_v42, %v1816_v8 }
 0x431   :  { %v1899_v38 = vrot.slane %v1828_v31, 4  ;;  %v1732_v49 = vsel %vm227_vm1, %v1712_v14, %v1731_v52  ;;  %v1821_v46 = vrot.slane %v1804_v32, 4  ;;  %v1824_v3 = vsel %vm227_vm1, 0.0, %v1823_v59 }
 0x432   :  { %v1740_v58 = vperm.slane %v1732_v49, %v2442_v41  ;;  %v1826_v37 = vsel %vm227_vm1, 0.0, %v1825_v16  ;;  %v1888_v1 = vrot.slane %v1824_v3, 4  ;;  %v1741_v2 = vrot.slane %v1736_v26, 4 }
 0x433   :  { %v1744_v40 = vsel %vm227_vm1, %v1736_v26, %v1743_v44  ;;  %v1883_v28 = vsel %vm227_vm1, %v1823_v59, %v1804_v32  ;;  %v1822_v12 = vsel %vm227_vm1, 0.0, %v1821_v46  ;;  %v1898_v24 = vperm.slane %v1894_v57, %v2442_v41 }
 0x434   :  { %v1752_v20 = vperm.slane %v1744_v40, %v2455_v61  ;;  %v1753_v56 = vrot.slane %v1740_v58, 4  ;;  %v1756_v55 = vsel %vm227_vm1, %v1740_v58, %v1755_v33  ;;  %v1742_v9 = vsel %vm227_vm1, %v1741_v2, %v1724_v45 }
 0x435   :  { %v1764_v19 = vperm.slane %v1756_v55, %v2455_v61  ;;  %v1887_v60 = vperm.slane %v1883_v28, %v2442_v41  ;;  %v1889_v17 = vsel %vm227_vm1, %v1888_v1, %v1822_v12  ;;  %v1748_v27 = vperm.slane %v1742_v9, %v2455_v61 }
 0x436   :  { %v1754_v18 = vsel %vm227_vm1, %v1753_v56, %v1728_v48  ;;  %v1767_v62 = vrot.slane %v1752_v20, 4  ;;  %v1893_v39 = vperm.slane %v1889_v17, %v2442_v41  ;;  %v1900_v4 = vsel %vm227_vm1, %v1899_v38, %v1826_v37 }
 0x437   :  { %v1760_v6 = vperm.slane %v1754_v18, %v2455_v61  ;;  %v1771_v21 = vrot.slane %v1764_v19, 4  ;;  %v1765_v10 = vrot.slane %v1748_v27, 4  ;;  %v1904_v22 = vperm.slane %v1900_v4, %v2442_v41 }
 0x438   :  { %v1768_v51 = vsel %vm227_vm1, 0.0, %v1767_v62  ;;  %v1905_v14 = vrot.slane %v1893_v39, 4  ;;  %v1829_v23 = vsel %vm227_vm1, %v1767_v62, %v1748_v27  ;;  %v1907_v44 = vrot.slane %v1887_v60, 4 }
 0x439   :  { %v1769_v15 = vrot.slane %v1760_v6, 4  ;;  %v1772_v13 = vsel %vm227_vm1, 0.0, %v1771_v21  ;;  %v1834_v34 = vrot.slane %v1768_v51, 4  ;;  %v1917_v25 = vrot.slane %v1904_v22, 4 }
 0x43a   :  { %v1845_v45 = vrot.slane %v1772_v13, 4  ;;  %v1906_v48 = vsel %vm227_vm1, %v1905_v14, %v1887_v60  ;;  %v1766_v11 = vsel %vm227_vm1, 0.0, %v1765_v10  ;;  %v1833_v43 = vperm.slane %v1829_v23, %v2442_v41 }
 0x43b   :  { %v1912_v5 = vperm.slane %v1906_v48, %v2455_v61  ;;  %v1770_v29 = vsel %vm227_vm1, 0.0, %v1769_v15  ;;  %v1835_v53 = vsel %vm227_vm1, %v1834_v34, %v1766_v11  ;;  %v1918_v7 = vsel %vm227_vm1, %v1917_v25, %v1898_v24 }
 0x43c   :  { %v1839_v54 = vperm.slane %v1835_v53, %v2442_v41  ;;  %v1840_v30 = vsel %vm227_vm1, %v1771_v21, %v1760_v6  ;;  %v1846_v63 = vsel %vm227_vm1, %v1845_v45, %v1770_v29  ;;  %v1924_v35 = vperm.slane %v1918_v7, %v2455_v61 }
 0x43d   :  { %v1931_v0 = vrot.slane %v1912_v5, 4  ;;  %v1844_v33 = vperm.slane %v1840_v30, %v2442_v41  ;;  %v1850_v36 = vperm.slane %v1846_v63, %v2442_v41  ;;  %v1853_v8 = vrot.slane %v1833_v43, 4 }
 0x43e   :  { %v1851_v42 = vrot.slane %v1839_v54, 4  ;;  %v1919_v50 = vrot.slane %v1898_v24, 4  ;;  %v1929_v47 = vrot.slane %v1924_v35, 4  ;;  %v1908_v1 = vsel %vm227_vm1, %v1893_v39, %v1907_v44 }
 0x43f   :  { %v1932_v52 = vsel %vm227_vm1, %v1924_v35, %v1931_v0  ;;  %v1865_v32 = vrot.slane %v1844_v33, 4  ;;  %v1863_v59 = vrot.slane %v1850_v36, 4  ;;  %v1854_v16 = vsel %vm227_vm1, %v1839_v54, %v1853_v8 }
 0x440   :  { %1941 = vrot.lane.b32.xlu0 %v1932_v52, %s2296_s30  ;;  %v1852_v31 = vsel %vm227_vm1, %v1851_v42, %v1833_v43  ;;  %v1862_v38 = vperm.slane %v1854_v16, %v2455_v61  ;;  %v1920_v3 = vsel %vm227_vm1, %v1904_v22, %v1919_v50  ;;  %v1930_v2 = vsel %vm227_vm1, %v1929_v47, %v1912_v5 }
 0x441   :  { %v1866_v49 = vsel %vm227_vm1, %v1850_v36, %v1865_v32  ;;  %v1858_v41 = vperm.slane %v1852_v31, %v2455_v61  ;;  %v1864_v26 = vsel %vm227_vm1, %v1863_v59, %v1844_v33  ;;  %v1928_v56 = vperm.slane %v1920_v3, %v2455_v61 }
 0x442   :  { %v1874_v57 = vperm.slane %v1866_v49, %v2455_v61  ;;  %v1870_v46 = vperm.slane %v1864_v26, %v2455_v61  ;;  %v1881_v37 = vrot.slane %v1862_v38, 4  ;;  %v1916_v12 = vperm.slane %v1908_v1, %v2455_v61 }
 0x443   :  { %v1877_v58 = vrot.slane %v1858_v41, 4  ;;  %v1933_v60 = vrot.slane %v1928_v56, 4 }
 0x444   :  { %v1879_v40 = vrot.slane %v1874_v57, 4  ;;  %v1875_v28 = vrot.slane %v1870_v46, 4  ;;  %v1882_v19 = vsel %vm227_vm1, %v1874_v57, %v1881_v37  ;;  %v1935_v17 = vrot.slane %v1916_v12, 4 }
 0x445   :  { %v1878_v20 = vsel %vm227_vm1, %v1870_v46, %v1877_v58  ;;  %v1934_v27 = vsel %vm227_vm1, %v1933_v60, %v1916_v12 }
 0x446   :  { %v1880_v55 = vsel %vm227_vm1, %v1879_v40, %v1862_v38  ;;  %1939 = vrot.lane.b32.xlu1 %v1878_v20, %s2296_s30  ;;  %v1876_v9 = vsel %vm227_vm1, %v1875_v28, %v1858_v41  ;;  %v1936_v18 = vsel %vm227_vm1, %v1928_v56, %v1935_v17 }
 0x447   :  { %1947 = vrot.lane.b32.xlu2 %v1880_v55, %s2308_s10 }
 0x448   :  { %1955 = vrot.lane.b32.xlu0 %v1882_v19, %s2309_s11 }
 0x44e   :  { %1949 = vrot.lane.b32.xlu1 %v1934_v27, %s2308_s10 }
 0x44f   :  { %1957 = vrot.lane.b32.xlu2 %v1936_v18, %s2309_s11 }
 0x4a1   :  { %v1948_v39 = vpop.permute.xlu2 %1947 }
 0x4a9   :  { %v1958_v22 = vpop.permute.xlu2 %1957 }
 0x4b2   :  { %v1942_v62 = vpop.permute.xlu0 %1941 }
 0x4b3   :  { %v1962_v10 = vsel %vm951_vm2, %v1930_v2, %v1942_v62 }
 0x4b8   :  { %v1940_v61 = vpop.permute.xlu1 %1939 }
 0x4b9   :  { %v1961_v6 = vsel %vm951_vm2, %v1876_v9, %v1940_v61 }
 0x4ba   :  { %v1964_v21 = vsel %vm1963_vm5, %v1961_v6, %v1948_v39  ;;  %v1956_v24 = vpop.permute.xlu0 %1955 }
 0x4bb   :  { %v1967_v4 = vsel %vm1966_vm6, %v1964_v21, %v1956_v24 }
 0x4bc   :  { %1969 = vst.msk [vmem:[#allocation11] sm:$0xff] %vm134_vm0, %v1967_v4 }
 0x4c0   :  { %v1950_v51 = vpop.permute.xlu1 %1949 }
 0x4c1   :  { %v1965_v14 = vsel %vm1963_vm5, %v1962_v10, %v1950_v51 }
 0x4c2   :  { %v1968_v15 = vsel %vm1966_vm6, %v1965_v14, %v1958_v22 }
 0x4c3   :  { %1970 = vst.msk [vmem:[#allocation11 + $0x8] sm:$0xff] %vm134_vm0, %v1968_v15 }
 0x4c4   :  { %1983 = dma.vmem_to_hbm [thread:$0]  %s1976_s15, 256, %s1978_s9, [#allocation4], %s2295_s29, %s2295_s29, %s2296_s30  }
 0x4c5   :  { %2292 = dma.done.wait [#allocation4], 256  }
 0x4c6   :  { %2293 = vsyncadd [#allocation4], 4294967040 }
 0x4c7   :  { %1988 = vsyncpa [#allocation3], 1 }
 0x4c8   :  { %1989 = vsyncpa [#allocation6], 1 }
 0x4c9   :  { %1990 = vsyncpa [#allocation9], 1 }
 0x4ca   :  { %1991 = vsyncpa [#allocation4], 1 }

</bundles_post_ra>
